<compile_context>
chip_gen: v7x
topology: tpu7x:2x2x1
jax: 0.10.0
libtpu: 0.0.40
codegen_flags: <defaults>
</compile_context>

<pallas_src>
import math

import jax
import jax.numpy as jnp
from jax.experimental import pallas as pl
from jax.experimental.pallas import tpu as pltpu

# ----------------------------- tiny MBart config -----------------------------
VOCAB = 64
VOCAB_PAD = 128          # lane-dense padded vocab for the kernel output
D_MODEL = 32
NUM_HEADS = 4
HEAD_DIM = D_MODEL // NUM_HEADS
FFN_DIM = 64
NUM_LAYERS = 2
MAX_POS = 64
PAD_TOKEN_ID = 1
NEG_INF = -1e9

# Order of weight arguments fed to the fused kernel.
WEIGHT_KEYS = (
    "gln_g", "gln_b",          # (2, 1, D) f32   [embedding LN, final LN]
    "ln_g", "ln_b",            # (L, 3, 1, D) f32 [self, cross, ffn] pre-LNs
    "sa_qkv_w", "sa_qkv_b",    # (L, D, 3D) bf16, (L, 1, 3D) f32  (q pre-scaled)
    "sa_o_w", "sa_o_b",        # (L, D, D) bf16, (L, 1, D) f32
    "ca_q_w", "ca_q_b",        # (L, D, D) bf16, (L, 1, D) f32    (pre-scaled)
    "ca_kv_w", "ca_kv_b",      # (L, D, 2D) bf16, (L, 1, 2D) f32
    "ca_o_w", "ca_o_b",        # (L, D, D) bf16, (L, 1, D) f32
    "fc1_w", "fc1_b",          # (L, D, F) bf16, (L, 1, F) f32
    "fc2_w", "fc2_b",          # (L, F, D) bf16, (L, 1, D) f32
    "lm_w", "lm_b",            # (D, VOCAB_PAD) bf16, (1, VOCAB_PAD) f32
)


# ------------------------------ in-kernel helpers ------------------------------
def _layernorm(x, g, b):
    """x: (M, D) f32, g/b: (1, D) f32."""
    mu = jnp.mean(x, axis=-1, keepdims=True)
    xc = x - mu
    var = jnp.mean(xc * xc, axis=-1, keepdims=True)
    return xc * jax.lax.rsqrt(var + 1e-5) * g + b


def _gelu(x):
    # exact (erf) GELU, as in MBart.
    # TODO(synk): jax.nn.gelu(approximate=True) would move this onto the EUP
    # slot (tanh) if a ~1e-3 deviation from the reference is acceptable.
    return 0.5 * x * (1.0 + jax.lax.erf(x * 0.7071067811865475))


def _split_heads(x):
    """(S, D) f32 -> (H, S, d) bf16 via static lane slices (no risky reshape)."""
    return jnp.stack(
        [x[:, h * HEAD_DIM:(h + 1) * HEAD_DIM] for h in range(NUM_HEADS)],
        axis=0).astype(jnp.bfloat16)


def _mha(q, k, v, mask, o_w):
    """Multi-head attention + fused output projection.

    q: (Sq, D) f32 (already scaled), k/v: (Sk, D) f32,
    mask: additive f32, broadcastable to (Sq, Sk), o_w: (D, D) bf16.
    Returns (Sq, D) f32 (no output bias).
    """
    qh = _split_heads(q)                               # (H, Sq, d) bf16
    kh = _split_heads(k)                               # (H, Sk, d) bf16
    vh = _split_heads(v)                               # (H, Sk, d) bf16
    # One head-batched matmul for all scores (instead of H tiny dots).
    s = jnp.einsum('hqd,hkd->hqk', qh, kh,
                   preferred_element_type=jnp.float32)  # (H, Sq, Sk) f32
    s = s + mask[None]
    s = s - jnp.max(s, axis=-1, keepdims=True)
    p = jnp.exp(s)
    p = p * pl.reciprocal(jnp.sum(p, axis=-1, keepdims=True), approx=True)
    ctx = jnp.einsum('hqk,hkd->hqd', p.astype(jnp.bfloat16), vh,
                     preferred_element_type=jnp.float32)  # (H, Sq, d) f32
    # Collapse heads and do ONE output-projection matmul with K=D.
    ctx = jnp.concatenate([ctx[h] for h in range(NUM_HEADS)], axis=-1)  # (Sq, D)
    return jnp.dot(ctx.astype(jnp.bfloat16), o_w,
                   preferred_element_type=jnp.float32)


# --------------------------- fully fused decoder kernel ------------------------
def _decoder_kernel(h_ref, enc_ref, spad_ref, cpad_ref,
                    gln_g_ref, gln_b_ref, ln_g_ref, ln_b_ref,
                    sa_qkv_w_ref, sa_qkv_b_ref, sa_o_w_ref, sa_o_b_ref,
                    ca_q_w_ref, ca_q_b_ref, ca_kv_w_ref, ca_kv_b_ref,
                    ca_o_w_ref, ca_o_b_ref,
                    fc1_w_ref, fc1_b_ref, fc2_w_ref, fc2_b_ref,
                    lm_w_ref, lm_b_ref,
                    out_ref):
    D = D_MODEL
    x = h_ref[0]                             # (S, D) f32 token+pos embeddings
    enc = enc_ref[0]                         # (S_src, D) f32
    S = x.shape[0]
    S_src = enc.shape[0]

    # Additive masks built in VMEM from the (1, S*) pad rows -> no O(S^2) DMA.
    row = jax.lax.broadcasted_iota(jnp.int32, (S, S), 0)
    col = jax.lax.broadcasted_iota(jnp.int32, (S, S), 1)
    smask = jnp.where(col > row, NEG_INF, 0.0) + spad_ref[0]   # (S, S)
    cmask = cpad_ref[0]                                        # (1, S_src)

    # embedding layernorm
    h = _layernorm(x, gln_g_ref[0], gln_b_ref[0])

    # TODO(synk): at real MBart depth/width, convert to lax.fori_loop with a
    # layer grid axis (or pltpu.emit_pipeline) so per-layer weights stream
    # (double-buffered bf16) instead of all-resident — required for v7x 64MiB.
    for l in range(NUM_LAYERS):
        # ---------------- self attention (pre-LN) ----------------
        res = h
        hn = _layernorm(h, ln_g_ref[l, 0], ln_b_ref[l, 0])
        qkv = jnp.dot(hn.astype(jnp.bfloat16), sa_qkv_w_ref[l],
                      preferred_element_type=jnp.float32) + sa_qkv_b_ref[l]
        attn = _mha(qkv[:, :D], qkv[:, D:2 * D], qkv[:, 2 * D:], smask,
                    sa_o_w_ref[l])
        h = res + attn + sa_o_b_ref[l]

        # ---------------- cross attention -------------------------
        res = h
        hn = _layernorm(h, ln_g_ref[l, 1], ln_b_ref[l, 1])
        q = jnp.dot(hn.astype(jnp.bfloat16), ca_q_w_ref[l],
                    preferred_element_type=jnp.float32) + ca_q_b_ref[l]
        kv = jnp.dot(enc.astype(jnp.bfloat16), ca_kv_w_ref[l],
                     preferred_element_type=jnp.float32) + ca_kv_b_ref[l]
        attn = _mha(q, kv[:, :D], kv[:, D:], cmask, ca_o_w_ref[l])
        h = res + attn + ca_o_b_ref[l]

        # ---------------- FFN --------------------------------------
        res = h
        hn = _layernorm(h, ln_g_ref[l, 2], ln_b_ref[l, 2])
        f = jnp.dot(hn.astype(jnp.bfloat16), fc1_w_ref[l],
                    preferred_element_type=jnp.float32) + fc1_b_ref[l]
        f = _gelu(f)
        h = res + jnp.dot(f.astype(jnp.bfloat16), fc2_w_ref[l],
                          preferred_element_type=jnp.float32) + fc2_b_ref[l]

    # final layernorm + tied lm_head (+ final_logits_bias folded into lm_b)
    h = _layernorm(h, gln_g_ref[1], gln_b_ref[1])
    # TODO(synk): at real MBart scale (D=1024, vocab~250k) tile the lm_head
    # over the vocab dim and mark that grid axis "arbitrary".
    logits = jnp.dot(h.astype(jnp.bfloat16), lm_w_ref[...],
                     preferred_element_type=jnp.float32) + lm_b_ref[...]
    out_ref[0] = logits.astype(out_ref.dtype)


def _const_index_map(ndim):
    return lambda b: (0,) * ndim


# ------------------------------ model components ------------------------------
def shift_tokens_right(input_ids, pad_token_id):
    """MBart-style shift: last non-pad token wraps to the front."""
    # Assumes every row has at least one non-pad token (as in MBart training).
    idx_eos = jnp.sum((input_ids != pad_token_id).astype(jnp.int32), axis=1) - 1
    start = jnp.take_along_axis(input_ids, idx_eos[:, None], axis=1)[:, 0]
    return jnp.concatenate([start[:, None], input_ids[:, :-1]], axis=1)


def text_decoder_forward(packed, tgt_input_ids, tgt_attention_mask,
                         masked_attention_mask, encoder_hidden_states):
    # TODO(synk): `model_txt` (the frozen text encoder) is external to this
    # module; its output `encoder_hidden_states` is taken as an input here.
    B, S = tgt_input_ids.shape
    S_src = encoder_hidden_states.shape[1]
    D = D_MODEL

    decoder_input_ids = shift_tokens_right(tgt_input_ids, PAD_TOKEN_ID)

    # embeddings (scale_embedding=True, learned positions with offset 2)
    embed_scale = math.sqrt(D)
    hidden0 = (packed["embed_tokens"][decoder_input_ids] * embed_scale
               + packed["embed_positions"][jnp.arange(S) + 2][None, :, :])
    hidden0 = hidden0.astype(jnp.float32)

    # additive PAD rows only (O(B*S)); the full (S, S_kv) masks are built
    # inside the kernel from these rows + a causal iota term.
    spad = ((1.0 - tgt_attention_mask.astype(jnp.float32)) * NEG_INF)[:, None, :]
    cpad = ((1.0 - masked_attention_mask.astype(jnp.float32)) * NEG_INF)[:, None, :]

    weight_args = [packed[k] for k in WEIGHT_KEYS]

    in_specs = [
        pl.BlockSpec((1, S, D), lambda b: (b, 0, 0)),
        pl.BlockSpec((1, S_src, D), lambda b: (b, 0, 0)),
        pl.BlockSpec((1, 1, S), lambda b: (b, 0, 0)),
        pl.BlockSpec((1, 1, S_src), lambda b: (b, 0, 0)),
        # TODO(synk): at real scale add pipeline_mode=pl.Buffered(1) on these
        # constant-index weight specs (double buffering a never-changing block
        # is wasted VMEM on v7x).
    ] + [pl.BlockSpec(tuple(w.shape), _const_index_map(w.ndim))
         for w in weight_args]

    # ----- advisory cost estimate ------------------------------------------
    H, d, F = NUM_HEADS, HEAD_DIM, FFN_DIM
    per_layer_flops = (
        2 * S * D * 3 * D            # fused qkv
        + 2 * H * S * S * d * 2      # self scores + ctx
        + 2 * S * D * D              # self out proj
        + 2 * S * D * D              # cross q
        + 2 * S_src * D * 2 * D      # cross kv
        + 2 * H * S * S_src * d * 2  # cross scores + ctx
        + 2 * S * D * D              # cross out proj
        + 2 * S * D * F + 2 * S * F * D)
    flops = B * (NUM_LAYERS * per_layer_flops + 2 * S * D * VOCAB_PAD)
    transcendentals = B * NUM_LAYERS * (H * S * S + H * S * S_src + S * F)
    enc_f32 = encoder_hidden_states.astype(jnp.float32)
    all_in = [hidden0, enc_f32, spad, cpad] + weight_args
    bytes_accessed = int(sum(a.size * a.dtype.itemsize for a in all_in)
                         + B * S * VOCAB_PAD * 4)

    out = pl.pallas_call(
        _decoder_kernel,
        out_shape=jax.ShapeDtypeStruct((B, S, VOCAB_PAD), jnp.float32),
        grid=(B,),
        in_specs=in_specs,
        out_specs=pl.BlockSpec((1, S, VOCAB_PAD), lambda b: (b, 0, 0)),
        compiler_params=pltpu.CompilerParams(
            dimension_semantics=("parallel",),
            vmem_limit_bytes=32 * 1024 * 1024),
        cost_estimate=pl.CostEstimate(flops=flops,
                                      transcendentals=transcendentals,
                                      bytes_accessed=bytes_accessed),
    )(hidden0, enc_f32, spad, cpad, *weight_args)

    return out[:, :, :VOCAB]


# --------------------------- deterministic parameters --------------------------
def init_params(key):
    """Raw MBart-style parameters (unfused), as the PyTorch module stores them."""
    keys = iter(jax.random.split(key, 128))

    def dense(shape, scale=0.02):
        return scale * jax.random.normal(next(keys), shape, jnp.float32)

    def attn_params():
        return {
            "q_w": dense((D_MODEL, D_MODEL)), "q_b": dense((D_MODEL,)),
            "k_w": dense((D_MODEL, D_MODEL)), "k_b": dense((D_MODEL,)),
            "v_w": dense((D_MODEL, D_MODEL)), "v_b": dense((D_MODEL,)),
            "o_w": dense((D_MODEL, D_MODEL)), "o_b": dense((D_MODEL,)),
        }

    params = {
        "embed_tokens": dense((VOCAB, D_MODEL)),
        "embed_positions": dense((MAX_POS + 2, D_MODEL)),
        "ln_emb_g": jnp.ones((D_MODEL,), jnp.float32),
        "ln_emb_b": jnp.zeros((D_MODEL,), jnp.float32),
        "final_ln_g": jnp.ones((D_MODEL,), jnp.float32),
        "final_ln_b": jnp.zeros((D_MODEL,), jnp.float32),
        "final_logits_bias": jnp.zeros((1, VOCAB), jnp.float32),
        "layers": [],
    }
    for _ in range(NUM_LAYERS):
        params["layers"].append({
            "sa_ln_g": jnp.ones((D_MODEL,), jnp.float32),
            "sa_ln_b": jnp.zeros((D_MODEL,), jnp.float32),
            "ca_ln_g": jnp.ones((D_MODEL,), jnp.float32),
            "ca_ln_b": jnp.zeros((D_MODEL,), jnp.float32),
            "fi_ln_g": jnp.ones((D_MODEL,), jnp.float32),
            "fi_ln_b": jnp.zeros((D_MODEL,), jnp.float32),
            "self_attn": attn_params(),
            "cross_attn": attn_params(),
            "fc1_w": dense((D_MODEL, FFN_DIM)), "fc1_b": dense((FFN_DIM,)),
            "fc2_w": dense((FFN_DIM, D_MODEL)), "fc2_b": dense((D_MODEL,)),
        })
    return params


def pack_params(raw):
    """One-time parameter prep: fuse QKV, fold the 1/sqrt(head_dim) scale into
    Q, stack per-layer weights, cast matmul weights to bf16, and pad the tied
    lm_head (+ final_logits_bias) to a lane-dense 128-wide output."""
    scale = HEAD_DIM ** -0.5
    bf16 = jnp.bfloat16

    def stack(fn):
        return jnp.stack([fn(lp) for lp in raw["layers"]], axis=0)

    packed = {
        "embed_tokens": raw["embed_tokens"],            # f32 (gather path)
        "embed_positions": raw["embed_positions"],
        "gln_g": jnp.stack([raw["ln_emb_g"], raw["final_ln_g"]])[:, None, :],
        "gln_b": jnp.stack([raw["ln_emb_b"], raw["final_ln_b"]])[:, None, :],
        "ln_g": stack(lambda lp: jnp.stack(
            [lp["sa_ln_g"], lp["ca_ln_g"], lp["fi_ln_g"]]))[:, :, None, :],
        "ln_b": stack(lambda lp: jnp.stack(
            [lp["sa_ln_b"], lp["ca_ln_b"], lp["fi_ln_b"]]))[:, :, None, :],
        "sa_qkv_w": stack(lambda lp: jnp.concatenate(
            [lp["self_attn"]["q_w"] * scale,
             lp["self_attn"]["k_w"],
             lp["self_attn"]["v_w"]], axis=1)).astype(bf16),
        "sa_qkv_b": stack(lambda lp: jnp.concatenate(
            [lp["self_attn"]["q_b"] * scale,
             lp["self_attn"]["k_b"],
             lp["self_attn"]["v_b"]])[None, :]),
        "sa_o_w": stack(lambda lp: lp["self_attn"]["o_w"]).astype(bf16),
        "sa_o_b": stack(lambda lp: lp["self_attn"]["o_b"][None, :]),
        "ca_q_w": stack(lambda lp: lp["cross_attn"]["q_w"] * scale).astype(bf16),
        "ca_q_b": stack(lambda lp: (lp["cross_attn"]["q_b"] * scale)[None, :]),
        "ca_kv_w": stack(lambda lp: jnp.concatenate(
            [lp["cross_attn"]["k_w"], lp["cross_attn"]["v_w"]],
            axis=1)).astype(bf16),
        "ca_kv_b": stack(lambda lp: jnp.concatenate(
            [lp["cross_attn"]["k_b"], lp["cross_attn"]["v_b"]])[None, :]),
        "ca_o_w": stack(lambda lp: lp["cross_attn"]["o_w"]).astype(bf16),
        "ca_o_b": stack(lambda lp: lp["cross_attn"]["o_b"][None, :]),
        "fc1_w": stack(lambda lp: lp["fc1_w"]).astype(bf16),
        "fc1_b": stack(lambda lp: lp["fc1_b"][None, :]),
        "fc2_w": stack(lambda lp: lp["fc2_w"]).astype(bf16),
        "fc2_b": stack(lambda lp: lp["fc2_b"][None, :]),
        # tied lm_head weight + final_logits_bias, zero-padded to 128 lanes
        "lm_w": jnp.pad(raw["embed_tokens"].T,
                        ((0, 0), (0, VOCAB_PAD - VOCAB))).astype(bf16),
        "lm_b": jnp.pad(raw["final_logits_bias"],
                        ((0, 0), (0, VOCAB_PAD - VOCAB))),
    }
    return packed


# ------------------------------------ main -------------------------------------
if __name__ == "__main__":
    B, S = 2, 8
    key = jax.random.PRNGKey(0)
    k_par, k_ids, k_enc = jax.random.split(key, 3)

    raw_params = init_params(k_par)
    packed_params = pack_params(raw_params)

    # tgt_input: ids + attention mask (row 1 has two trailing pads)
    input_ids = jax.random.randint(k_ids, (B, S), 3, VOCAB, dtype=jnp.int32)
    lengths = jnp.array([S, S - 2], jnp.int32)
    attn_mask = (jnp.arange(S)[None, :] < lengths[:, None]).astype(jnp.int32)
    input_ids = jnp.where(attn_mask == 1, input_ids, PAD_TOKEN_ID)

    # masked_tgt_input mask + (frozen) text-encoder hidden states
    masked_attn_mask = attn_mask
    encoder_hidden_states = jax.random.normal(k_enc, (B, S, D_MODEL), jnp.float32)

    fwd = jax.jit(text_decoder_forward)
    lm_logits = fwd(packed_params, input_ids, attn_mask, masked_attn_mask,
                    encoder_hidden_states)
    jax.block_until_ready(lm_logits)

    assert lm_logits.shape == (B, S, VOCAB)
    assert bool(jnp.all(jnp.isfinite(lm_logits)))
    print("KERNEL_OK")
</pallas_src>

<mosaic_0001>
module attributes {stable_mosaic.version = 11 : i64} {
  func.func @_decoder_kernel(%arg0: i32, %arg1: memref<1x8x32xf32, #tpu.memory_space<vmem>>, %arg2: memref<1x8x32xf32, #tpu.memory_space<vmem>>, %arg3: memref<1x1x8xf32, #tpu.memory_space<vmem>>, %arg4: memref<1x1x8xf32, #tpu.memory_space<vmem>>, %arg5: memref<2x1x32xf32, #tpu.memory_space<vmem>>, %arg6: memref<2x1x32xf32, #tpu.memory_space<vmem>>, %arg7: memref<2x3x1x32xf32, #tpu.memory_space<vmem>>, %arg8: memref<2x3x1x32xf32, #tpu.memory_space<vmem>>, %arg9: memref<2x32x96xbf16, #tpu.memory_space<vmem>>, %arg10: memref<2x1x96xf32, #tpu.memory_space<vmem>>, %arg11: memref<2x32x32xbf16, #tpu.memory_space<vmem>>, %arg12: memref<2x1x32xf32, #tpu.memory_space<vmem>>, %arg13: memref<2x32x32xbf16, #tpu.memory_space<vmem>>, %arg14: memref<2x1x32xf32, #tpu.memory_space<vmem>>, %arg15: memref<2x32x64xbf16, #tpu.memory_space<vmem>>, %arg16: memref<2x1x64xf32, #tpu.memory_space<vmem>>, %arg17: memref<2x32x32xbf16, #tpu.memory_space<vmem>>, %arg18: memref<2x1x32xf32, #tpu.memory_space<vmem>>, %arg19: memref<2x32x64xbf16, #tpu.memory_space<vmem>>, %arg20: memref<2x1x64xf32, #tpu.memory_space<vmem>>, %arg21: memref<2x64x32xbf16, #tpu.memory_space<vmem>>, %arg22: memref<2x1x32xf32, #tpu.memory_space<vmem>>, %arg23: memref<32x128xbf16, #tpu.memory_space<vmem>>, %arg24: memref<1x128xf32, #tpu.memory_space<vmem>>, %arg25: memref<1x8x128xf32, #tpu.memory_space<vmem>>) attributes {dimension_semantics = [#tpu.dimension_semantics<parallel>], iteration_bounds = array<i64: 2>, scalar_prefetch = 0 : i64, scratch_operands = 0 : i64, tpu.core_type = #tpu.core_type<tc>, window_params = [{transform_indices = @transform_0, window_bounds = array<i64: 1, 8, 32>}, {transform_indices = @transform_1, window_bounds = array<i64: 1, 8, 32>}, {transform_indices = @transform_2, window_bounds = array<i64: 1, 1, 8>}, {transform_indices = @transform_3, window_bounds = array<i64: 1, 1, 8>}, {pipeline_mode = #tpu.pipeline_mode<synchronous>, transform_indices = @transform_4, window_bounds = array<i64: 2, 1, 32>}, {pipeline_mode = #tpu.pipeline_mode<synchronous>, transform_indices = @transform_5, window_bounds = array<i64: 2, 1, 32>}, {pipeline_mode = #tpu.pipeline_mode<synchronous>, transform_indices = @transform_6, window_bounds = array<i64: 2, 3, 1, 32>}, {pipeline_mode = #tpu.pipeline_mode<synchronous>, transform_indices = @transform_7, window_bounds = array<i64: 2, 3, 1, 32>}, {pipeline_mode = #tpu.pipeline_mode<synchronous>, transform_indices = @transform_8, window_bounds = array<i64: 2, 32, 96>}, {pipeline_mode = #tpu.pipeline_mode<synchronous>, transform_indices = @transform_9, window_bounds = array<i64: 2, 1, 96>}, {pipeline_mode = #tpu.pipeline_mode<synchronous>, transform_indices = @transform_10, window_bounds = array<i64: 2, 32, 32>}, {pipeline_mode = #tpu.pipeline_mode<synchronous>, transform_indices = @transform_11, window_bounds = array<i64: 2, 1, 32>}, {pipeline_mode = #tpu.pipeline_mode<synchronous>, transform_indices = @transform_12, window_bounds = array<i64: 2, 32, 32>}, {pipeline_mode = #tpu.pipeline_mode<synchronous>, transform_indices = @transform_13, window_bounds = array<i64: 2, 1, 32>}, {pipeline_mode = #tpu.pipeline_mode<synchronous>, transform_indices = @transform_14, window_bounds = array<i64: 2, 32, 64>}, {pipeline_mode = #tpu.pipeline_mode<synchronous>, transform_indices = @transform_15, window_bounds = array<i64: 2, 1, 64>}, {pipeline_mode = #tpu.pipeline_mode<synchronous>, transform_indices = @transform_16, window_bounds = array<i64: 2, 32, 32>}, {pipeline_mode = #tpu.pipeline_mode<synchronous>, transform_indices = @transform_17, window_bounds = array<i64: 2, 1, 32>}, {pipeline_mode = #tpu.pipeline_mode<synchronous>, transform_indices = @transform_18, window_bounds = array<i64: 2, 32, 64>}, {pipeline_mode = #tpu.pipeline_mode<synchronous>, transform_indices = @transform_19, window_bounds = array<i64: 2, 1, 64>}, {pipeline_mode = #tpu.pipeline_mode<synchronous>, transform_indices = @transform_20, window_bounds = array<i64: 2, 64, 32>}, {pipeline_mode = #tpu.pipeline_mode<synchronous>, transform_indices = @transform_21, window_bounds = array<i64: 2, 1, 32>}, {pipeline_mode = #tpu.pipeline_mode<synchronous>, transform_indices = @transform_22, window_bounds = array<i64: 32, 128>}, {pipeline_mode = #tpu.pipeline_mode<synchronous>, transform_indices = @transform_23, window_bounds = array<i64: 1, 128>}, {transform_indices = @transform_24, window_bounds = array<i64: 1, 8, 128>}]} {
    %c0 = arith.constant 0 : index
    %c0_0 = arith.constant 0 : index
    %c0_1 = arith.constant 0 : index
    %0 = vector.load %arg1[%c0, %c0_0, %c0_1] : memref<1x8x32xf32, #tpu.memory_space<vmem>>, vector<1x8x32xf32>
    %1 = vector.shape_cast %0 : vector<1x8x32xf32> to vector<8x32xf32>
    %c0_2 = arith.constant 0 : index
    %c0_3 = arith.constant 0 : index
    %c0_4 = arith.constant 0 : index
    %2 = vector.load %arg2[%c0_2, %c0_3, %c0_4] : memref<1x8x32xf32, #tpu.memory_space<vmem>>, vector<1x8x32xf32>
    %3 = vector.shape_cast %2 : vector<1x8x32xf32> to vector<8x32xf32>
    %4 = tpu.iota {dimensions = array<i32: 0>} : vector<8x8xi32>
    %5 = tpu.iota {dimensions = array<i32: 1>} : vector<8x8xi32>
    %6 = arith.cmpi sgt, %5, %4 : vector<8x8xi32>
    %cst = arith.constant -1.000000e+09 : f32
    %cst_5 = arith.constant 0.000000e+00 : f32
    %7 = vector.broadcast %cst : f32 to vector<8x8xf32>
    %8 = vector.broadcast %cst_5 : f32 to vector<8x8xf32>
    %9 = arith.select %6, %7, %8 : vector<8x8xi1>, vector<8x8xf32>
    %c0_6 = arith.constant 0 : index
    %c0_7 = arith.constant 0 : index
    %c0_8 = arith.constant 0 : index
    %10 = vector.load %arg3[%c0_6, %c0_7, %c0_8] : memref<1x1x8xf32, #tpu.memory_space<vmem>>, vector<1x1x8xf32>
    %11 = vector.shape_cast %10 : vector<1x1x8xf32> to vector<1x8xf32>
    %12 = vector.broadcast %11 : vector<1x8xf32> to vector<8x8xf32>
    %13 = arith.addf %9, %12 : vector<8x8xf32>
    %c0_9 = arith.constant 0 : index
    %c0_10 = arith.constant 0 : index
    %c0_11 = arith.constant 0 : index
    %14 = vector.load %arg4[%c0_9, %c0_10, %c0_11] : memref<1x1x8xf32, #tpu.memory_space<vmem>>, vector<1x1x8xf32>
    %15 = vector.shape_cast %14 : vector<1x1x8xf32> to vector<1x8xf32>
    %c0_12 = arith.constant 0 : index
    %c0_13 = arith.constant 0 : index
    %c0_14 = arith.constant 0 : index
    %16 = vector.load %arg5[%c0_12, %c0_13, %c0_14] : memref<2x1x32xf32, #tpu.memory_space<vmem>>, vector<1x1x32xf32>
    %17 = vector.shape_cast %16 : vector<1x1x32xf32> to vector<1x32xf32>
    %c0_15 = arith.constant 0 : index
    %c0_16 = arith.constant 0 : index
    %c0_17 = arith.constant 0 : index
    %18 = vector.load %arg6[%c0_15, %c0_16, %c0_17] : memref<2x1x32xf32, #tpu.memory_space<vmem>>, vector<1x1x32xf32>
    %19 = vector.shape_cast %18 : vector<1x1x32xf32> to vector<1x32xf32>
    %cst_18 = arith.constant dense<0.000000e+00> : vector<8xf32>
    %20 = vector.multi_reduction <add>, %1, %cst_18 [1] : vector<8x32xf32> to vector<8xf32>
    %21 = vector.shape_cast %20 : vector<8xf32> to vector<8x1xf32>
    %cst_19 = arith.constant 3.200000e+01 : f32
    %22 = vector.broadcast %cst_19 : f32 to vector<8x1xf32>
    %23 = arith.divf %21, %22 : vector<8x1xf32>
    %24 = vector.broadcast %23 : vector<8x1xf32> to vector<8x32xf32>
    %25 = arith.subf %1, %24 : vector<8x32xf32>
    %26 = arith.mulf %25, %25 : vector<8x32xf32>
    %cst_20 = arith.constant dense<0.000000e+00> : vector<8xf32>
    %27 = vector.multi_reduction <add>, %26, %cst_20 [1] : vector<8x32xf32> to vector<8xf32>
    %28 = vector.shape_cast %27 : vector<8xf32> to vector<8x1xf32>
    %cst_21 = arith.constant 3.200000e+01 : f32
    %29 = vector.broadcast %cst_21 : f32 to vector<8x1xf32>
    %30 = arith.divf %28, %29 : vector<8x1xf32>
    %cst_22 = arith.constant 9.99999974E-6 : f32
    %31 = vector.broadcast %cst_22 : f32 to vector<8x1xf32>
    %32 = arith.addf %30, %31 : vector<8x1xf32>
    %33 = math.rsqrt %32 : vector<8x1xf32>
    %34 = vector.broadcast %33 : vector<8x1xf32> to vector<8x32xf32>
    %35 = arith.mulf %25, %34 : vector<8x32xf32>
    %36 = vector.broadcast %17 : vector<1x32xf32> to vector<8x32xf32>
    %37 = arith.mulf %35, %36 : vector<8x32xf32>
    %38 = vector.broadcast %19 : vector<1x32xf32> to vector<8x32xf32>
    %39 = arith.addf %37, %38 : vector<8x32xf32>
    %c0_23 = arith.constant 0 : index
    %c0_24 = arith.constant 0 : index
    %c0_25 = arith.constant 0 : index
    %c0_26 = arith.constant 0 : index
    %40 = vector.load %arg7[%c0_23, %c0_24, %c0_25, %c0_26] : memref<2x3x1x32xf32, #tpu.memory_space<vmem>>, vector<1x1x1x32xf32>
    %41 = vector.shape_cast %40 : vector<1x1x1x32xf32> to vector<1x32xf32>
    %c0_27 = arith.constant 0 : index
    %c0_28 = arith.constant 0 : index
    %c0_29 = arith.constant 0 : index
    %c0_30 = arith.constant 0 : index
    %42 = vector.load %arg8[%c0_27, %c0_28, %c0_29, %c0_30] : memref<2x3x1x32xf32, #tpu.memory_space<vmem>>, vector<1x1x1x32xf32>
    %43 = vector.shape_cast %42 : vector<1x1x1x32xf32> to vector<1x32xf32>
    %cst_31 = arith.constant dense<0.000000e+00> : vector<8xf32>
    %44 = vector.multi_reduction <add>, %39, %cst_31 [1] : vector<8x32xf32> to vector<8xf32>
    %45 = vector.shape_cast %44 : vector<8xf32> to vector<8x1xf32>
    %cst_32 = arith.constant 3.200000e+01 : f32
    %46 = vector.broadcast %cst_32 : f32 to vector<8x1xf32>
    %47 = arith.divf %45, %46 : vector<8x1xf32>
    %48 = vector.broadcast %47 : vector<8x1xf32> to vector<8x32xf32>
    %49 = arith.subf %39, %48 : vector<8x32xf32>
    %50 = arith.mulf %49, %49 : vector<8x32xf32>
    %cst_33 = arith.constant dense<0.000000e+00> : vector<8xf32>
    %51 = vector.multi_reduction <add>, %50, %cst_33 [1] : vector<8x32xf32> to vector<8xf32>
    %52 = vector.shape_cast %51 : vector<8xf32> to vector<8x1xf32>
    %cst_34 = arith.constant 3.200000e+01 : f32
    %53 = vector.broadcast %cst_34 : f32 to vector<8x1xf32>
    %54 = arith.divf %52, %53 : vector<8x1xf32>
    %cst_35 = arith.constant 9.99999974E-6 : f32
    %55 = vector.broadcast %cst_35 : f32 to vector<8x1xf32>
    %56 = arith.addf %54, %55 : vector<8x1xf32>
    %57 = math.rsqrt %56 : vector<8x1xf32>
    %58 = vector.broadcast %57 : vector<8x1xf32> to vector<8x32xf32>
    %59 = arith.mulf %49, %58 : vector<8x32xf32>
    %60 = vector.broadcast %41 : vector<1x32xf32> to vector<8x32xf32>
    %61 = arith.mulf %59, %60 : vector<8x32xf32>
    %62 = vector.broadcast %43 : vector<1x32xf32> to vector<8x32xf32>
    %63 = arith.addf %61, %62 : vector<8x32xf32>
    %64 = arith.truncf %63 : vector<8x32xf32> to vector<8x32xbf16>
    %c0_36 = arith.constant 0 : index
    %c0_37 = arith.constant 0 : index
    %c0_38 = arith.constant 0 : index
    %65 = vector.load %arg9[%c0_36, %c0_37, %c0_38] : memref<2x32x96xbf16, #tpu.memory_space<vmem>>, vector<1x32x96xbf16>
    %66 = vector.shape_cast %65 : vector<1x32x96xbf16> to vector<32x96xbf16>
    %cst_39 = arith.constant dense<0.000000e+00> : vector<8x96xf32>
    %67 = tpu.matmul %64, %66, %cst_39 {dimension_numbers = #tpu.dot_dimension_numbers<[1], [0], [0], [1], [0, 0, 1, 1], [], []>} : vector<8x32xbf16>, vector<32x96xbf16>, vector<8x96xf32> -> vector<8x96xf32>
    %c0_40 = arith.constant 0 : index
    %c0_41 = arith.constant 0 : index
    %c0_42 = arith.constant 0 : index
    %68 = vector.load %arg10[%c0_40, %c0_41, %c0_42] : memref<2x1x96xf32, #tpu.memory_space<vmem>>, vector<1x1x96xf32>
    %69 = vector.shape_cast %68 : vector<1x1x96xf32> to vector<1x96xf32>
    %70 = vector.broadcast %69 : vector<1x96xf32> to vector<8x96xf32>
    %71 = arith.addf %67, %70 : vector<8x96xf32>
    %72 = vector.extract_strided_slice %71 {offsets = [0, 0], sizes = [8, 32], strides = [1, 1]} : vector<8x96xf32> to vector<8x32xf32>
    %73 = vector.extract_strided_slice %71 {offsets = [0, 32], sizes = [8, 32], strides = [1, 1]} : vector<8x96xf32> to vector<8x32xf32>
    %74 = vector.extract_strided_slice %71 {offsets = [0, 64], sizes = [8, 32], strides = [1, 1]} : vector<8x96xf32> to vector<8x32xf32>
    %c0_43 = arith.constant 0 : index
    %c0_44 = arith.constant 0 : index
    %c0_45 = arith.constant 0 : index
    %75 = vector.load %arg11[%c0_43, %c0_44, %c0_45] : memref<2x32x32xbf16, #tpu.memory_space<vmem>>, vector<1x32x32xbf16>
    %76 = vector.shape_cast %75 : vector<1x32x32xbf16> to vector<32x32xbf16>
    %77 = vector.extract_strided_slice %72 {offsets = [0, 0], sizes = [8, 8], strides = [1, 1]} : vector<8x32xf32> to vector<8x8xf32>
    %78 = vector.extract_strided_slice %72 {offsets = [0, 8], sizes = [8, 8], strides = [1, 1]} : vector<8x32xf32> to vector<8x8xf32>
    %79 = vector.extract_strided_slice %72 {offsets = [0, 16], sizes = [8, 8], strides = [1, 1]} : vector<8x32xf32> to vector<8x8xf32>
    %80 = vector.extract_strided_slice %72 {offsets = [0, 24], sizes = [8, 8], strides = [1, 1]} : vector<8x32xf32> to vector<8x8xf32>
    %81 = vector.shape_cast %77 : vector<8x8xf32> to vector<1x8x8xf32>
    %82 = vector.shape_cast %78 : vector<8x8xf32> to vector<1x8x8xf32>
    %83 = vector.shape_cast %79 : vector<8x8xf32> to vector<1x8x8xf32>
    %84 = vector.shape_cast %80 : vector<8x8xf32> to vector<1x8x8xf32>
    %85 = tpu.concatenate %81, %82, %83, %84 in 0 : vector<1x8x8xf32>, vector<1x8x8xf32>, vector<1x8x8xf32>, vector<1x8x8xf32> -> vector<4x8x8xf32>
    %86 = arith.truncf %85 : vector<4x8x8xf32> to vector<4x8x8xbf16>
    %87 = vector.extract_strided_slice %73 {offsets = [0, 0], sizes = [8, 8], strides = [1, 1]} : vector<8x32xf32> to vector<8x8xf32>
    %88 = vector.extract_strided_slice %73 {offsets = [0, 8], sizes = [8, 8], strides = [1, 1]} : vector<8x32xf32> to vector<8x8xf32>
    %89 = vector.extract_strided_slice %73 {offsets = [0, 16], sizes = [8, 8], strides = [1, 1]} : vector<8x32xf32> to vector<8x8xf32>
    %90 = vector.extract_strided_slice %73 {offsets = [0, 24], sizes = [8, 8], strides = [1, 1]} : vector<8x32xf32> to vector<8x8xf32>
    %91 = vector.shape_cast %87 : vector<8x8xf32> to vector<1x8x8xf32>
    %92 = vector.shape_cast %88 : vector<8x8xf32> to vector<1x8x8xf32>
    %93 = vector.shape_cast %89 : vector<8x8xf32> to vector<1x8x8xf32>
    %94 = vector.shape_cast %90 : vector<8x8xf32> to vector<1x8x8xf32>
    %95 = tpu.concatenate %91, %92, %93, %94 in 0 : vector<1x8x8xf32>, vector<1x8x8xf32>, vector<1x8x8xf32>, vector<1x8x8xf32> -> vector<4x8x8xf32>
    %96 = arith.truncf %95 : vector<4x8x8xf32> to vector<4x8x8xbf16>
    %97 = vector.extract_strided_slice %74 {offsets = [0, 0], sizes = [8, 8], strides = [1, 1]} : vector<8x32xf32> to vector<8x8xf32>
    %98 = vector.extract_strided_slice %74 {offsets = [0, 8], sizes = [8, 8], strides = [1, 1]} : vector<8x32xf32> to vector<8x8xf32>
    %99 = vector.extract_strided_slice %74 {offsets = [0, 16], sizes = [8, 8], strides = [1, 1]} : vector<8x32xf32> to vector<8x8xf32>
    %100 = vector.extract_strided_slice %74 {offsets = [0, 24], sizes = [8, 8], strides = [1, 1]} : vector<8x32xf32> to vector<8x8xf32>
    %101 = vector.shape_cast %97 : vector<8x8xf32> to vector<1x8x8xf32>
    %102 = vector.shape_cast %98 : vector<8x8xf32> to vector<1x8x8xf32>
    %103 = vector.shape_cast %99 : vector<8x8xf32> to vector<1x8x8xf32>
    %104 = vector.shape_cast %100 : vector<8x8xf32> to vector<1x8x8xf32>
    %105 = tpu.concatenate %101, %102, %103, %104 in 0 : vector<1x8x8xf32>, vector<1x8x8xf32>, vector<1x8x8xf32>, vector<1x8x8xf32> -> vector<4x8x8xf32>
    %106 = arith.truncf %105 : vector<4x8x8xf32> to vector<4x8x8xbf16>
    "tpu.trace_start"() <{level = 10 : i32, message = "hqd,hkd->hqk"}> : () -> ()
    %cst_46 = arith.constant dense<0.000000e+00> : vector<4x8x8xf32>
    %107 = tpu.matmul %86, %96, %cst_46 {dimension_numbers = #tpu.dot_dimension_numbers<[2], [2], [1], [1], [0, 0, 0, 1, 1, 1], [0], [0]>} : vector<4x8x8xbf16>, vector<4x8x8xbf16>, vector<4x8x8xf32> -> vector<4x8x8xf32>
    "tpu.trace_stop"() : () -> ()
    %108 = vector.shape_cast %13 : vector<8x8xf32> to vector<1x8x8xf32>
    %109 = vector.broadcast %108 : vector<1x8x8xf32> to vector<4x8x8xf32>
    %110 = arith.addf %107, %109 : vector<4x8x8xf32>
    %cst_47 = arith.constant dense<0xFF800000> : vector<4x8xf32>
    %111 = vector.multi_reduction <maximumf>, %110, %cst_47 [2] : vector<4x8x8xf32> to vector<4x8xf32>
    %112 = vector.shape_cast %111 : vector<4x8xf32> to vector<4x8x1xf32>
    %113 = vector.broadcast %112 : vector<4x8x1xf32> to vector<4x8x8xf32>
    %114 = arith.subf %110, %113 : vector<4x8x8xf32>
    %115 = math.exp %114 : vector<4x8x8xf32>
    %cst_48 = arith.constant dense<0.000000e+00> : vector<4x8xf32>
    %116 = vector.multi_reduction <add>, %115, %cst_48 [2] : vector<4x8x8xf32> to vector<4x8xf32>
    %117 = vector.shape_cast %116 : vector<4x8xf32> to vector<4x8x1xf32>
    %118 = tpu.reciprocal %117 {approx = true} : vector<4x8x1xf32> -> vector<4x8x1xf32>
    %119 = vector.broadcast %118 : vector<4x8x1xf32> to vector<4x8x8xf32>
    %120 = arith.mulf %115, %119 : vector<4x8x8xf32>
    %121 = arith.truncf %120 : vector<4x8x8xf32> to vector<4x8x8xbf16>
    "tpu.trace_start"() <{level = 10 : i32, message = "hqk,hkd->hqd"}> : () -> ()
    %cst_49 = arith.constant dense<0.000000e+00> : vector<4x8x8xf32>
    %122 = tpu.matmul %121, %106, %cst_49 {dimension_numbers = #tpu.dot_dimension_numbers<[2], [1], [1], [2], [0, 0, 0, 1, 1, 2], [0], [0]>} : vector<4x8x8xbf16>, vector<4x8x8xbf16>, vector<4x8x8xf32> -> vector<4x8x8xf32>
    "tpu.trace_stop"() : () -> ()
    %123 = vector.extract_strided_slice %122 {offsets = [0, 0, 0], sizes = [1, 8, 8], strides = [1, 1, 1]} : vector<4x8x8xf32> to vector<1x8x8xf32>
    %124 = vector.shape_cast %123 : vector<1x8x8xf32> to vector<8x8xf32>
    %125 = vector.extract_strided_slice %122 {offsets = [1, 0, 0], sizes = [1, 8, 8], strides = [1, 1, 1]} : vector<4x8x8xf32> to vector<1x8x8xf32>
    %126 = vector.shape_cast %125 : vector<1x8x8xf32> to vector<8x8xf32>
    %127 = vector.extract_strided_slice %122 {offsets = [2, 0, 0], sizes = [1, 8, 8], strides = [1, 1, 1]} : vector<4x8x8xf32> to vector<1x8x8xf32>
    %128 = vector.shape_cast %127 : vector<1x8x8xf32> to vector<8x8xf32>
    %129 = vector.extract_strided_slice %122 {offsets = [3, 0, 0], sizes = [1, 8, 8], strides = [1, 1, 1]} : vector<4x8x8xf32> to vector<1x8x8xf32>
    %130 = vector.shape_cast %129 : vector<1x8x8xf32> to vector<8x8xf32>
    %131 = tpu.concatenate %124, %126, %128, %130 in 1 : vector<8x8xf32>, vector<8x8xf32>, vector<8x8xf32>, vector<8x8xf32> -> vector<8x32xf32>
    %132 = arith.truncf %131 : vector<8x32xf32> to vector<8x32xbf16>
    %cst_50 = arith.constant dense<0.000000e+00> : vector<8x32xf32>
    %133 = tpu.matmul %132, %76, %cst_50 {dimension_numbers = #tpu.dot_dimension_numbers<[1], [0], [0], [1], [0, 0, 1, 1], [], []>} : vector<8x32xbf16>, vector<32x32xbf16>, vector<8x32xf32> -> vector<8x32xf32>
    %134 = arith.addf %39, %133 : vector<8x32xf32>
    %c0_51 = arith.constant 0 : index
    %c0_52 = arith.constant 0 : index
    %c0_53 = arith.constant 0 : index
    %135 = vector.load %arg12[%c0_51, %c0_52, %c0_53] : memref<2x1x32xf32, #tpu.memory_space<vmem>>, vector<1x1x32xf32>
    %136 = vector.shape_cast %135 : vector<1x1x32xf32> to vector<1x32xf32>
    %137 = vector.broadcast %136 : vector<1x32xf32> to vector<8x32xf32>
    %138 = arith.addf %134, %137 : vector<8x32xf32>
    %c0_54 = arith.constant 0 : index
    %c1 = arith.constant 1 : index
    %c0_55 = arith.constant 0 : index
    %c0_56 = arith.constant 0 : index
    %139 = vector.load %arg7[%c0_54, %c1, %c0_55, %c0_56] : memref<2x3x1x32xf32, #tpu.memory_space<vmem>>, vector<1x1x1x32xf32>
    %140 = vector.shape_cast %139 : vector<1x1x1x32xf32> to vector<1x32xf32>
    %c0_57 = arith.constant 0 : index
    %c1_58 = arith.constant 1 : index
    %c0_59 = arith.constant 0 : index
    %c0_60 = arith.constant 0 : index
    %141 = vector.load %arg8[%c0_57, %c1_58, %c0_59, %c0_60] : memref<2x3x1x32xf32, #tpu.memory_space<vmem>>, vector<1x1x1x32xf32>
    %142 = vector.shape_cast %141 : vector<1x1x1x32xf32> to vector<1x32xf32>
    %cst_61 = arith.constant dense<0.000000e+00> : vector<8xf32>
    %143 = vector.multi_reduction <add>, %138, %cst_61 [1] : vector<8x32xf32> to vector<8xf32>
    %144 = vector.shape_cast %143 : vector<8xf32> to vector<8x1xf32>
    %cst_62 = arith.constant 3.200000e+01 : f32
    %145 = vector.broadcast %cst_62 : f32 to vector<8x1xf32>
    %146 = arith.divf %144, %145 : vector<8x1xf32>
    %147 = vector.broadcast %146 : vector<8x1xf32> to vector<8x32xf32>
    %148 = arith.subf %138, %147 : vector<8x32xf32>
    %149 = arith.mulf %148, %148 : vector<8x32xf32>
    %cst_63 = arith.constant dense<0.000000e+00> : vector<8xf32>
    %150 = vector.multi_reduction <add>, %149, %cst_63 [1] : vector<8x32xf32> to vector<8xf32>
    %151 = vector.shape_cast %150 : vector<8xf32> to vector<8x1xf32>
    %cst_64 = arith.constant 3.200000e+01 : f32
    %152 = vector.broadcast %cst_64 : f32 to vector<8x1xf32>
    %153 = arith.divf %151, %152 : vector<8x1xf32>
    %cst_65 = arith.constant 9.99999974E-6 : f32
    %154 = vector.broadcast %cst_65 : f32 to vector<8x1xf32>
    %155 = arith.addf %153, %154 : vector<8x1xf32>
    %156 = math.rsqrt %155 : vector<8x1xf32>
    %157 = vector.broadcast %156 : vector<8x1xf32> to vector<8x32xf32>
    %158 = arith.mulf %148, %157 : vector<8x32xf32>
    %159 = vector.broadcast %140 : vector<1x32xf32> to vector<8x32xf32>
    %160 = arith.mulf %158, %159 : vector<8x32xf32>
    %161 = vector.broadcast %142 : vector<1x32xf32> to vector<8x32xf32>
    %162 = arith.addf %160, %161 : vector<8x32xf32>
    %163 = arith.truncf %162 : vector<8x32xf32> to vector<8x32xbf16>
    %c0_66 = arith.constant 0 : index
    %c0_67 = arith.constant 0 : index
    %c0_68 = arith.constant 0 : index
    %164 = vector.load %arg13[%c0_66, %c0_67, %c0_68] : memref<2x32x32xbf16, #tpu.memory_space<vmem>>, vector<1x32x32xbf16>
    %165 = vector.shape_cast %164 : vector<1x32x32xbf16> to vector<32x32xbf16>
    %cst_69 = arith.constant dense<0.000000e+00> : vector<8x32xf32>
    %166 = tpu.matmul %163, %165, %cst_69 {dimension_numbers = #tpu.dot_dimension_numbers<[1], [0], [0], [1], [0, 0, 1, 1], [], []>} : vector<8x32xbf16>, vector<32x32xbf16>, vector<8x32xf32> -> vector<8x32xf32>
    %c0_70 = arith.constant 0 : index
    %c0_71 = arith.constant 0 : index
    %c0_72 = arith.constant 0 : index
    %167 = vector.load %arg14[%c0_70, %c0_71, %c0_72] : memref<2x1x32xf32, #tpu.memory_space<vmem>>, vector<1x1x32xf32>
    %168 = vector.shape_cast %167 : vector<1x1x32xf32> to vector<1x32xf32>
    %169 = vector.broadcast %168 : vector<1x32xf32> to vector<8x32xf32>
    %170 = arith.addf %166, %169 : vector<8x32xf32>
    %171 = arith.truncf %3 : vector<8x32xf32> to vector<8x32xbf16>
    %c0_73 = arith.constant 0 : index
    %c0_74 = arith.constant 0 : index
    %c0_75 = arith.constant 0 : index
    %172 = vector.load %arg15[%c0_73, %c0_74, %c0_75] : memref<2x32x64xbf16, #tpu.memory_space<vmem>>, vector<1x32x64xbf16>
    %173 = vector.shape_cast %172 : vector<1x32x64xbf16> to vector<32x64xbf16>
    %cst_76 = arith.constant dense<0.000000e+00> : vector<8x64xf32>
    %174 = tpu.matmul %171, %173, %cst_76 {dimension_numbers = #tpu.dot_dimension_numbers<[1], [0], [0], [1], [0, 0, 1, 1], [], []>} : vector<8x32xbf16>, vector<32x64xbf16>, vector<8x64xf32> -> vector<8x64xf32>
    %c0_77 = arith.constant 0 : index
    %c0_78 = arith.constant 0 : index
    %c0_79 = arith.constant 0 : index
    %175 = vector.load %arg16[%c0_77, %c0_78, %c0_79] : memref<2x1x64xf32, #tpu.memory_space<vmem>>, vector<1x1x64xf32>
    %176 = vector.shape_cast %175 : vector<1x1x64xf32> to vector<1x64xf32>
    %177 = vector.broadcast %176 : vector<1x64xf32> to vector<8x64xf32>
    %178 = arith.addf %174, %177 : vector<8x64xf32>
    %179 = vector.extract_strided_slice %178 {offsets = [0, 0], sizes = [8, 32], strides = [1, 1]} : vector<8x64xf32> to vector<8x32xf32>
    %180 = vector.extract_strided_slice %178 {offsets = [0, 32], sizes = [8, 32], strides = [1, 1]} : vector<8x64xf32> to vector<8x32xf32>
    %c0_80 = arith.constant 0 : index
    %c0_81 = arith.constant 0 : index
    %c0_82 = arith.constant 0 : index
    %181 = vector.load %arg17[%c0_80, %c0_81, %c0_82] : memref<2x32x32xbf16, #tpu.memory_space<vmem>>, vector<1x32x32xbf16>
    %182 = vector.shape_cast %181 : vector<1x32x32xbf16> to vector<32x32xbf16>
    %183 = vector.extract_strided_slice %170 {offsets = [0, 0], sizes = [8, 8], strides = [1, 1]} : vector<8x32xf32> to vector<8x8xf32>
    %184 = vector.extract_strided_slice %170 {offsets = [0, 8], sizes = [8, 8], strides = [1, 1]} : vector<8x32xf32> to vector<8x8xf32>
    %185 = vector.extract_strided_slice %170 {offsets = [0, 16], sizes = [8, 8], strides = [1, 1]} : vector<8x32xf32> to vector<8x8xf32>
    %186 = vector.extract_strided_slice %170 {offsets = [0, 24], sizes = [8, 8], strides = [1, 1]} : vector<8x32xf32> to vector<8x8xf32>
    %187 = vector.shape_cast %183 : vector<8x8xf32> to vector<1x8x8xf32>
    %188 = vector.shape_cast %184 : vector<8x8xf32> to vector<1x8x8xf32>
    %189 = vector.shape_cast %185 : vector<8x8xf32> to vector<1x8x8xf32>
    %190 = vector.shape_cast %186 : vector<8x8xf32> to vector<1x8x8xf32>
    %191 = tpu.concatenate %187, %188, %189, %190 in 0 : vector<1x8x8xf32>, vector<1x8x8xf32>, vector<1x8x8xf32>, vector<1x8x8xf32> -> vector<4x8x8xf32>
    %192 = arith.truncf %191 : vector<4x8x8xf32> to vector<4x8x8xbf16>
    %193 = vector.extract_strided_slice %179 {offsets = [0, 0], sizes = [8, 8], strides = [1, 1]} : vector<8x32xf32> to vector<8x8xf32>
    %194 = vector.extract_strided_slice %179 {offsets = [0, 8], sizes = [8, 8], strides = [1, 1]} : vector<8x32xf32> to vector<8x8xf32>
    %195 = vector.extract_strided_slice %179 {offsets = [0, 16], sizes = [8, 8], strides = [1, 1]} : vector<8x32xf32> to vector<8x8xf32>
    %196 = vector.extract_strided_slice %179 {offsets = [0, 24], sizes = [8, 8], strides = [1, 1]} : vector<8x32xf32> to vector<8x8xf32>
    %197 = vector.shape_cast %193 : vector<8x8xf32> to vector<1x8x8xf32>
    %198 = vector.shape_cast %194 : vector<8x8xf32> to vector<1x8x8xf32>
    %199 = vector.shape_cast %195 : vector<8x8xf32> to vector<1x8x8xf32>
    %200 = vector.shape_cast %196 : vector<8x8xf32> to vector<1x8x8xf32>
    %201 = tpu.concatenate %197, %198, %199, %200 in 0 : vector<1x8x8xf32>, vector<1x8x8xf32>, vector<1x8x8xf32>, vector<1x8x8xf32> -> vector<4x8x8xf32>
    %202 = arith.truncf %201 : vector<4x8x8xf32> to vector<4x8x8xbf16>
    %203 = vector.extract_strided_slice %180 {offsets = [0, 0], sizes = [8, 8], strides = [1, 1]} : vector<8x32xf32> to vector<8x8xf32>
    %204 = vector.extract_strided_slice %180 {offsets = [0, 8], sizes = [8, 8], strides = [1, 1]} : vector<8x32xf32> to vector<8x8xf32>
    %205 = vector.extract_strided_slice %180 {offsets = [0, 16], sizes = [8, 8], strides = [1, 1]} : vector<8x32xf32> to vector<8x8xf32>
    %206 = vector.extract_strided_slice %180 {offsets = [0, 24], sizes = [8, 8], strides = [1, 1]} : vector<8x32xf32> to vector<8x8xf32>
    %207 = vector.shape_cast %203 : vector<8x8xf32> to vector<1x8x8xf32>
    %208 = vector.shape_cast %204 : vector<8x8xf32> to vector<1x8x8xf32>
    %209 = vector.shape_cast %205 : vector<8x8xf32> to vector<1x8x8xf32>
    %210 = vector.shape_cast %206 : vector<8x8xf32> to vector<1x8x8xf32>
    %211 = tpu.concatenate %207, %208, %209, %210 in 0 : vector<1x8x8xf32>, vector<1x8x8xf32>, vector<1x8x8xf32>, vector<1x8x8xf32> -> vector<4x8x8xf32>
    %212 = arith.truncf %211 : vector<4x8x8xf32> to vector<4x8x8xbf16>
    "tpu.trace_start"() <{level = 10 : i32, message = "hqd,hkd->hqk"}> : () -> ()
    %cst_83 = arith.constant dense<0.000000e+00> : vector<4x8x8xf32>
    %213 = tpu.matmul %192, %202, %cst_83 {dimension_numbers = #tpu.dot_dimension_numbers<[2], [2], [1], [1], [0, 0, 0, 1, 1, 1], [0], [0]>} : vector<4x8x8xbf16>, vector<4x8x8xbf16>, vector<4x8x8xf32> -> vector<4x8x8xf32>
    "tpu.trace_stop"() : () -> ()
    %214 = vector.shape_cast %15 : vector<1x8xf32> to vector<1x1x8xf32>
    %215 = vector.broadcast %214 : vector<1x1x8xf32> to vector<4x8x8xf32>
    %216 = arith.addf %213, %215 : vector<4x8x8xf32>
    %cst_84 = arith.constant dense<0xFF800000> : vector<4x8xf32>
    %217 = vector.multi_reduction <maximumf>, %216, %cst_84 [2] : vector<4x8x8xf32> to vector<4x8xf32>
    %218 = vector.shape_cast %217 : vector<4x8xf32> to vector<4x8x1xf32>
    %219 = vector.broadcast %218 : vector<4x8x1xf32> to vector<4x8x8xf32>
    %220 = arith.subf %216, %219 : vector<4x8x8xf32>
    %221 = math.exp %220 : vector<4x8x8xf32>
    %cst_85 = arith.constant dense<0.000000e+00> : vector<4x8xf32>
    %222 = vector.multi_reduction <add>, %221, %cst_85 [2] : vector<4x8x8xf32> to vector<4x8xf32>
    %223 = vector.shape_cast %222 : vector<4x8xf32> to vector<4x8x1xf32>
    %224 = tpu.reciprocal %223 {approx = true} : vector<4x8x1xf32> -> vector<4x8x1xf32>
    %225 = vector.broadcast %224 : vector<4x8x1xf32> to vector<4x8x8xf32>
    %226 = arith.mulf %221, %225 : vector<4x8x8xf32>
    %227 = arith.truncf %226 : vector<4x8x8xf32> to vector<4x8x8xbf16>
    "tpu.trace_start"() <{level = 10 : i32, message = "hqk,hkd->hqd"}> : () -> ()
    %cst_86 = arith.constant dense<0.000000e+00> : vector<4x8x8xf32>
    %228 = tpu.matmul %227, %212, %cst_86 {dimension_numbers = #tpu.dot_dimension_numbers<[2], [1], [1], [2], [0, 0, 0, 1, 1, 2], [0], [0]>} : vector<4x8x8xbf16>, vector<4x8x8xbf16>, vector<4x8x8xf32> -> vector<4x8x8xf32>
    "tpu.trace_stop"() : () -> ()
    %229 = vector.extract_strided_slice %228 {offsets = [0, 0, 0], sizes = [1, 8, 8], strides = [1, 1, 1]} : vector<4x8x8xf32> to vector<1x8x8xf32>
    %230 = vector.shape_cast %229 : vector<1x8x8xf32> to vector<8x8xf32>
    %231 = vector.extract_strided_slice %228 {offsets = [1, 0, 0], sizes = [1, 8, 8], strides = [1, 1, 1]} : vector<4x8x8xf32> to vector<1x8x8xf32>
    %232 = vector.shape_cast %231 : vector<1x8x8xf32> to vector<8x8xf32>
    %233 = vector.extract_strided_slice %228 {offsets = [2, 0, 0], sizes = [1, 8, 8], strides = [1, 1, 1]} : vector<4x8x8xf32> to vector<1x8x8xf32>
    %234 = vector.shape_cast %233 : vector<1x8x8xf32> to vector<8x8xf32>
    %235 = vector.extract_strided_slice %228 {offsets = [3, 0, 0], sizes = [1, 8, 8], strides = [1, 1, 1]} : vector<4x8x8xf32> to vector<1x8x8xf32>
    %236 = vector.shape_cast %235 : vector<1x8x8xf32> to vector<8x8xf32>
    %237 = tpu.concatenate %230, %232, %234, %236 in 1 : vector<8x8xf32>, vector<8x8xf32>, vector<8x8xf32>, vector<8x8xf32> -> vector<8x32xf32>
    %238 = arith.truncf %237 : vector<8x32xf32> to vector<8x32xbf16>
    %cst_87 = arith.constant dense<0.000000e+00> : vector<8x32xf32>
    %239 = tpu.matmul %238, %182, %cst_87 {dimension_numbers = #tpu.dot_dimension_numbers<[1], [0], [0], [1], [0, 0, 1, 1], [], []>} : vector<8x32xbf16>, vector<32x32xbf16>, vector<8x32xf32> -> vector<8x32xf32>
    %240 = arith.addf %138, %239 : vector<8x32xf32>
    %c0_88 = arith.constant 0 : index
    %c0_89 = arith.constant 0 : index
    %c0_90 = arith.constant 0 : index
    %241 = vector.load %arg18[%c0_88, %c0_89, %c0_90] : memref<2x1x32xf32, #tpu.memory_space<vmem>>, vector<1x1x32xf32>
    %242 = vector.shape_cast %241 : vector<1x1x32xf32> to vector<1x32xf32>
    %243 = vector.broadcast %242 : vector<1x32xf32> to vector<8x32xf32>
    %244 = arith.addf %240, %243 : vector<8x32xf32>
    %c0_91 = arith.constant 0 : index
    %c2 = arith.constant 2 : index
    %c0_92 = arith.constant 0 : index
    %c0_93 = arith.constant 0 : index
    %245 = vector.load %arg7[%c0_91, %c2, %c0_92, %c0_93] : memref<2x3x1x32xf32, #tpu.memory_space<vmem>>, vector<1x1x1x32xf32>
    %246 = vector.shape_cast %245 : vector<1x1x1x32xf32> to vector<1x32xf32>
    %c0_94 = arith.constant 0 : index
    %c2_95 = arith.constant 2 : index
    %c0_96 = arith.constant 0 : index
    %c0_97 = arith.constant 0 : index
    %247 = vector.load %arg8[%c0_94, %c2_95, %c0_96, %c0_97] : memref<2x3x1x32xf32, #tpu.memory_space<vmem>>, vector<1x1x1x32xf32>
    %248 = vector.shape_cast %247 : vector<1x1x1x32xf32> to vector<1x32xf32>
    %cst_98 = arith.constant dense<0.000000e+00> : vector<8xf32>
    %249 = vector.multi_reduction <add>, %244, %cst_98 [1] : vector<8x32xf32> to vector<8xf32>
    %250 = vector.shape_cast %249 : vector<8xf32> to vector<8x1xf32>
    %cst_99 = arith.constant 3.200000e+01 : f32
    %251 = vector.broadcast %cst_99 : f32 to vector<8x1xf32>
    %252 = arith.divf %250, %251 : vector<8x1xf32>
    %253 = vector.broadcast %252 : vector<8x1xf32> to vector<8x32xf32>
    %254 = arith.subf %244, %253 : vector<8x32xf32>
    %255 = arith.mulf %254, %254 : vector<8x32xf32>
    %cst_100 = arith.constant dense<0.000000e+00> : vector<8xf32>
    %256 = vector.multi_reduction <add>, %255, %cst_100 [1] : vector<8x32xf32> to vector<8xf32>
    %257 = vector.shape_cast %256 : vector<8xf32> to vector<8x1xf32>
    %cst_101 = arith.constant 3.200000e+01 : f32
    %258 = vector.broadcast %cst_101 : f32 to vector<8x1xf32>
    %259 = arith.divf %257, %258 : vector<8x1xf32>
    %cst_102 = arith.constant 9.99999974E-6 : f32
    %260 = vector.broadcast %cst_102 : f32 to vector<8x1xf32>
    %261 = arith.addf %259, %260 : vector<8x1xf32>
    %262 = math.rsqrt %261 : vector<8x1xf32>
    %263 = vector.broadcast %262 : vector<8x1xf32> to vector<8x32xf32>
    %264 = arith.mulf %254, %263 : vector<8x32xf32>
    %265 = vector.broadcast %246 : vector<1x32xf32> to vector<8x32xf32>
    %266 = arith.mulf %264, %265 : vector<8x32xf32>
    %267 = vector.broadcast %248 : vector<1x32xf32> to vector<8x32xf32>
    %268 = arith.addf %266, %267 : vector<8x32xf32>
    %269 = arith.truncf %268 : vector<8x32xf32> to vector<8x32xbf16>
    %c0_103 = arith.constant 0 : index
    %c0_104 = arith.constant 0 : index
    %c0_105 = arith.constant 0 : index
    %270 = vector.load %arg19[%c0_103, %c0_104, %c0_105] : memref<2x32x64xbf16, #tpu.memory_space<vmem>>, vector<1x32x64xbf16>
    %271 = vector.shape_cast %270 : vector<1x32x64xbf16> to vector<32x64xbf16>
    %cst_106 = arith.constant dense<0.000000e+00> : vector<8x64xf32>
    %272 = tpu.matmul %269, %271, %cst_106 {dimension_numbers = #tpu.dot_dimension_numbers<[1], [0], [0], [1], [0, 0, 1, 1], [], []>} : vector<8x32xbf16>, vector<32x64xbf16>, vector<8x64xf32> -> vector<8x64xf32>
    %c0_107 = arith.constant 0 : index
    %c0_108 = arith.constant 0 : index
    %c0_109 = arith.constant 0 : index
    %273 = vector.load %arg20[%c0_107, %c0_108, %c0_109] : memref<2x1x64xf32, #tpu.memory_space<vmem>>, vector<1x1x64xf32>
    %274 = vector.shape_cast %273 : vector<1x1x64xf32> to vector<1x64xf32>
    %275 = vector.broadcast %274 : vector<1x64xf32> to vector<8x64xf32>
    %276 = arith.addf %272, %275 : vector<8x64xf32>
    %cst_110 = arith.constant 5.000000e-01 : f32
    %277 = vector.broadcast %cst_110 : f32 to vector<8x64xf32>
    %278 = arith.mulf %277, %276 : vector<8x64xf32>
    %cst_111 = arith.constant 0.707106769 : f32
    %279 = vector.broadcast %cst_111 : f32 to vector<8x64xf32>
    %280 = arith.mulf %276, %279 : vector<8x64xf32>
    %281 = math.erf %280 : vector<8x64xf32>
    %cst_112 = arith.constant 1.000000e+00 : f32
    %282 = vector.broadcast %cst_112 : f32 to vector<8x64xf32>
    %283 = arith.addf %282, %281 : vector<8x64xf32>
    %284 = arith.mulf %278, %283 : vector<8x64xf32>
    %285 = arith.truncf %284 : vector<8x64xf32> to vector<8x64xbf16>
    %c0_113 = arith.constant 0 : index
    %c0_114 = arith.constant 0 : index
    %c0_115 = arith.constant 0 : index
    %286 = vector.load %arg21[%c0_113, %c0_114, %c0_115] : memref<2x64x32xbf16, #tpu.memory_space<vmem>>, vector<1x64x32xbf16>
    %287 = vector.shape_cast %286 : vector<1x64x32xbf16> to vector<64x32xbf16>
    %cst_116 = arith.constant dense<0.000000e+00> : vector<8x32xf32>
    %288 = tpu.matmul %285, %287, %cst_116 {dimension_numbers = #tpu.dot_dimension_numbers<[1], [0], [0], [1], [0, 0, 1, 1], [], []>} : vector<8x64xbf16>, vector<64x32xbf16>, vector<8x32xf32> -> vector<8x32xf32>
    %289 = arith.addf %244, %288 : vector<8x32xf32>
    %c0_117 = arith.constant 0 : index
    %c0_118 = arith.constant 0 : index
    %c0_119 = arith.constant 0 : index
    %290 = vector.load %arg22[%c0_117, %c0_118, %c0_119] : memref<2x1x32xf32, #tpu.memory_space<vmem>>, vector<1x1x32xf32>
    %291 = vector.shape_cast %290 : vector<1x1x32xf32> to vector<1x32xf32>
    %292 = vector.broadcast %291 : vector<1x32xf32> to vector<8x32xf32>
    %293 = arith.addf %289, %292 : vector<8x32xf32>
    %c1_120 = arith.constant 1 : index
    %c0_121 = arith.constant 0 : index
    %c0_122 = arith.constant 0 : index
    %c0_123 = arith.constant 0 : index
    %294 = vector.load %arg7[%c1_120, %c0_121, %c0_122, %c0_123] : memref<2x3x1x32xf32, #tpu.memory_space<vmem>>, vector<1x1x1x32xf32>
    %295 = vector.shape_cast %294 : vector<1x1x1x32xf32> to vector<1x32xf32>
    %c1_124 = arith.constant 1 : index
    %c0_125 = arith.constant 0 : index
    %c0_126 = arith.constant 0 : index
    %c0_127 = arith.constant 0 : index
    %296 = vector.load %arg8[%c1_124, %c0_125, %c0_126, %c0_127] : memref<2x3x1x32xf32, #tpu.memory_space<vmem>>, vector<1x1x1x32xf32>
    %297 = vector.shape_cast %296 : vector<1x1x1x32xf32> to vector<1x32xf32>
    %cst_128 = arith.constant dense<0.000000e+00> : vector<8xf32>
    %298 = vector.multi_reduction <add>, %293, %cst_128 [1] : vector<8x32xf32> to vector<8xf32>
    %299 = vector.shape_cast %298 : vector<8xf32> to vector<8x1xf32>
    %cst_129 = arith.constant 3.200000e+01 : f32
    %300 = vector.broadcast %cst_129 : f32 to vector<8x1xf32>
    %301 = arith.divf %299, %300 : vector<8x1xf32>
    %302 = vector.broadcast %301 : vector<8x1xf32> to vector<8x32xf32>
    %303 = arith.subf %293, %302 : vector<8x32xf32>
    %304 = arith.mulf %303, %303 : vector<8x32xf32>
    %cst_130 = arith.constant dense<0.000000e+00> : vector<8xf32>
    %305 = vector.multi_reduction <add>, %304, %cst_130 [1] : vector<8x32xf32> to vector<8xf32>
    %306 = vector.shape_cast %305 : vector<8xf32> to vector<8x1xf32>
    %cst_131 = arith.constant 3.200000e+01 : f32
    %307 = vector.broadcast %cst_131 : f32 to vector<8x1xf32>
    %308 = arith.divf %306, %307 : vector<8x1xf32>
    %cst_132 = arith.constant 9.99999974E-6 : f32
    %309 = vector.broadcast %cst_132 : f32 to vector<8x1xf32>
    %310 = arith.addf %308, %309 : vector<8x1xf32>
    %311 = math.rsqrt %310 : vector<8x1xf32>
    %312 = vector.broadcast %311 : vector<8x1xf32> to vector<8x32xf32>
    %313 = arith.mulf %303, %312 : vector<8x32xf32>
    %314 = vector.broadcast %295 : vector<1x32xf32> to vector<8x32xf32>
    %315 = arith.mulf %313, %314 : vector<8x32xf32>
    %316 = vector.broadcast %297 : vector<1x32xf32> to vector<8x32xf32>
    %317 = arith.addf %315, %316 : vector<8x32xf32>
    %318 = arith.truncf %317 : vector<8x32xf32> to vector<8x32xbf16>
    %c1_133 = arith.constant 1 : index
    %c0_134 = arith.constant 0 : index
    %c0_135 = arith.constant 0 : index
    %319 = vector.load %arg9[%c1_133, %c0_134, %c0_135] : memref<2x32x96xbf16, #tpu.memory_space<vmem>>, vector<1x32x96xbf16>
    %320 = vector.shape_cast %319 : vector<1x32x96xbf16> to vector<32x96xbf16>
    %cst_136 = arith.constant dense<0.000000e+00> : vector<8x96xf32>
    %321 = tpu.matmul %318, %320, %cst_136 {dimension_numbers = #tpu.dot_dimension_numbers<[1], [0], [0], [1], [0, 0, 1, 1], [], []>} : vector<8x32xbf16>, vector<32x96xbf16>, vector<8x96xf32> -> vector<8x96xf32>
    %c1_137 = arith.constant 1 : index
    %c0_138 = arith.constant 0 : index
    %c0_139 = arith.constant 0 : index
    %322 = vector.load %arg10[%c1_137, %c0_138, %c0_139] : memref<2x1x96xf32, #tpu.memory_space<vmem>>, vector<1x1x96xf32>
    %323 = vector.shape_cast %322 : vector<1x1x96xf32> to vector<1x96xf32>
    %324 = vector.broadcast %323 : vector<1x96xf32> to vector<8x96xf32>
    %325 = arith.addf %321, %324 : vector<8x96xf32>
    %326 = vector.extract_strided_slice %325 {offsets = [0, 0], sizes = [8, 32], strides = [1, 1]} : vector<8x96xf32> to vector<8x32xf32>
    %327 = vector.extract_strided_slice %325 {offsets = [0, 32], sizes = [8, 32], strides = [1, 1]} : vector<8x96xf32> to vector<8x32xf32>
    %328 = vector.extract_strided_slice %325 {offsets = [0, 64], sizes = [8, 32], strides = [1, 1]} : vector<8x96xf32> to vector<8x32xf32>
    %c1_140 = arith.constant 1 : index
    %c0_141 = arith.constant 0 : index
    %c0_142 = arith.constant 0 : index
    %329 = vector.load %arg11[%c1_140, %c0_141, %c0_142] : memref<2x32x32xbf16, #tpu.memory_space<vmem>>, vector<1x32x32xbf16>
    %330 = vector.shape_cast %329 : vector<1x32x32xbf16> to vector<32x32xbf16>
    %331 = vector.extract_strided_slice %326 {offsets = [0, 0], sizes = [8, 8], strides = [1, 1]} : vector<8x32xf32> to vector<8x8xf32>
    %332 = vector.extract_strided_slice %326 {offsets = [0, 8], sizes = [8, 8], strides = [1, 1]} : vector<8x32xf32> to vector<8x8xf32>
    %333 = vector.extract_strided_slice %326 {offsets = [0, 16], sizes = [8, 8], strides = [1, 1]} : vector<8x32xf32> to vector<8x8xf32>
    %334 = vector.extract_strided_slice %326 {offsets = [0, 24], sizes = [8, 8], strides = [1, 1]} : vector<8x32xf32> to vector<8x8xf32>
    %335 = vector.shape_cast %331 : vector<8x8xf32> to vector<1x8x8xf32>
    %336 = vector.shape_cast %332 : vector<8x8xf32> to vector<1x8x8xf32>
    %337 = vector.shape_cast %333 : vector<8x8xf32> to vector<1x8x8xf32>
    %338 = vector.shape_cast %334 : vector<8x8xf32> to vector<1x8x8xf32>
    %339 = tpu.concatenate %335, %336, %337, %338 in 0 : vector<1x8x8xf32>, vector<1x8x8xf32>, vector<1x8x8xf32>, vector<1x8x8xf32> -> vector<4x8x8xf32>
    %340 = arith.truncf %339 : vector<4x8x8xf32> to vector<4x8x8xbf16>
    %341 = vector.extract_strided_slice %327 {offsets = [0, 0], sizes = [8, 8], strides = [1, 1]} : vector<8x32xf32> to vector<8x8xf32>
    %342 = vector.extract_strided_slice %327 {offsets = [0, 8], sizes = [8, 8], strides = [1, 1]} : vector<8x32xf32> to vector<8x8xf32>
    %343 = vector.extract_strided_slice %327 {offsets = [0, 16], sizes = [8, 8], strides = [1, 1]} : vector<8x32xf32> to vector<8x8xf32>
    %344 = vector.extract_strided_slice %327 {offsets = [0, 24], sizes = [8, 8], strides = [1, 1]} : vector<8x32xf32> to vector<8x8xf32>
    %345 = vector.shape_cast %341 : vector<8x8xf32> to vector<1x8x8xf32>
    %346 = vector.shape_cast %342 : vector<8x8xf32> to vector<1x8x8xf32>
    %347 = vector.shape_cast %343 : vector<8x8xf32> to vector<1x8x8xf32>
    %348 = vector.shape_cast %344 : vector<8x8xf32> to vector<1x8x8xf32>
    %349 = tpu.concatenate %345, %346, %347, %348 in 0 : vector<1x8x8xf32>, vector<1x8x8xf32>, vector<1x8x8xf32>, vector<1x8x8xf32> -> vector<4x8x8xf32>
    %350 = arith.truncf %349 : vector<4x8x8xf32> to vector<4x8x8xbf16>
    %351 = vector.extract_strided_slice %328 {offsets = [0, 0], sizes = [8, 8], strides = [1, 1]} : vector<8x32xf32> to vector<8x8xf32>
    %352 = vector.extract_strided_slice %328 {offsets = [0, 8], sizes = [8, 8], strides = [1, 1]} : vector<8x32xf32> to vector<8x8xf32>
    %353 = vector.extract_strided_slice %328 {offsets = [0, 16], sizes = [8, 8], strides = [1, 1]} : vector<8x32xf32> to vector<8x8xf32>
    %354 = vector.extract_strided_slice %328 {offsets = [0, 24], sizes = [8, 8], strides = [1, 1]} : vector<8x32xf32> to vector<8x8xf32>
    %355 = vector.shape_cast %351 : vector<8x8xf32> to vector<1x8x8xf32>
    %356 = vector.shape_cast %352 : vector<8x8xf32> to vector<1x8x8xf32>
    %357 = vector.shape_cast %353 : vector<8x8xf32> to vector<1x8x8xf32>
    %358 = vector.shape_cast %354 : vector<8x8xf32> to vector<1x8x8xf32>
    %359 = tpu.concatenate %355, %356, %357, %358 in 0 : vector<1x8x8xf32>, vector<1x8x8xf32>, vector<1x8x8xf32>, vector<1x8x8xf32> -> vector<4x8x8xf32>
    %360 = arith.truncf %359 : vector<4x8x8xf32> to vector<4x8x8xbf16>
    "tpu.trace_start"() <{level = 10 : i32, message = "hqd,hkd->hqk"}> : () -> ()
    %cst_143 = arith.constant dense<0.000000e+00> : vector<4x8x8xf32>
    %361 = tpu.matmul %340, %350, %cst_143 {dimension_numbers = #tpu.dot_dimension_numbers<[2], [2], [1], [1], [0, 0, 0, 1, 1, 1], [0], [0]>} : vector<4x8x8xbf16>, vector<4x8x8xbf16>, vector<4x8x8xf32> -> vector<4x8x8xf32>
    "tpu.trace_stop"() : () -> ()
    %362 = vector.shape_cast %13 : vector<8x8xf32> to vector<1x8x8xf32>
    %363 = vector.broadcast %362 : vector<1x8x8xf32> to vector<4x8x8xf32>
    %364 = arith.addf %361, %363 : vector<4x8x8xf32>
    %cst_144 = arith.constant dense<0xFF800000> : vector<4x8xf32>
    %365 = vector.multi_reduction <maximumf>, %364, %cst_144 [2] : vector<4x8x8xf32> to vector<4x8xf32>
    %366 = vector.shape_cast %365 : vector<4x8xf32> to vector<4x8x1xf32>
    %367 = vector.broadcast %366 : vector<4x8x1xf32> to vector<4x8x8xf32>
    %368 = arith.subf %364, %367 : vector<4x8x8xf32>
    %369 = math.exp %368 : vector<4x8x8xf32>
    %cst_145 = arith.constant dense<0.000000e+00> : vector<4x8xf32>
    %370 = vector.multi_reduction <add>, %369, %cst_145 [2] : vector<4x8x8xf32> to vector<4x8xf32>
    %371 = vector.shape_cast %370 : vector<4x8xf32> to vector<4x8x1xf32>
    %372 = tpu.reciprocal %371 {approx = true} : vector<4x8x1xf32> -> vector<4x8x1xf32>
    %373 = vector.broadcast %372 : vector<4x8x1xf32> to vector<4x8x8xf32>
    %374 = arith.mulf %369, %373 : vector<4x8x8xf32>
    %375 = arith.truncf %374 : vector<4x8x8xf32> to vector<4x8x8xbf16>
    "tpu.trace_start"() <{level = 10 : i32, message = "hqk,hkd->hqd"}> : () -> ()
    %cst_146 = arith.constant dense<0.000000e+00> : vector<4x8x8xf32>
    %376 = tpu.matmul %375, %360, %cst_146 {dimension_numbers = #tpu.dot_dimension_numbers<[2], [1], [1], [2], [0, 0, 0, 1, 1, 2], [0], [0]>} : vector<4x8x8xbf16>, vector<4x8x8xbf16>, vector<4x8x8xf32> -> vector<4x8x8xf32>
    "tpu.trace_stop"() : () -> ()
    %377 = vector.extract_strided_slice %376 {offsets = [0, 0, 0], sizes = [1, 8, 8], strides = [1, 1, 1]} : vector<4x8x8xf32> to vector<1x8x8xf32>
    %378 = vector.shape_cast %377 : vector<1x8x8xf32> to vector<8x8xf32>
    %379 = vector.extract_strided_slice %376 {offsets = [1, 0, 0], sizes = [1, 8, 8], strides = [1, 1, 1]} : vector<4x8x8xf32> to vector<1x8x8xf32>
    %380 = vector.shape_cast %379 : vector<1x8x8xf32> to vector<8x8xf32>
    %381 = vector.extract_strided_slice %376 {offsets = [2, 0, 0], sizes = [1, 8, 8], strides = [1, 1, 1]} : vector<4x8x8xf32> to vector<1x8x8xf32>
    %382 = vector.shape_cast %381 : vector<1x8x8xf32> to vector<8x8xf32>
    %383 = vector.extract_strided_slice %376 {offsets = [3, 0, 0], sizes = [1, 8, 8], strides = [1, 1, 1]} : vector<4x8x8xf32> to vector<1x8x8xf32>
    %384 = vector.shape_cast %383 : vector<1x8x8xf32> to vector<8x8xf32>
    %385 = tpu.concatenate %378, %380, %382, %384 in 1 : vector<8x8xf32>, vector<8x8xf32>, vector<8x8xf32>, vector<8x8xf32> -> vector<8x32xf32>
    %386 = arith.truncf %385 : vector<8x32xf32> to vector<8x32xbf16>
    %cst_147 = arith.constant dense<0.000000e+00> : vector<8x32xf32>
    %387 = tpu.matmul %386, %330, %cst_147 {dimension_numbers = #tpu.dot_dimension_numbers<[1], [0], [0], [1], [0, 0, 1, 1], [], []>} : vector<8x32xbf16>, vector<32x32xbf16>, vector<8x32xf32> -> vector<8x32xf32>
    %388 = arith.addf %293, %387 : vector<8x32xf32>
    %c1_148 = arith.constant 1 : index
    %c0_149 = arith.constant 0 : index
    %c0_150 = arith.constant 0 : index
    %389 = vector.load %arg12[%c1_148, %c0_149, %c0_150] : memref<2x1x32xf32, #tpu.memory_space<vmem>>, vector<1x1x32xf32>
    %390 = vector.shape_cast %389 : vector<1x1x32xf32> to vector<1x32xf32>
    %391 = vector.broadcast %390 : vector<1x32xf32> to vector<8x32xf32>
    %392 = arith.addf %388, %391 : vector<8x32xf32>
    %c1_151 = arith.constant 1 : index
    %c1_152 = arith.constant 1 : index
    %c0_153 = arith.constant 0 : index
    %c0_154 = arith.constant 0 : index
    %393 = vector.load %arg7[%c1_151, %c1_152, %c0_153, %c0_154] : memref<2x3x1x32xf32, #tpu.memory_space<vmem>>, vector<1x1x1x32xf32>
    %394 = vector.shape_cast %393 : vector<1x1x1x32xf32> to vector<1x32xf32>
    %c1_155 = arith.constant 1 : index
    %c1_156 = arith.constant 1 : index
    %c0_157 = arith.constant 0 : index
    %c0_158 = arith.constant 0 : index
    %395 = vector.load %arg8[%c1_155, %c1_156, %c0_157, %c0_158] : memref<2x3x1x32xf32, #tpu.memory_space<vmem>>, vector<1x1x1x32xf32>
    %396 = vector.shape_cast %395 : vector<1x1x1x32xf32> to vector<1x32xf32>
    %cst_159 = arith.constant dense<0.000000e+00> : vector<8xf32>
    %397 = vector.multi_reduction <add>, %392, %cst_159 [1] : vector<8x32xf32> to vector<8xf32>
    %398 = vector.shape_cast %397 : vector<8xf32> to vector<8x1xf32>
    %cst_160 = arith.constant 3.200000e+01 : f32
    %399 = vector.broadcast %cst_160 : f32 to vector<8x1xf32>
    %400 = arith.divf %398, %399 : vector<8x1xf32>
    %401 = vector.broadcast %400 : vector<8x1xf32> to vector<8x32xf32>
    %402 = arith.subf %392, %401 : vector<8x32xf32>
    %403 = arith.mulf %402, %402 : vector<8x32xf32>
    %cst_161 = arith.constant dense<0.000000e+00> : vector<8xf32>
    %404 = vector.multi_reduction <add>, %403, %cst_161 [1] : vector<8x32xf32> to vector<8xf32>
    %405 = vector.shape_cast %404 : vector<8xf32> to vector<8x1xf32>
    %cst_162 = arith.constant 3.200000e+01 : f32
    %406 = vector.broadcast %cst_162 : f32 to vector<8x1xf32>
    %407 = arith.divf %405, %406 : vector<8x1xf32>
    %cst_163 = arith.constant 9.99999974E-6 : f32
    %408 = vector.broadcast %cst_163 : f32 to vector<8x1xf32>
    %409 = arith.addf %407, %408 : vector<8x1xf32>
    %410 = math.rsqrt %409 : vector<8x1xf32>
    %411 = vector.broadcast %410 : vector<8x1xf32> to vector<8x32xf32>
    %412 = arith.mulf %402, %411 : vector<8x32xf32>
    %413 = vector.broadcast %394 : vector<1x32xf32> to vector<8x32xf32>
    %414 = arith.mulf %412, %413 : vector<8x32xf32>
    %415 = vector.broadcast %396 : vector<1x32xf32> to vector<8x32xf32>
    %416 = arith.addf %414, %415 : vector<8x32xf32>
    %417 = arith.truncf %416 : vector<8x32xf32> to vector<8x32xbf16>
    %c1_164 = arith.constant 1 : index
    %c0_165 = arith.constant 0 : index
    %c0_166 = arith.constant 0 : index
    %418 = vector.load %arg13[%c1_164, %c0_165, %c0_166] : memref<2x32x32xbf16, #tpu.memory_space<vmem>>, vector<1x32x32xbf16>
    %419 = vector.shape_cast %418 : vector<1x32x32xbf16> to vector<32x32xbf16>
    %cst_167 = arith.constant dense<0.000000e+00> : vector<8x32xf32>
    %420 = tpu.matmul %417, %419, %cst_167 {dimension_numbers = #tpu.dot_dimension_numbers<[1], [0], [0], [1], [0, 0, 1, 1], [], []>} : vector<8x32xbf16>, vector<32x32xbf16>, vector<8x32xf32> -> vector<8x32xf32>
    %c1_168 = arith.constant 1 : index
    %c0_169 = arith.constant 0 : index
    %c0_170 = arith.constant 0 : index
    %421 = vector.load %arg14[%c1_168, %c0_169, %c0_170] : memref<2x1x32xf32, #tpu.memory_space<vmem>>, vector<1x1x32xf32>
    %422 = vector.shape_cast %421 : vector<1x1x32xf32> to vector<1x32xf32>
    %423 = vector.broadcast %422 : vector<1x32xf32> to vector<8x32xf32>
    %424 = arith.addf %420, %423 : vector<8x32xf32>
    %425 = arith.truncf %3 : vector<8x32xf32> to vector<8x32xbf16>
    %c1_171 = arith.constant 1 : index
    %c0_172 = arith.constant 0 : index
    %c0_173 = arith.constant 0 : index
    %426 = vector.load %arg15[%c1_171, %c0_172, %c0_173] : memref<2x32x64xbf16, #tpu.memory_space<vmem>>, vector<1x32x64xbf16>
    %427 = vector.shape_cast %426 : vector<1x32x64xbf16> to vector<32x64xbf16>
    %cst_174 = arith.constant dense<0.000000e+00> : vector<8x64xf32>
    %428 = tpu.matmul %425, %427, %cst_174 {dimension_numbers = #tpu.dot_dimension_numbers<[1], [0], [0], [1], [0, 0, 1, 1], [], []>} : vector<8x32xbf16>, vector<32x64xbf16>, vector<8x64xf32> -> vector<8x64xf32>
    %c1_175 = arith.constant 1 : index
    %c0_176 = arith.constant 0 : index
    %c0_177 = arith.constant 0 : index
    %429 = vector.load %arg16[%c1_175, %c0_176, %c0_177] : memref<2x1x64xf32, #tpu.memory_space<vmem>>, vector<1x1x64xf32>
    %430 = vector.shape_cast %429 : vector<1x1x64xf32> to vector<1x64xf32>
    %431 = vector.broadcast %430 : vector<1x64xf32> to vector<8x64xf32>
    %432 = arith.addf %428, %431 : vector<8x64xf32>
    %433 = vector.extract_strided_slice %432 {offsets = [0, 0], sizes = [8, 32], strides = [1, 1]} : vector<8x64xf32> to vector<8x32xf32>
    %434 = vector.extract_strided_slice %432 {offsets = [0, 32], sizes = [8, 32], strides = [1, 1]} : vector<8x64xf32> to vector<8x32xf32>
    %c1_178 = arith.constant 1 : index
    %c0_179 = arith.constant 0 : index
    %c0_180 = arith.constant 0 : index
    %435 = vector.load %arg17[%c1_178, %c0_179, %c0_180] : memref<2x32x32xbf16, #tpu.memory_space<vmem>>, vector<1x32x32xbf16>
    %436 = vector.shape_cast %435 : vector<1x32x32xbf16> to vector<32x32xbf16>
    %437 = vector.extract_strided_slice %424 {offsets = [0, 0], sizes = [8, 8], strides = [1, 1]} : vector<8x32xf32> to vector<8x8xf32>
    %438 = vector.extract_strided_slice %424 {offsets = [0, 8], sizes = [8, 8], strides = [1, 1]} : vector<8x32xf32> to vector<8x8xf32>
    %439 = vector.extract_strided_slice %424 {offsets = [0, 16], sizes = [8, 8], strides = [1, 1]} : vector<8x32xf32> to vector<8x8xf32>
    %440 = vector.extract_strided_slice %424 {offsets = [0, 24], sizes = [8, 8], strides = [1, 1]} : vector<8x32xf32> to vector<8x8xf32>
    %441 = vector.shape_cast %437 : vector<8x8xf32> to vector<1x8x8xf32>
    %442 = vector.shape_cast %438 : vector<8x8xf32> to vector<1x8x8xf32>
    %443 = vector.shape_cast %439 : vector<8x8xf32> to vector<1x8x8xf32>
    %444 = vector.shape_cast %440 : vector<8x8xf32> to vector<1x8x8xf32>
    %445 = tpu.concatenate %441, %442, %443, %444 in 0 : vector<1x8x8xf32>, vector<1x8x8xf32>, vector<1x8x8xf32>, vector<1x8x8xf32> -> vector<4x8x8xf32>
    %446 = arith.truncf %445 : vector<4x8x8xf32> to vector<4x8x8xbf16>
    %447 = vector.extract_strided_slice %433 {offsets = [0, 0], sizes = [8, 8], strides = [1, 1]} : vector<8x32xf32> to vector<8x8xf32>
    %448 = vector.extract_strided_slice %433 {offsets = [0, 8], sizes = [8, 8], strides = [1, 1]} : vector<8x32xf32> to vector<8x8xf32>
    %449 = vector.extract_strided_slice %433 {offsets = [0, 16], sizes = [8, 8], strides = [1, 1]} : vector<8x32xf32> to vector<8x8xf32>
    %450 = vector.extract_strided_slice %433 {offsets = [0, 24], sizes = [8, 8], strides = [1, 1]} : vector<8x32xf32> to vector<8x8xf32>
    %451 = vector.shape_cast %447 : vector<8x8xf32> to vector<1x8x8xf32>
    %452 = vector.shape_cast %448 : vector<8x8xf32> to vector<1x8x8xf32>
    %453 = vector.shape_cast %449 : vector<8x8xf32> to vector<1x8x8xf32>
    %454 = vector.shape_cast %450 : vector<8x8xf32> to vector<1x8x8xf32>
    %455 = tpu.concatenate %451, %452, %453, %454 in 0 : vector<1x8x8xf32>, vector<1x8x8xf32>, vector<1x8x8xf32>, vector<1x8x8xf32> -> vector<4x8x8xf32>
    %456 = arith.truncf %455 : vector<4x8x8xf32> to vector<4x8x8xbf16>
    %457 = vector.extract_strided_slice %434 {offsets = [0, 0], sizes = [8, 8], strides = [1, 1]} : vector<8x32xf32> to vector<8x8xf32>
    %458 = vector.extract_strided_slice %434 {offsets = [0, 8], sizes = [8, 8], strides = [1, 1]} : vector<8x32xf32> to vector<8x8xf32>
    %459 = vector.extract_strided_slice %434 {offsets = [0, 16], sizes = [8, 8], strides = [1, 1]} : vector<8x32xf32> to vector<8x8xf32>
    %460 = vector.extract_strided_slice %434 {offsets = [0, 24], sizes = [8, 8], strides = [1, 1]} : vector<8x32xf32> to vector<8x8xf32>
    %461 = vector.shape_cast %457 : vector<8x8xf32> to vector<1x8x8xf32>
    %462 = vector.shape_cast %458 : vector<8x8xf32> to vector<1x8x8xf32>
    %463 = vector.shape_cast %459 : vector<8x8xf32> to vector<1x8x8xf32>
    %464 = vector.shape_cast %460 : vector<8x8xf32> to vector<1x8x8xf32>
    %465 = tpu.concatenate %461, %462, %463, %464 in 0 : vector<1x8x8xf32>, vector<1x8x8xf32>, vector<1x8x8xf32>, vector<1x8x8xf32> -> vector<4x8x8xf32>
    %466 = arith.truncf %465 : vector<4x8x8xf32> to vector<4x8x8xbf16>
    "tpu.trace_start"() <{level = 10 : i32, message = "hqd,hkd->hqk"}> : () -> ()
    %cst_181 = arith.constant dense<0.000000e+00> : vector<4x8x8xf32>
    %467 = tpu.matmul %446, %456, %cst_181 {dimension_numbers = #tpu.dot_dimension_numbers<[2], [2], [1], [1], [0, 0, 0, 1, 1, 1], [0], [0]>} : vector<4x8x8xbf16>, vector<4x8x8xbf16>, vector<4x8x8xf32> -> vector<4x8x8xf32>
    "tpu.trace_stop"() : () -> ()
    %468 = vector.shape_cast %15 : vector<1x8xf32> to vector<1x1x8xf32>
    %469 = vector.broadcast %468 : vector<1x1x8xf32> to vector<4x8x8xf32>
    %470 = arith.addf %467, %469 : vector<4x8x8xf32>
    %cst_182 = arith.constant dense<0xFF800000> : vector<4x8xf32>
    %471 = vector.multi_reduction <maximumf>, %470, %cst_182 [2] : vector<4x8x8xf32> to vector<4x8xf32>
    %472 = vector.shape_cast %471 : vector<4x8xf32> to vector<4x8x1xf32>
    %473 = vector.broadcast %472 : vector<4x8x1xf32> to vector<4x8x8xf32>
    %474 = arith.subf %470, %473 : vector<4x8x8xf32>
    %475 = math.exp %474 : vector<4x8x8xf32>
    %cst_183 = arith.constant dense<0.000000e+00> : vector<4x8xf32>
    %476 = vector.multi_reduction <add>, %475, %cst_183 [2] : vector<4x8x8xf32> to vector<4x8xf32>
    %477 = vector.shape_cast %476 : vector<4x8xf32> to vector<4x8x1xf32>
    %478 = tpu.reciprocal %477 {approx = true} : vector<4x8x1xf32> -> vector<4x8x1xf32>
    %479 = vector.broadcast %478 : vector<4x8x1xf32> to vector<4x8x8xf32>
    %480 = arith.mulf %475, %479 : vector<4x8x8xf32>
    %481 = arith.truncf %480 : vector<4x8x8xf32> to vector<4x8x8xbf16>
    "tpu.trace_start"() <{level = 10 : i32, message = "hqk,hkd->hqd"}> : () -> ()
    %cst_184 = arith.constant dense<0.000000e+00> : vector<4x8x8xf32>
    %482 = tpu.matmul %481, %466, %cst_184 {dimension_numbers = #tpu.dot_dimension_numbers<[2], [1], [1], [2], [0, 0, 0, 1, 1, 2], [0], [0]>} : vector<4x8x8xbf16>, vector<4x8x8xbf16>, vector<4x8x8xf32> -> vector<4x8x8xf32>
    "tpu.trace_stop"() : () -> ()
    %483 = vector.extract_strided_slice %482 {offsets = [0, 0, 0], sizes = [1, 8, 8], strides = [1, 1, 1]} : vector<4x8x8xf32> to vector<1x8x8xf32>
    %484 = vector.shape_cast %483 : vector<1x8x8xf32> to vector<8x8xf32>
    %485 = vector.extract_strided_slice %482 {offsets = [1, 0, 0], sizes = [1, 8, 8], strides = [1, 1, 1]} : vector<4x8x8xf32> to vector<1x8x8xf32>
    %486 = vector.shape_cast %485 : vector<1x8x8xf32> to vector<8x8xf32>
    %487 = vector.extract_strided_slice %482 {offsets = [2, 0, 0], sizes = [1, 8, 8], strides = [1, 1, 1]} : vector<4x8x8xf32> to vector<1x8x8xf32>
    %488 = vector.shape_cast %487 : vector<1x8x8xf32> to vector<8x8xf32>
    %489 = vector.extract_strided_slice %482 {offsets = [3, 0, 0], sizes = [1, 8, 8], strides = [1, 1, 1]} : vector<4x8x8xf32> to vector<1x8x8xf32>
    %490 = vector.shape_cast %489 : vector<1x8x8xf32> to vector<8x8xf32>
    %491 = tpu.concatenate %484, %486, %488, %490 in 1 : vector<8x8xf32>, vector<8x8xf32>, vector<8x8xf32>, vector<8x8xf32> -> vector<8x32xf32>
    %492 = arith.truncf %491 : vector<8x32xf32> to vector<8x32xbf16>
    %cst_185 = arith.constant dense<0.000000e+00> : vector<8x32xf32>
    %493 = tpu.matmul %492, %436, %cst_185 {dimension_numbers = #tpu.dot_dimension_numbers<[1], [0], [0], [1], [0, 0, 1, 1], [], []>} : vector<8x32xbf16>, vector<32x32xbf16>, vector<8x32xf32> -> vector<8x32xf32>
    %494 = arith.addf %392, %493 : vector<8x32xf32>
    %c1_186 = arith.constant 1 : index
    %c0_187 = arith.constant 0 : index
    %c0_188 = arith.constant 0 : index
    %495 = vector.load %arg18[%c1_186, %c0_187, %c0_188] : memref<2x1x32xf32, #tpu.memory_space<vmem>>, vector<1x1x32xf32>
    %496 = vector.shape_cast %495 : vector<1x1x32xf32> to vector<1x32xf32>
    %497 = vector.broadcast %496 : vector<1x32xf32> to vector<8x32xf32>
    %498 = arith.addf %494, %497 : vector<8x32xf32>
    %c1_189 = arith.constant 1 : index
    %c2_190 = arith.constant 2 : index
    %c0_191 = arith.constant 0 : index
    %c0_192 = arith.constant 0 : index
    %499 = vector.load %arg7[%c1_189, %c2_190, %c0_191, %c0_192] : memref<2x3x1x32xf32, #tpu.memory_space<vmem>>, vector<1x1x1x32xf32>
    %500 = vector.shape_cast %499 : vector<1x1x1x32xf32> to vector<1x32xf32>
    %c1_193 = arith.constant 1 : index
    %c2_194 = arith.constant 2 : index
    %c0_195 = arith.constant 0 : index
    %c0_196 = arith.constant 0 : index
    %501 = vector.load %arg8[%c1_193, %c2_194, %c0_195, %c0_196] : memref<2x3x1x32xf32, #tpu.memory_space<vmem>>, vector<1x1x1x32xf32>
    %502 = vector.shape_cast %501 : vector<1x1x1x32xf32> to vector<1x32xf32>
    %cst_197 = arith.constant dense<0.000000e+00> : vector<8xf32>
    %503 = vector.multi_reduction <add>, %498, %cst_197 [1] : vector<8x32xf32> to vector<8xf32>
    %504 = vector.shape_cast %503 : vector<8xf32> to vector<8x1xf32>
    %cst_198 = arith.constant 3.200000e+01 : f32
    %505 = vector.broadcast %cst_198 : f32 to vector<8x1xf32>
    %506 = arith.divf %504, %505 : vector<8x1xf32>
    %507 = vector.broadcast %506 : vector<8x1xf32> to vector<8x32xf32>
    %508 = arith.subf %498, %507 : vector<8x32xf32>
    %509 = arith.mulf %508, %508 : vector<8x32xf32>
    %cst_199 = arith.constant dense<0.000000e+00> : vector<8xf32>
    %510 = vector.multi_reduction <add>, %509, %cst_199 [1] : vector<8x32xf32> to vector<8xf32>
    %511 = vector.shape_cast %510 : vector<8xf32> to vector<8x1xf32>
    %cst_200 = arith.constant 3.200000e+01 : f32
    %512 = vector.broadcast %cst_200 : f32 to vector<8x1xf32>
    %513 = arith.divf %511, %512 : vector<8x1xf32>
    %cst_201 = arith.constant 9.99999974E-6 : f32
    %514 = vector.broadcast %cst_201 : f32 to vector<8x1xf32>
    %515 = arith.addf %513, %514 : vector<8x1xf32>
    %516 = math.rsqrt %515 : vector<8x1xf32>
    %517 = vector.broadcast %516 : vector<8x1xf32> to vector<8x32xf32>
    %518 = arith.mulf %508, %517 : vector<8x32xf32>
    %519 = vector.broadcast %500 : vector<1x32xf32> to vector<8x32xf32>
    %520 = arith.mulf %518, %519 : vector<8x32xf32>
    %521 = vector.broadcast %502 : vector<1x32xf32> to vector<8x32xf32>
    %522 = arith.addf %520, %521 : vector<8x32xf32>
    %523 = arith.truncf %522 : vector<8x32xf32> to vector<8x32xbf16>
    %c1_202 = arith.constant 1 : index
    %c0_203 = arith.constant 0 : index
    %c0_204 = arith.constant 0 : index
    %524 = vector.load %arg19[%c1_202, %c0_203, %c0_204] : memref<2x32x64xbf16, #tpu.memory_space<vmem>>, vector<1x32x64xbf16>
    %525 = vector.shape_cast %524 : vector<1x32x64xbf16> to vector<32x64xbf16>
    %cst_205 = arith.constant dense<0.000000e+00> : vector<8x64xf32>
    %526 = tpu.matmul %523, %525, %cst_205 {dimension_numbers = #tpu.dot_dimension_numbers<[1], [0], [0], [1], [0, 0, 1, 1], [], []>} : vector<8x32xbf16>, vector<32x64xbf16>, vector<8x64xf32> -> vector<8x64xf32>
    %c1_206 = arith.constant 1 : index
    %c0_207 = arith.constant 0 : index
    %c0_208 = arith.constant 0 : index
    %527 = vector.load %arg20[%c1_206, %c0_207, %c0_208] : memref<2x1x64xf32, #tpu.memory_space<vmem>>, vector<1x1x64xf32>
    %528 = vector.shape_cast %527 : vector<1x1x64xf32> to vector<1x64xf32>
    %529 = vector.broadcast %528 : vector<1x64xf32> to vector<8x64xf32>
    %530 = arith.addf %526, %529 : vector<8x64xf32>
    %cst_209 = arith.constant 5.000000e-01 : f32
    %531 = vector.broadcast %cst_209 : f32 to vector<8x64xf32>
    %532 = arith.mulf %531, %530 : vector<8x64xf32>
    %cst_210 = arith.constant 0.707106769 : f32
    %533 = vector.broadcast %cst_210 : f32 to vector<8x64xf32>
    %534 = arith.mulf %530, %533 : vector<8x64xf32>
    %535 = math.erf %534 : vector<8x64xf32>
    %cst_211 = arith.constant 1.000000e+00 : f32
    %536 = vector.broadcast %cst_211 : f32 to vector<8x64xf32>
    %537 = arith.addf %536, %535 : vector<8x64xf32>
    %538 = arith.mulf %532, %537 : vector<8x64xf32>
    %539 = arith.truncf %538 : vector<8x64xf32> to vector<8x64xbf16>
    %c1_212 = arith.constant 1 : index
    %c0_213 = arith.constant 0 : index
    %c0_214 = arith.constant 0 : index
    %540 = vector.load %arg21[%c1_212, %c0_213, %c0_214] : memref<2x64x32xbf16, #tpu.memory_space<vmem>>, vector<1x64x32xbf16>
    %541 = vector.shape_cast %540 : vector<1x64x32xbf16> to vector<64x32xbf16>
    %cst_215 = arith.constant dense<0.000000e+00> : vector<8x32xf32>
    %542 = tpu.matmul %539, %541, %cst_215 {dimension_numbers = #tpu.dot_dimension_numbers<[1], [0], [0], [1], [0, 0, 1, 1], [], []>} : vector<8x64xbf16>, vector<64x32xbf16>, vector<8x32xf32> -> vector<8x32xf32>
    %543 = arith.addf %498, %542 : vector<8x32xf32>
    %c1_216 = arith.constant 1 : index
    %c0_217 = arith.constant 0 : index
    %c0_218 = arith.constant 0 : index
    %544 = vector.load %arg22[%c1_216, %c0_217, %c0_218] : memref<2x1x32xf32, #tpu.memory_space<vmem>>, vector<1x1x32xf32>
    %545 = vector.shape_cast %544 : vector<1x1x32xf32> to vector<1x32xf32>
    %546 = vector.broadcast %545 : vector<1x32xf32> to vector<8x32xf32>
    %547 = arith.addf %543, %546 : vector<8x32xf32>
    %c1_219 = arith.constant 1 : index
    %c0_220 = arith.constant 0 : index
    %c0_221 = arith.constant 0 : index
    %548 = vector.load %arg5[%c1_219, %c0_220, %c0_221] : memref<2x1x32xf32, #tpu.memory_space<vmem>>, vector<1x1x32xf32>
    %549 = vector.shape_cast %548 : vector<1x1x32xf32> to vector<1x32xf32>
    %c1_222 = arith.constant 1 : index
    %c0_223 = arith.constant 0 : index
    %c0_224 = arith.constant 0 : index
    %550 = vector.load %arg6[%c1_222, %c0_223, %c0_224] : memref<2x1x32xf32, #tpu.memory_space<vmem>>, vector<1x1x32xf32>
    %551 = vector.shape_cast %550 : vector<1x1x32xf32> to vector<1x32xf32>
    %cst_225 = arith.constant dense<0.000000e+00> : vector<8xf32>
    %552 = vector.multi_reduction <add>, %547, %cst_225 [1] : vector<8x32xf32> to vector<8xf32>
    %553 = vector.shape_cast %552 : vector<8xf32> to vector<8x1xf32>
    %cst_226 = arith.constant 3.200000e+01 : f32
    %554 = vector.broadcast %cst_226 : f32 to vector<8x1xf32>
    %555 = arith.divf %553, %554 : vector<8x1xf32>
    %556 = vector.broadcast %555 : vector<8x1xf32> to vector<8x32xf32>
    %557 = arith.subf %547, %556 : vector<8x32xf32>
    %558 = arith.mulf %557, %557 : vector<8x32xf32>
    %cst_227 = arith.constant dense<0.000000e+00> : vector<8xf32>
    %559 = vector.multi_reduction <add>, %558, %cst_227 [1] : vector<8x32xf32> to vector<8xf32>
    %560 = vector.shape_cast %559 : vector<8xf32> to vector<8x1xf32>
    %cst_228 = arith.constant 3.200000e+01 : f32
    %561 = vector.broadcast %cst_228 : f32 to vector<8x1xf32>
    %562 = arith.divf %560, %561 : vector<8x1xf32>
    %cst_229 = arith.constant 9.99999974E-6 : f32
    %563 = vector.broadcast %cst_229 : f32 to vector<8x1xf32>
    %564 = arith.addf %562, %563 : vector<8x1xf32>
    %565 = math.rsqrt %564 : vector<8x1xf32>
    %566 = vector.broadcast %565 : vector<8x1xf32> to vector<8x32xf32>
    %567 = arith.mulf %557, %566 : vector<8x32xf32>
    %568 = vector.broadcast %549 : vector<1x32xf32> to vector<8x32xf32>
    %569 = arith.mulf %567, %568 : vector<8x32xf32>
    %570 = vector.broadcast %551 : vector<1x32xf32> to vector<8x32xf32>
    %571 = arith.addf %569, %570 : vector<8x32xf32>
    %572 = arith.truncf %571 : vector<8x32xf32> to vector<8x32xbf16>
    %c0_230 = arith.constant 0 : index
    %c0_231 = arith.constant 0 : index
    %573 = vector.load %arg23[%c0_230, %c0_231] : memref<32x128xbf16, #tpu.memory_space<vmem>>, vector<32x128xbf16>
    %cst_232 = arith.constant dense<0.000000e+00> : vector<8x128xf32>
    %574 = tpu.matmul %572, %573, %cst_232 {dimension_numbers = #tpu.dot_dimension_numbers<[1], [0], [0], [1], [0, 0, 1, 1], [], []>} : vector<8x32xbf16>, vector<32x128xbf16>, vector<8x128xf32> -> vector<8x128xf32>
    %c0_233 = arith.constant 0 : index
    %c0_234 = arith.constant 0 : index
    %575 = vector.load %arg24[%c0_233, %c0_234] : memref<1x128xf32, #tpu.memory_space<vmem>>, vector<1x128xf32>
    %576 = vector.broadcast %575 : vector<1x128xf32> to vector<8x128xf32>
    %577 = arith.addf %574, %576 : vector<8x128xf32>
    %c0_235 = arith.constant 0 : index
    %c0_236 = arith.constant 0 : index
    %c0_237 = arith.constant 0 : index
    %578 = vector.load %arg25[%c0_235, %c0_236, %c0_237] : memref<1x8x128xf32, #tpu.memory_space<vmem>>, vector<1x8x128xf32>
    %579 = vector.shape_cast %578 : vector<1x8x128xf32> to vector<8x128xf32>
    %580 = vector.shape_cast %577 : vector<8x128xf32> to vector<1x8x128xf32>
    tpu.vector_store %arg25[%c0_235, %c0_236, %c0_237], %580 {strides = array<i32>} : memref<1x8x128xf32, #tpu.memory_space<vmem>>, vector<1x8x128xf32>,
    return
  }
  func.func @transform_0(%arg0: i32) -> (i32, i32, i32) {
    %c0_i32 = arith.constant 0 : i32
    %c0_i32_0 = arith.constant 0 : i32
    %c0_i32_1 = arith.constant 0 : i32
    return %arg0, %c0_i32, %c0_i32_0 : i32, i32, i32
  }
  func.func @transform_1(%arg0: i32) -> (i32, i32, i32) {
    %c0_i32 = arith.constant 0 : i32
    %c0_i32_0 = arith.constant 0 : i32
    %c0_i32_1 = arith.constant 0 : i32
    return %arg0, %c0_i32, %c0_i32_0 : i32, i32, i32
  }
  func.func @transform_2(%arg0: i32) -> (i32, i32, i32) {
    %c0_i32 = arith.constant 0 : i32
    %c0_i32_0 = arith.constant 0 : i32
    %c0_i32_1 = arith.constant 0 : i32
    return %arg0, %c0_i32, %c0_i32_0 : i32, i32, i32
  }
  func.func @transform_3(%arg0: i32) -> (i32, i32, i32) {
    %c0_i32 = arith.constant 0 : i32
    %c0_i32_0 = arith.constant 0 : i32
    %c0_i32_1 = arith.constant 0 : i32
    return %arg0, %c0_i32, %c0_i32_0 : i32, i32, i32
  }
  func.func @transform_4(%arg0: i32) -> (i32, i32, i32) {
    %c0_i32 = arith.constant 0 : i32
    %c0_i32_0 = arith.constant 0 : i32
    %c0_i32_1 = arith.constant 0 : i32
    %c0_i32_2 = arith.constant 0 : i32
    return %c0_i32, %c0_i32_0, %c0_i32_1 : i32, i32, i32
  }
  func.func @transform_5(%arg0: i32) -> (i32, i32, i32) {
    %c0_i32 = arith.constant 0 : i32
    %c0_i32_0 = arith.constant 0 : i32
    %c0_i32_1 = arith.constant 0 : i32
    %c0_i32_2 = arith.constant 0 : i32
    return %c0_i32, %c0_i32_0, %c0_i32_1 : i32, i32, i32
  }
  func.func @transform_6(%arg0: i32) -> (i32, i32, i32, i32) {
    %c0_i32 = arith.constant 0 : i32
    %c0_i32_0 = arith.constant 0 : i32
    %c0_i32_1 = arith.constant 0 : i32
    %c0_i32_2 = arith.constant 0 : i32
    %c0_i32_3 = arith.constant 0 : i32
    return %c0_i32, %c0_i32_0, %c0_i32_1, %c0_i32_2 : i32, i32, i32, i32
  }
  func.func @transform_7(%arg0: i32) -> (i32, i32, i32, i32) {
    %c0_i32 = arith.constant 0 : i32
    %c0_i32_0 = arith.constant 0 : i32
    %c0_i32_1 = arith.constant 0 : i32
    %c0_i32_2 = arith.constant 0 : i32
    %c0_i32_3 = arith.constant 0 : i32
    return %c0_i32, %c0_i32_0, %c0_i32_1, %c0_i32_2 : i32, i32, i32, i32
  }
  func.func @transform_8(%arg0: i32) -> (i32, i32, i32) {
    %c0_i32 = arith.constant 0 : i32
    %c0_i32_0 = arith.constant 0 : i32
    %c0_i32_1 = arith.constant 0 : i32
    %c0_i32_2 = arith.constant 0 : i32
    return %c0_i32, %c0_i32_0, %c0_i32_1 : i32, i32, i32
  }
  func.func @transform_9(%arg0: i32) -> (i32, i32, i32) {
    %c0_i32 = arith.constant 0 : i32
    %c0_i32_0 = arith.constant 0 : i32
    %c0_i32_1 = arith.constant 0 : i32
    %c0_i32_2 = arith.constant 0 : i32
    return %c0_i32, %c0_i32_0, %c0_i32_1 : i32, i32, i32
  }
  func.func @transform_10(%arg0: i32) -> (i32, i32, i32) {
    %c0_i32 = arith.constant 0 : i32
    %c0_i32_0 = arith.constant 0 : i32
    %c0_i32_1 = arith.constant 0 : i32
    %c0_i32_2 = arith.constant 0 : i32
    return %c0_i32, %c0_i32_0, %c0_i32_1 : i32, i32, i32
  }
  func.func @transform_11(%arg0: i32) -> (i32, i32, i32) {
    %c0_i32 = arith.constant 0 : i32
    %c0_i32_0 = arith.constant 0 : i32
    %c0_i32_1 = arith.constant 0 : i32
    %c0_i32_2 = arith.constant 0 : i32
    return %c0_i32, %c0_i32_0, %c0_i32_1 : i32, i32, i32
  }
  func.func @transform_12(%arg0: i32) -> (i32, i32, i32) {
    %c0_i32 = arith.constant 0 : i32
    %c0_i32_0 = arith.constant 0 : i32
    %c0_i32_1 = arith.constant 0 : i32
    %c0_i32_2 = arith.constant 0 : i32
    return %c0_i32, %c0_i32_0, %c0_i32_1 : i32, i32, i32
  }
  func.func @transform_13(%arg0: i32) -> (i32, i32, i32) {
    %c0_i32 = arith.constant 0 : i32
    %c0_i32_0 = arith.constant 0 : i32
    %c0_i32_1 = arith.constant 0 : i32
    %c0_i32_2 = arith.constant 0 : i32
    return %c0_i32, %c0_i32_0, %c0_i32_1 : i32, i32, i32
  }
  func.func @transform_14(%arg0: i32) -> (i32, i32, i32) {
    %c0_i32 = arith.constant 0 : i32
    %c0_i32_0 = arith.constant 0 : i32
    %c0_i32_1 = arith.constant 0 : i32
    %c0_i32_2 = arith.constant 0 : i32
    return %c0_i32, %c0_i32_0, %c0_i32_1 : i32, i32, i32
  }
  func.func @transform_15(%arg0: i32) -> (i32, i32, i32) {
    %c0_i32 = arith.constant 0 : i32
    %c0_i32_0 = arith.constant 0 : i32
    %c0_i32_1 = arith.constant 0 : i32
    %c0_i32_2 = arith.constant 0 : i32
    return %c0_i32, %c0_i32_0, %c0_i32_1 : i32, i32, i32
  }
  func.func @transform_16(%arg0: i32) -> (i32, i32, i32) {
    %c0_i32 = arith.constant 0 : i32
    %c0_i32_0 = arith.constant 0 : i32
    %c0_i32_1 = arith.constant 0 : i32
    %c0_i32_2 = arith.constant 0 : i32
    return %c0_i32, %c0_i32_0, %c0_i32_1 : i32, i32, i32
  }
  func.func @transform_17(%arg0: i32) -> (i32, i32, i32) {
    %c0_i32 = arith.constant 0 : i32
    %c0_i32_0 = arith.constant 0 : i32
    %c0_i32_1 = arith.constant 0 : i32
    %c0_i32_2 = arith.constant 0 : i32
    return %c0_i32, %c0_i32_0, %c0_i32_1 : i32, i32, i32
  }
  func.func @transform_18(%arg0: i32) -> (i32, i32, i32) {
    %c0_i32 = arith.constant 0 : i32
    %c0_i32_0 = arith.constant 0 : i32
    %c0_i32_1 = arith.constant 0 : i32
    %c0_i32_2 = arith.constant 0 : i32
    return %c0_i32, %c0_i32_0, %c0_i32_1 : i32, i32, i32
  }
  func.func @transform_19(%arg0: i32) -> (i32, i32, i32) {
    %c0_i32 = arith.constant 0 : i32
    %c0_i32_0 = arith.constant 0 : i32
    %c0_i32_1 = arith.constant 0 : i32
    %c0_i32_2 = arith.constant 0 : i32
    return %c0_i32, %c0_i32_0, %c0_i32_1 : i32, i32, i32
  }
  func.func @transform_20(%arg0: i32) -> (i32, i32, i32) {
    %c0_i32 = arith.constant 0 : i32
    %c0_i32_0 = arith.constant 0 : i32
    %c0_i32_1 = arith.constant 0 : i32
    %c0_i32_2 = arith.constant 0 : i32
    return %c0_i32, %c0_i32_0, %c0_i32_1 : i32, i32, i32
  }
  func.func @transform_21(%arg0: i32) -> (i32, i32, i32) {
    %c0_i32 = arith.constant 0 : i32
    %c0_i32_0 = arith.constant 0 : i32
    %c0_i32_1 = arith.constant 0 : i32
    %c0_i32_2 = arith.constant 0 : i32
    return %c0_i32, %c0_i32_0, %c0_i32_1 : i32, i32, i32
  }
  func.func @transform_22(%arg0: i32) -> (i32, i32) {
    %c0_i32 = arith.constant 0 : i32
    %c0_i32_0 = arith.constant 0 : i32
    %c0_i32_1 = arith.constant 0 : i32
    return %c0_i32, %c0_i32_0 : i32, i32
  }
  func.func @transform_23(%arg0: i32) -> (i32, i32) {
    %c0_i32 = arith.constant 0 : i32
    %c0_i32_0 = arith.constant 0 : i32
    %c0_i32_1 = arith.constant 0 : i32
    return %c0_i32, %c0_i32_0 : i32, i32
  }
  func.func @transform_24(%arg0: i32) -> (i32, i32, i32) {
    %c0_i32 = arith.constant 0 : i32
    %c0_i32_0 = arith.constant 0 : i32
    %c0_i32_1 = arith.constant 0 : i32
    return %arg0, %c0_i32, %c0_i32_0 : i32, i32, i32
  }
}

</mosaic_0001>

<bundles_post_ra>
// kernel: text_decoder_forward.1
= control target key start
LH: loop header
LB: loop body
LE: loop exit
PB: predicated region body
PF: predicated region fallthrough
CT: control target
= control target key end

     0   :  { %s5843_s0 = inlined_call_operand.vmem [shape: f32[2,8,32], index: 0, kind: input, shape index: {}]   ;;  %s5844_s1 = inlined_call_operand.vmem [shape: f32[2,8,32], index: 1, kind: input, shape index: {}]   ;;  %s5845_s2 = inlined_call_operand.vmem [shape: f32[2,1,8], index: 2, kind: input, shape index: {}]   ;;  %s5846_s3 = inlined_call_operand.vmem [shape: f32[2,1,8], index: 3, kind: input, shape index: {}]   ;;  %s5847_s4 = inlined_call_operand.vmem [shape: f32[2,1,32], index: 4, kind: input, shape index: {}]   ;;  %s5848_s5 = inlined_call_operand.vmem [shape: f32[2,1,32], index: 5, kind: input, shape index: {}]   ;;  %s5849_s6 = inlined_call_operand.vmem [shape: f32[2,3,1,32], index: 6, kind: input, shape index: {}]   ;;  %s5850_s7 = inlined_call_operand.vmem [shape: f32[2,3,1,32], index: 7, kind: input, shape index: {}]   ;;  %s5851_s8 = inlined_call_operand.vmem [shape: bf16[2,32,96], index: 8, kind: input, shape index: {}]   ;;  %s5852_s9 = inlined_call_operand.vmem [shape: f32[2,1,96], index: 9, kind: input, shape index: {}]   ;;  %s5853_s10 = inlined_call_operand.vmem [shape: bf16[2,32,32], index: 10, kind: input, shape index: {}]   ;;  %s5854_s11 = inlined_call_operand.vmem [shape: f32[2,1,32], index: 11, kind: input, shape index: {}]   ;;  %s5855_s12 = inlined_call_operand.vmem [shape: bf16[2,32,32], index: 12, kind: input, shape index: {}]   ;;  %s5856_s13 = inlined_call_operand.vmem [shape: f32[2,1,32], index: 13, kind: input, shape index: {}]   ;;  %s5857_s14 = inlined_call_operand.vmem [shape: bf16[2,32,64], index: 14, kind: input, shape index: {}]   ;;  %s5858_s15 = inlined_call_operand.vmem [shape: f32[2,1,64], index: 15, kind: input, shape index: {}]   ;;  %s5859_s16 = inlined_call_operand.vmem [shape: bf16[2,32,32], index: 16, kind: input, shape index: {}]   ;;  %s5860_s17 = inlined_call_operand.vmem [shape: f32[2,1,32], index: 17, kind: input, shape index: {}]   ;;  %s5861_s18 = inlined_call_operand.vmem [shape: bf16[2,32,64], index: 18, kind: input, shape index: {}]   ;;  %s5862_s19 = inlined_call_operand.vmem [shape: f32[2,1,64], index: 19, kind: input, shape index: {}]   ;;  %s5863_s20 = inlined_call_operand.vmem [shape: bf16[2,64,32], index: 20, kind: input, shape index: {}]   ;;  %s5864_s21 = inlined_call_operand.vmem [shape: f32[2,1,32], index: 21, kind: input, shape index: {}]   ;;  %s5865_s22 = inlined_call_operand.vmem [shape: bf16[32,128], index: 22, kind: input, shape index: {}]   ;;  %s5866_s23 = inlined_call_operand.vmem [shape: f32[1,128], index: 23, kind: input, shape index: {}]   ;;  %s5867_s24 = inlined_call_operand.hbm [shape: f32[2,8,128], index: 24, kind: output, shape index: {}]  }
   0x1   :  { %5903 = sst [smem:[#allocation14_spill]] %s5843_s0 }
   0x2   :  { %5904 = sst [smem:[#allocation15_spill]] %s5844_s1 }
   0x3   :  { %5905 = sst [smem:[#allocation16_spill]] %s5845_s2 }
   0x4   :  { %5906 = sst [smem:[#allocation17_spill]] %s5846_s3 }
   0x5   :  { %5907 = sst [smem:[#allocation18_spill]] %s5847_s4 }
   0x6   :  { %5908 = sst [smem:[#allocation19_spill]] %s5848_s5 }
   0x7   :  { %5909 = sst [smem:[#allocation20_spill]] %s5849_s6 }
   0x8   :  { %5910 = sst [smem:[#allocation21_spill]] %s5850_s7 }
   0x9   :  { %5911 = sst [smem:[#allocation22_spill]] %s5851_s8 }
   0xa   :  { %5912 = sst [smem:[#allocation23_spill]] %s5865_s22 }
   0xb   :  { %5913 = sst [smem:[#allocation24_spill]] %s5866_s23 }
   0xc   :  { %5914 = sst [smem:[#allocation25_spill]] %s5867_s24 }
   0xd   :  { %29 = vsyncpa [#allocation3], 0 }
   0xe   :  { %31 = vsyncpa [#allocation3 + $0x1], 0  ;;  %s5075_s5 = smov 0   ;;  %s5077_s26 = smov 0  }
   0xf   :  { %s5079_s27 = smov 0   ;;  %s5081_s28 = smov 0  }
  0x10 LB: > { %5915 = sst [smem:[#allocation5_spill]] %s4925_s5  ;;  %s5096_s6 = sadd.s32 4294967295, %s4937_s28   ;;  %s4937_s28 = sphi %s5081_s28, %s5956_s28   ;;  %s4933_s27 = sphi %s5079_s27, %s5959_s27   ;;  %s4929_s26 = sphi %s5077_s26, %s5958_s26   ;;  %s4925_s5 = sphi %s5075_s5, %s5957_s5  }
  0x11   : > { %5916 = sst [smem:[#allocation6_spill]] %s4929_s26  ;;  %s4098_s2 = sadd.s32 4294967294, %s4937_s28  }
  0x12   : > { %5917 = sst [smem:[#allocation7_spill]] %s4933_s27  ;;  %s5100_s29 = sadd.s32 1, %s4937_s28  }
  0x13   : > { %5918 = sst [smem:[#allocation8_spill]] %s4937_s28  ;;  %s568_s0 = sadd.s32 1, %s4933_s27 }
  0x14   : > { %5919 = sst [smem:[#allocation9_spill]] %s5096_s6  ;;  %s565_s7 = ssub.s32 %s4937_s28, %s5100_s29 }
  0x15   : > { %5920 = sst [smem:[#allocation10_spill]] %s5100_s29  ;;  %p578_p0 = scmp.ne.s32.totalorder %s4933_s27, %s4929_s26 }
  0x16   : > { %p566_p1 = scmp.eq.s32.totalorder %s565_s7, 0  ;;  %p579_p2 = scmp.eq.s32.totalorder %s5096_s6, 1 }
  0x17   : > { %p584_p3 = scmp.ne.s32.totalorder %s4929_s26, %s4925_s5  ;;  %p585_p4 = scmp.eq.s32.totalorder %s4098_s2, 1 }
  0x18   : > { %s5111_s30 = scalar_select %p566_p1, %s4933_s27, %s568_s0  }
  0x19   : > { %p5113_p5 = por %p579_p2, %p578_p0  ;;  %p5117_p6 = por %p585_p4, %p584_p3 }
  0x1a   : > { %5921 = sst [smem:[#allocation11_spill]] %s5111_s30  ;;  %p4101_p7 = scmp.ge.s32.totalorder %s4937_s28, 1 }
  0x1b   : > { %s5922_s3 = scalar_select %p5113_p5, 1, 0 }
  0x1c   : > { %s5924_s25 = scalar_select %p5117_p6, 1, 0 }
  0x1d   : > { %5923 = sst [smem:[#allocation12_spill]] %s5922_s3  ;;  %p689_p8 = scmp.lt.s32.totalorder %s4937_s28, 3 }
  0x1e   : > { %5925 = sst [smem:[#allocation13_spill]] %s5924_s25 }
  0x1f   : > { %p690_p9 = pnand %p4101_p7, %p689_p8 }
  0x20   : > { %p764_p10 = scmp.lt.s32.totalorder (!%p690_p9), %s5096_s6, 1  ;;  %v4939_v0 = vmov (!%p690_p9), 0.0   ;;  %vm798_vm0 = vcmask (!%p690_p9), 261120   ;;  %s5926_s0 = sld [smem:[#allocation14_spill]] (!%p690_p9)  ;;  %vm4940_vm1 = vmmov (!%p690_p9), 0   ;;  %vm944_vm2 = vcmask (!%p690_p9), 64512  }
  0x21   : > { %693 = sbr.rel (%p690_p9) target bundleno = 9696 (0x25e0), region = 116  ;;  %4387 = vmatprep.subr.bf16.mxu0 (!%p690_p9), %v4939_v0  ;;  %4395 = vmatprep.subr.bf16.mxu1 (!%p690_p9), %v4939_v0  ;;  %s5927_s1 = sld [smem:[#allocation18_spill]] (!%p690_p9)  ;;  %v4110_v35 = vld [vmem:[%s5852_s9] ss:$0 sm:$0xff] (!%p690_p9)  ;;  %v781_v56 = vlaneseq (!%p690_p9)  ;;  %vm1191_vm4 = vcmask (!%p690_p9), 1043456   ;;  %vm1392_vm5 = vcmask (!%p690_p9), 130048  }
  0x22   : > { %4391 = vmatprep.mubr.msk.bf16.mxu0 (!%p690_p9), %vm4940_vm1, %v4939_v0  ;;  %4397 = vmatprep.mubr.msk.bf16.mxu1 (!%p690_p9), %vm4940_vm1, %v4939_v0  ;;  %s5930_s29 = sld [smem:[#allocation20_spill]] (!%p690_p9)  ;;  %s5931_s28 = sld [smem:[#allocation21_spill]] (!%p690_p9)  ;;  %vm1394_vm6 = vcmask (!%p690_p9), 195584   ;;  %vm2308_vm7 = vcmask (!%p690_p9), 523264  }
  0x23   : > { %s5895_s27 = smov (!%p690_p9), 112   ;;  %s5893_s5 = smov (!%p690_p9), 120   ;;  %v782_v57 = vshrl.u32 (!%p690_p9), %v781_v56, 7  ;;  %v784_v58 = vand.u32 (!%p690_p9), 127, %v781_v56 }
  0x24   : > { %s5881_s25 = smov (!%p690_p9), 96   ;;  %s5887_s30 = smov (!%p690_p9), 24  }
  0x25   : > { %vm785_vm3 = vcmp.gt.s32.totalorder (!%p690_p9), %v784_v58, %v782_v57  ;;  %s5943_s3 = smov (!%p690_p9), 24   ;;  %s5944_s23 = smov (!%p690_p9), 64  }
  0x26   : > { %v786_v59 = vsel (!%p690_p9), %vm785_vm3, -1e+09, %v4939_v0  ;;  %s5949_s22 = sld [smem:[#allocation19_spill]] (!%p690_p9)  ;;  %s5950_s26 = sld [smem:[#allocation24_spill]] (!%p690_p9) }
  0x27   : > { %v4106_v12 = vld [vmem:[%s5927_s1] ss:$0 sm:$0xff] (!%p690_p9) }
  0x28   : > { %s5127_s8 = scalar_select %p764_p10, %s5096_s6, 1  ;;  %v4108_v29 = vld [vmem:[%s5930_s29] ss:$0 sm:$0xff] }
  0x29   : > { %s5932_s24 = smov %s5931_s28  ;;  %v4109_v31 = vld [vmem:[%s5931_s28] ss:$0 sm:$0xff]  ;;  %s5883_s28 = smov 104  }
  0x2a   : > { %s5874_s4 = sshll.u32 %s5127_s8, 3  ;;  %s5934_s2 = sshll.u32 %s5127_s8, 3 }
  0x2b   : > { %s767_s7 = scalar_lea.vmem %s5926_s0, %s5874_s4  ;;  %s5929_s4 = sld [smem:[#allocation22_spill]] }
  0x2c   : > { %v779_v1 = vld [vmem:[%s767_s7] sm:$0xff]  ;;  %s5928_s7 = sld [smem:[#allocation19_spill]]  ;;  %s5933_s0 = sld [smem:[#allocation16_spill]] }
  0x2d   : > { %v799_v2 = vsel %vm798_vm0, %v779_v1, 0.0 }
  0x2e   : > { %800 = vadd.xlane.f32.xlu0 %v799_v2 }
  0x31   : > { %v4756_v23 = vld [vmem:[%s5929_s4] sm:$0xff]   ;;  %v4757_v24 = vld [vmem:[%s5929_s4 + $0x8] sm:$0xff]  }
  0x32   : > { %v4107_v14 = vld [vmem:[%s5928_s7] ss:$0 sm:$0xff]  ;;  %4388 = vmatpush3.bf16.msra.mxu0 %v4756_v23 }
  0x33   : > { %4389 = vmatprep.subr.bf16.mxu0 %v4939_v0 }
  0x36   : > { %4390 = vmatpush3.bf16.msra.mxu0 %v4757_v24 }
  0x37   : > { %4401 = vmatprep.subr.bf16.mxu0 %v4939_v0 }
  0xbb   : > { %v801_v3 = vpop.xlane.xlu0 %800 }
  0xbc   : > { %v803_v4 = vmul.f32 0.03125, %v801_v3 }
  0xbe   : > { %v804_v5 = vsub.f32 %v779_v1, %v803_v4 }
  0xc0   : > { %v805_v6 = vmul.f32 %v804_v5, %v804_v5 }
  0xc2   : > { %v806_v7 = vsel %vm798_vm0, %v805_v6, 0.0 }
  0xc3   : > { %807 = vadd.xlane.f32.xlu0 %v806_v7 }
 0x150   : > { %v808_v8 = vpop.xlane.xlu0 %807 }
 0x151   : > { %v809_v9 = vmul.f32 0.03125, %v808_v8 }
 0x153   : > { %v810_v10 = vadd.f32 1e-05, %v809_v9 }
 0x155   : > { %4790 = vrsqrt.f32 %v810_v10 }
 0x15f   : > { %v4791_v11 = vpop.eup %4790 }
 0x160   : > { %v812_v13 = vmul.f32 %v4791_v11, %v804_v5 }
 0x162   : > { %v819_v15 = vmul.f32 %v4106_v12, %v812_v13 }
 0x164   : > { %v5143_v16 = vadd.f32 %v4107_v14, %v819_v15 }
 0x166   : > { %v829_v17 = vsel %vm798_vm0, %v5143_v16, 0.0 }
 0x167   : > { %830 = vadd.xlane.f32.xlu1 %v829_v17 }
 0x1f4   : > { %v831_v18 = vpop.xlane.xlu1 %830 }
 0x1f5   : > { %v832_v19 = vmul.f32 0.03125, %v831_v18 }
 0x1f7   : > { %v833_v20 = vsub.f32 %v5143_v16, %v832_v19 }
 0x1f9   : > { %v834_v21 = vmul.f32 %v833_v20, %v833_v20 }
 0x1fb   : > { %v835_v22 = vsel %vm798_vm0, %v834_v21, 0.0 }
 0x1fc   : > { %836 = vadd.xlane.f32.xlu1 %v835_v22 }
 0x289   : > { %v837_v25 = vpop.xlane.xlu1 %836 }
 0x28a   : > { %v838_v26 = vmul.f32 0.03125, %v837_v25 }
 0x28c   : > { %v839_v27 = vadd.f32 1e-05, %v838_v26 }
 0x28e   : > { %4792 = vrsqrt.f32 %v839_v27 }
 0x298   : > { %v4793_v28 = vpop.eup %4792 }
 0x299   : > { %v841_v30 = vmul.f32 %v4793_v28, %v833_v20 }
 0x29b   : > { %v848_v32 = vmul.f32 %v4108_v29, %v841_v30 }
 0x29d   : > { %v855_v33 = vadd.f32 %v4109_v31, %v848_v32 }
 0x29f   : > { %v856_v34 = vpack.c.bf16 %v855_v33, %v855_v33 }
 0x2a1   : > { %4392 = vmatmul.mubr.msk.bf16.vlgmr.msra.gmra.mrb[0].mxu0 %vm798_vm0, %v856_v34 }
 0x2a2   : > { %4403 = vmatprep.mubr.msk.bf16.mxu0 %vm4940_vm1, %v4939_v0 }
 0x374   : > { %v917_v36 = vpop.f32.mrb[0].mxu0 }
 0x375   : > { %v918_v37 = vadd.f32 %v4110_v35, %v917_v36  ;;  %v4393_v38 = vpop.f32.mrb[1].mxu0 }
 0x376   : > { %v920_v39 = vpop.f32.mrb[2].mxu0 }
 0x377   : > { %931 = vrot.lane.b32.xlu1 %v918_v37, %s5895_s27  ;;  %928 = vrot.lane.b32.xlu0 %v918_v37, %s5893_s5  ;;  %v4394_v40 = vpop.f32.mrb[3].mxu0  ;;  %v937_v41 = vpack.c.bf16 %v918_v37, %v918_v37  ;;  %s5936_s5 = smov 112  }
 0x37b   : > { %934 = vrot.lane.b32.xlu1 %v918_v37, %s5883_s28  ;;  %s5885_s28 = smov 64  }
 0x37f   : > { %942 = vrot.lane.b32.xlu1 %v937_v41, %s5881_s25 }
 0x3e9   : > { %v932_v42 = vpop.permute.xlu1 %931  ;;  %v929_v43 = vpop.permute.xlu0 %928 }
 0x3ea   : > { %v5177_v44 = vpack.c.bf16 %v932_v42, %v932_v42  ;;  %v5179_v45 = vpack.c.bf16 %v929_v43, %v929_v43 }
 0x3ec   : > { %992 = vrot.lane.b32.xlu0 %v5179_v45, %s5881_s25  ;;  %1041 = vrot.lane.b32.xlu1 %v5177_v44, %s5881_s25 }
 0x3ed   : > { %v935_v46 = vpop.permute.xlu1 %934 }
 0x3ee   : > { %v5185_v47 = vpack.c.bf16 %v935_v46, %v935_v46 }
 0x3f0   : > { %1090 = vrot.lane.b32.xlu0 %v5185_v47, %s5881_s25  ;;  %s774_s25 = scalar_lea.vmem %s5933_s0, %s5127_s8  ;;  %s5939_s0 = sld [smem:[#allocation17_spill]] }
 0x3f1   : > { %v943_v48 = vpop.permute.xlu1 %942  ;;  %v4105_v60 = vld [vmem:[%s774_s25] ss:$0 sm:$0xff]  ;;  %s5889_s25 = smov 16  }
 0x3f2   : > { %v949_v49 = vsel %vm944_vm2, %v943_v48, 0  ;;  %v5217_v61 = vadd.f32 %v4105_v60, %v786_v59 }
 0x3f3   : > { %4396 = vmatpush3.bf16.xpose.msra.mxu1 %v949_v49 }
 0x3f4   : > { %4407 = vmatprep.subr.bf16.mxu1 %v4939_v0 }
 0x3f6   : > { %s5369_s27 = scalar_lea.vmem %s5939_s0, %s5127_s8  ;;  %s5940_s8 = smov 96  }
 0x3fa   : > { %4398 = vmatmul.mubr.msk.bf16.vlgmr.msra.gmra.mrb[0].mxu1 %vm944_vm2, %v937_v41 }
 0x3fb   : > { %4409 = vmatprep.mubr.msk.bf16.mxu1 %vm4940_vm1, %v4939_v0 }
 0x45e   : > { %v993_v50 = vpop.permute.xlu0 %992  ;;  %v1042_v51 = vpop.permute.xlu1 %1041 }
 0x45f   : > { %v998_v52 = vsel %vm944_vm2, %v993_v50, 0  ;;  %v1047_v53 = vsel %vm944_vm2, %v1042_v51, 0 }
 0x460   : > { %4402 = vmatpush3.bf16.xpose.msra.mxu0 %v998_v52  ;;  %4408 = vmatpush3.bf16.xpose.msra.mxu1 %v1047_v53 }
 0x461   : > { %4413 = vmatprep.subr.bf16.mxu0 %v4939_v0  ;;  %4419 = vmatprep.subr.bf16.mxu1 %v4939_v0 }
 0x462   : > { %v1091_v54 = vpop.permute.xlu0 %1090 }
 0x463   : > { %v1096_v55 = vsel %vm944_vm2, %v1091_v54, 0 }
 0x467   : > { %4404 = vmatmul.mubr.msk.bf16.vlgmr.msra.gmra.mrb[4].mxu0 %vm944_vm2, %v5179_v45  ;;  %4410 = vmatmul.mubr.msk.bf16.vlgmr.msra.gmra.mrb[4].mxu1 %vm944_vm2, %v5177_v44 }
 0x468   : > { %4414 = vmatpush3.bf16.xpose.msra.mxu0 %v1096_v55  ;;  %4415 = vmatprep.mubr.msk.bf16.mxu0 %vm4940_vm1, %v4939_v0 }
 0x469   : > { %4421 = vmatprep.mubr.msk.bf16.mxu1 %vm4940_vm1, %v4939_v0  ;;  %4425 = vmatprep.subr.bf16.mxu0 %v4939_v0 }
 0x46f   : > { %4416 = vmatmul.mubr.msk.bf16.vlgmr.msra.gmra.mrb[8].mxu0 %vm944_vm2, %v5185_v47 }
 0x470   : > { %4427 = vmatprep.mubr.msk.bf16.mxu0 %vm4940_vm1, %v4939_v0 }
 0x4cd   : > { %v985_v62 = vpop.f32.mrb[0].mxu1 }
 0x4ce   : > { %v986_v63 = vadd.f32 %v985_v62, %v5217_v61  ;;  %v4399_v1 = vpop.f32.mrb[1].mxu1 }
 0x4cf   : > { %v988_v2 = vpop.f32.mrb[2].mxu1 }
 0x4d0   : > { %v4400_v3 = vpop.f32.mrb[3].mxu1  ;;  %v1138_v4 = vsel %vm944_vm2, %v986_v63, -inf }
 0x4d1   : > { %1139 = vmax.xlane.f32.xlu1 %v1138_v4 }
 0x4e2   : > { %1186 = vrot.lane.b32.xlu1 %v937_v41, %s5885_s28 }
 0x53a   : > { %v1034_v5 = vpop.f32.mrb[4].mxu0  ;;  %v1083_v6 = vpop.f32.mrb[4].mxu1 }
 0x53b   : > { %v1035_v7 = vadd.f32 %v1034_v5, %v5217_v61  ;;  %v4405_v8 = vpop.f32.mrb[5].mxu0  ;;  %v4411_v9 = vpop.f32.mrb[5].mxu1  ;;  %v1084_v12 = vadd.f32 %v1083_v6, %v5217_v61 }
 0x53c   : > { %v1037_v10 = vpop.f32.mrb[6].mxu0  ;;  %v1086_v11 = vpop.f32.mrb[6].mxu1 }
 0x53d   : > { %v4406_v13 = vpop.f32.mrb[7].mxu0  ;;  %v4412_v14 = vpop.f32.mrb[7].mxu1  ;;  %v1141_v15 = vsel %vm944_vm2, %v1035_v7, -inf  ;;  %v1144_v17 = vsel %vm944_vm2, %v1084_v12, -inf  ;;  %v4758_v10 = vld [vmem:[%s5853_s10] sm:$0xff]   ;;  %v4759_v11 = vld [vmem:[%s5853_s10 + $0x8] sm:$0xff]  }
 0x53e   : > { %1142 = vmax.xlane.f32.xlu0 %v1141_v15 }
 0x542   : > { %1145 = vmax.xlane.f32.xlu0 %v1144_v17  ;;  %v1132_v18 = vpop.f32.mrb[8].mxu0 }
 0x543   : > { %v1133_v19 = vadd.f32 %v1132_v18, %v5217_v61  ;;  %v4417_v20 = vpop.f32.mrb[9].mxu0 }
 0x544   : > { %v1135_v21 = vpop.f32.mrb[10].mxu0 }
 0x545   : > { %v4418_v22 = vpop.f32.mrb[11].mxu0  ;;  %v1147_v23 = vsel %vm944_vm2, %v1133_v19, -inf }
 0x546   : > { %1148 = vmax.xlane.f32.xlu0 %v1147_v23 }
 0x55e   : > { %v1140_v24 = vpop.xlane.xlu1 %1139 }
 0x55f   : > { %v1150_v25 = vsub.f32 %v986_v63, %v1140_v24 }
 0x561   : > { %v1154_v26 = vmul.f32 1.442695, %v1150_v25 }
 0x562   : > { %v1187_v27 = vpop.permute.xlu1 %1186 }
 0x563   : > { %4794 = vpow2.f32 %v1154_v26  ;;  %v1193_v28 = vsel %vm1191_vm4, %v1187_v27, 0 }
 0x564   : > { %4420 = vmatpush3.bf16.msra.mxu1 %v1193_v28 }
 0x565   : > { %4431 = vmatprep.subr.bf16.mxu1 %v4939_v0 }
 0x56d   : > { %v4795_v29 = vpop.eup %4794 }
 0x56e   : > { %v1162_v30 = vsel %vm944_vm2, %v4795_v29, 0.0 }
 0x56f   : > { %1163 = vadd.xlane.f32.xlu1 %v1162_v30 }
 0x5cb   : > { %v1143_v31 = vpop.xlane.xlu0 %1142 }
 0x5cc   : > { %v1151_v32 = vsub.f32 %v1035_v7, %v1143_v31 }
 0x5ce   : > { %v1156_v33 = vmul.f32 1.442695, %v1151_v32 }
 0x5cf   : > { %v1146_v34 = vpop.xlane.xlu0 %1145 }
 0x5d0   : > { %4796 = vpow2.f32 %v1156_v33  ;;  %v1152_v35 = vsub.f32 %v1084_v12, %v1146_v34  ;;  %v4125_v33 = vld [vmem:[%s5854_s11] ss:$0 sm:$0xff] }
 0x5d2   : > { %v1158_v36 = vmul.f32 1.442695, %v1152_v35 }
 0x5d3   : > { %v1149_v37 = vpop.xlane.xlu0 %1148 }
 0x5d4   : > { %4798 = vpow2.f32 %v1158_v36  ;;  %v1153_v38 = vsub.f32 %v1133_v19, %v1149_v37 }
 0x5d6   : > { %v1160_v39 = vmul.f32 1.442695, %v1153_v38 }
 0x5d8   : > { %4800 = vpow2.f32 %v1160_v39 }
 0x5da   : > { %v4797_v40 = vpop.eup %4796 }
 0x5db   : > { %v1165_v41 = vsel %vm944_vm2, %v4797_v40, 0.0 }
 0x5dc   : > { %1166 = vadd.xlane.f32.xlu0 %v1165_v41 }
 0x5de   : > { %v4799_v42 = vpop.eup %4798 }
 0x5df   : > { %v1168_v43 = vsel %vm944_vm2, %v4799_v42, 0.0 }
 0x5e0   : > { %1169 = vadd.xlane.f32.xlu1 %v1168_v43 }
 0x5e2   : > { %v4801_v46 = vpop.eup %4800 }
 0x5e3   : > { %v1171_v48 = vsel %vm944_vm2, %v4801_v46, 0.0 }
 0x5e4   : > { %1172 = vadd.xlane.f32.xlu0 %v1171_v48 }
 0x5f1   : > { %1283 = vrot.lane.b32.xlu1 %v5177_v44, %s5885_s28 }
 0x5f5   : > { %1331 = vrot.lane.b32.xlu1 %v5185_v47, %s5885_s28 }
 0x5fa   : > { %1235 = vrot.lane.b32.xlu0 %v5179_v45, %s5885_s28  ;;  %s5891_s28 = smov 8  }
 0x5fc   : > { %v1164_v49 = vpop.xlane.xlu1 %1163 }
 0x5fd   : > { %4802 = vrcp.f32 %v1164_v49  ;;  %v4761_v49 = vld [vmem:[%s5857_s14 + $0x8] sm:$0xff]  }
 0x607   : > { %v4803_v50 = vpop.eup %4802 }
 0x608   : > { %v1178_v51 = vmul.f32 %v4803_v50, %v4795_v29 }
 0x60a   : > { %v1182_v52 = vpack.c.bf16 %v1178_v51, %v1178_v51  ;;  %v4762_v51 = vld [vmem:[%s5855_s12] sm:$0xff]  }
 0x60c   : > { %4422 = vmatmul.mubr.msk.bf16.vlgmr.msra.gmra.mrb[8].mxu1 %vm944_vm2, %v1182_v52  ;;  %v4763_v52 = vld [vmem:[%s5855_s12 + $0x8] sm:$0xff]  }
 0x60d   : > { %4433 = vmatprep.mubr.msk.bf16.mxu1 %vm4940_vm1, %v4939_v0 }
 0x669   : > { %v1167_v53 = vpop.xlane.xlu0 %1166 }
 0x66a   : > { %4804 = vrcp.f32 %v1167_v53 }
 0x66d   : > { %v1170_v54 = vpop.xlane.xlu1 %1169 }
 0x66e   : > { %4806 = vrcp.f32 %v1170_v54 }
 0x671   : > { %v1284_v44 = vpop.permute.xlu1 %1283  ;;  %v1173_v55 = vpop.xlane.xlu0 %1172 }
 0x672   : > { %v1289_v47 = vsel %vm1191_vm4, %v1284_v44, 0  ;;  %4808 = vrcp.f32 %v1173_v55 }
 0x673   : > { %4432 = vmatpush3.bf16.msra.mxu1 %v1289_v47  ;;  %v4128_v47 = vld [vmem:[%s5930_s29 + $0x1] ss:$0 sm:$0xff] }
 0x674   : > { %v4805_v45 = vpop.eup %4804  ;;  %4443 = vmatprep.subr.bf16.mxu1 %v4939_v0 }
 0x675   : > { %v1179_v56 = vmul.f32 %v4805_v45, %v4797_v40  ;;  %v1236_v57 = vpop.permute.xlu0 %1235  ;;  %v1332_v59 = vpop.permute.xlu1 %1331 }
 0x676   : > { %v1241_v58 = vsel %vm1191_vm4, %v1236_v57, 0  ;;  %v1337_v1 = vsel %vm1191_vm4, %v1332_v59, 0 }
 0x677   : > { %4426 = vmatpush3.bf16.msra.mxu0 %v1241_v58  ;;  %v1183_v60 = vpack.c.bf16 %v1179_v56, %v1179_v56  ;;  %v4129_v56 = vld [vmem:[%s5932_s24 + $0x1] ss:$0 sm:$0xff] }
 0x678   : > { %v4807_v62 = vpop.eup %4806  ;;  %4437 = vmatprep.subr.bf16.mxu0 %v4939_v0 }
 0x679   : > { %v1180_v63 = vmul.f32 %v4807_v62, %v4799_v42 }
 0x67a   : > { %4428 = vmatmul.mubr.msk.bf16.vlgmr.msra.gmra.mrb[12].mxu0 %vm944_vm2, %v1183_v60  ;;  %v4134_v60 = vld [vmem:[%s5858_s15] ss:$0 sm:$0xff] }
 0x67b   : > { %4438 = vmatpush3.bf16.msra.mxu0 %v1337_v1  ;;  %v1184_v2 = vpack.c.bf16 %v1180_v63, %v1180_v63  ;;  %4439 = vmatprep.mubr.msk.bf16.mxu0 %vm4940_vm1, %v4939_v0 }
 0x67c   : > { %v4809_v3 = vpop.eup %4808  ;;  %4451 = vmatprep.subr.bf16.mxu0 %v4939_v0 }
 0x67d   : > { %v1181_v4 = vmul.f32 %v4809_v3, %v4801_v46  ;;  %4434 = vmatmul.mubr.msk.bf16.vlgmr.msra.gmra.mrb[12].mxu1 %vm944_vm2, %v1184_v2 }
 0x67e   : > { %4447 = vmatprep.mubr.msk.bf16.mxu1 %vm4940_vm1, %v4939_v0  ;;  %4444 = vmatpush3.bf16.msra.mxu1 %v4758_v10 }
 0x67f   : > { %v1185_v5 = vpack.c.bf16 %v1181_v4, %v1181_v4  ;;  %4445 = vmatprep.subr.bf16.mxu1 %v4939_v0 }
 0x682   : > { %4440 = vmatmul.mubr.msk.bf16.vlgmr.msra.gmra.mrb[16].mxu0 %vm944_vm2, %v1185_v5  ;;  %4446 = vmatpush3.bf16.msra.mxu1 %v4759_v11 }
 0x683   : > { %4455 = vmatprep.mubr.msk.bf16.mxu0 %vm4940_vm1, %v4939_v0  ;;  %4459 = vmatprep.subr.bf16.mxu1 %v4939_v0 }
 0x684   : > { %4452 = vmatpush3.bf16.msra.mxu0 %v4762_v51 }
 0x685   : > { %4453 = vmatprep.subr.bf16.mxu0 %v4939_v0 }
 0x688   : > { %4454 = vmatpush3.bf16.msra.mxu0 %v4763_v52 }
 0x689   : > { %4467 = vmatprep.subr.bf16.mxu0 %v4939_v0 }
 0x6df   : > { %v1229_v6 = vpop.f32.mrb[8].mxu1 }
 0x6e0   : > { %v4423_v7 = vpop.f32.mrb[9].mxu1 }
 0x6e1   : > { %v1232_v8 = vpop.f32.mrb[10].mxu1 }
 0x6e2   : > { %v4424_v9 = vpop.f32.mrb[11].mxu1 }
 0x6e3   : > { %v4130_v9 = vld [vmem:[%s5856_s13] ss:$0 sm:$0xff] }
 0x74d   : > { %v1277_v12 = vpop.f32.mrb[12].mxu0 }
 0x74e   : > { %1380 = vrot.lane.b32.xlu1 %v1277_v12, %s5891_s28  ;;  %v4429_v13 = vpop.f32.mrb[13].mxu0 }
 0x74f   : > { %v1280_v14 = vpop.f32.mrb[14].mxu0 }
 0x750   : > { %v4430_v15 = vpop.f32.mrb[15].mxu0  ;;  %v1325_v17 = vpop.f32.mrb[12].mxu1 }
 0x751   : > { %v4435_v18 = vpop.f32.mrb[13].mxu1  ;;  %1384 = vrot.lane.b32.xlu0 %v1325_v17, %s5889_s25  ;;  %s5935_s25 = sld [smem:[#allocation15_spill]] }
 0x752   : > { %v1328_v19 = vpop.f32.mrb[14].mxu1 }
 0x753   : > { %v4436_v20 = vpop.f32.mrb[15].mxu1 }
 0x755   : > { %v1373_v21 = vpop.f32.mrb[16].mxu0 }
 0x756   : > { %1388 = vrot.lane.b32.xlu1 %v1373_v21, %s5887_s30  ;;  %v4441_v22 = vpop.f32.mrb[17].mxu0  ;;  %s5941_s30 = smov 8  }
 0x757   : > { %v1376_v23 = vpop.f32.mrb[18].mxu0  ;;  %s771_s28 = scalar_lea.vmem %s5935_s25, %s5934_s2  ;;  %s5938_s25 = smov 104  }
 0x758   : > { %v4442_v24 = vpop.f32.mrb[19].mxu0  ;;  %v780_v48 = vld [vmem:[%s771_s28] sm:$0xff]  ;;  %s5937_s28 = smov 120   ;;  %s5942_s2 = smov 16  }
 0x759   : > { %v5297_v50 = vpack.c.bf16 %v780_v48, %v780_v48 }
 0x7c0   : > { %v1381_v25 = vpop.permute.xlu1 %1380 }
 0x7c1   : > { %v1391_v27 = vsel %vm944_vm2, %v1229_v6, %v1381_v25 }
 0x7c3   : > { %v1385_v26 = vpop.permute.xlu0 %1384 }
 0x7c4   : > { %v1393_v28 = vsel %vm1392_vm5, %v1391_v27, %v1385_v26 }
 0x7c8   : > { %v1389_v29 = vpop.permute.xlu1 %1388 }
 0x7c9   : > { %v1395_v30 = vsel %vm1394_vm6, %v1393_v28, %v1389_v29  ;;  %v4138_v29 = vld [vmem:[%s5369_s27] ss:$0 sm:$0xff] }
 0x7ca   : > { %v1396_v31 = vpack.c.bf16 %v1395_v30, %v1395_v30 }
 0x7cc   : > { %4448 = vmatmul.mubr.msk.bf16.vlgmr.msra.gmra.mrb[16].mxu1 %vm798_vm0, %v1396_v31 }
 0x7cd   : > { %4463 = vmatprep.mubr.msk.bf16.mxu1 %vm4940_vm1, %v4939_v0 }
 0x89f   : > { %v1446_v32 = vpop.f32.mrb[16].mxu1 }
 0x8a0   : > { %v1452_v34 = vadd.f32 %v1446_v32, %v5143_v16  ;;  %v4449_v35 = vpop.f32.mrb[17].mxu1  ;;  %v4760_v16 = vld [vmem:[%s5857_s14] sm:$0xff]  }
 0x8a1   : > { %v1449_v36 = vpop.f32.mrb[18].mxu1  ;;  %4460 = vmatpush3.bf16.msra.mxu1 %v4760_v16 }
 0x8a2   : > { %v5279_v37 = vadd.f32 %v4125_v33, %v1452_v34  ;;  %v4450_v38 = vpop.f32.mrb[19].mxu1  ;;  %4461 = vmatprep.subr.bf16.mxu1 %v4939_v0 }
 0x8a4   : > { %v1465_v39 = vsel %vm798_vm0, %v5279_v37, 0.0 }
 0x8a5   : > { %1466 = vadd.xlane.f32.xlu0 %v1465_v39  ;;  %4462 = vmatpush3.bf16.msra.mxu1 %v4761_v49 }
 0x8a6   : > { %4473 = vmatprep.subr.bf16.mxu1 %v4939_v0 }
 0x8a8   : > { %4464 = vmatmul.mubr.msk.bf16.vlgmr.msra.gmra.mrb[20].mxu1 %vm798_vm0, %v5297_v50 }
 0x8a9   : > { %4475 = vmatprep.mubr.msk.bf16.mxu1 %vm4940_vm1, %v4939_v0 }
 0x932   : > { %v1467_v40 = vpop.xlane.xlu0 %1466 }
 0x933   : > { %v1468_v41 = vmul.f32 0.03125, %v1467_v40 }
 0x935   : > { %v1469_v42 = vsub.f32 %v5279_v37, %v1468_v41 }
 0x937   : > { %v1470_v43 = vmul.f32 %v1469_v42, %v1469_v42 }
 0x939   : > { %v1471_v46 = vsel %vm798_vm0, %v1470_v43, 0.0 }
 0x93a   : > { %1472 = vadd.xlane.f32.xlu1 %v1471_v46 }
 0x97b   : > { %v1620_v62 = vpop.f32.mrb[20].mxu1 }
 0x97c   : > { %v1621_v63 = vadd.f32 %v4134_v60, %v1620_v62  ;;  %v4465_v1 = vpop.f32.mrb[21].mxu1 }
 0x97d   : > { %v1623_v2 = vpop.f32.mrb[22].mxu1 }
 0x97e   : > { %1648 = vrot.lane.b32.xlu1 %v1621_v63, %s5936_s5  ;;  %v4466_v3 = vpop.f32.mrb[23].mxu1  ;;  %1645 = vrot.lane.b32.xlu0 %v1621_v63, %s5937_s28  ;;  %v5326_v4 = vpack.c.bf16 %v1621_v63, %v1621_v63 }
 0x980   : > { %v1668_v5 = vsel %vm944_vm2, %v5326_v4, 0 }
 0x982   : > { %1651 = vrot.lane.b32.xlu1 %v1621_v63, %s5938_s25 }
 0x9c7   : > { %v1473_v53 = vpop.xlane.xlu1 %1472 }
 0x9c8   : > { %v1474_v54 = vmul.f32 0.03125, %v1473_v53 }
 0x9ca   : > { %v1475_v44 = vadd.f32 1e-05, %v1474_v54 }
 0x9cc   : > { %4810 = vrsqrt.f32 %v1475_v44 }
 0x9d6   : > { %v4811_v55 = vpop.eup %4810 }
 0x9d7   : > { %v1477_v45 = vmul.f32 %v4811_v55, %v1469_v42 }
 0x9d9   : > { %v1484_v57 = vmul.f32 %v4128_v47, %v1477_v45 }
 0x9db   : > { %v1491_v58 = vadd.f32 %v4129_v56, %v1484_v57 }
 0x9dd   : > { %v1492_v59 = vpack.c.bf16 %v1491_v58, %v1491_v58 }
 0x9df   : > { %4456 = vmatmul.mubr.msk.bf16.vlgmr.msra.gmra.mrb[20].mxu0 %vm798_vm0, %v1492_v59 }
 0x9e0   : > { %4469 = vmatprep.mubr.msk.bf16.mxu0 %vm4940_vm1, %v4939_v0  ;;  %4468 = vmatpush3.bf16.xpose.msra.mxu0 %v1668_v5 }
 0x9e1   : > { %4479 = vmatprep.subr.bf16.mxu0 %v4939_v0 }
 0x9f0   : > { %v1646_v6 = vpop.permute.xlu0 %1645  ;;  %v1649_v10 = vpop.permute.xlu1 %1648 }
 0x9f1   : > { %v5332_v7 = vpack.c.bf16 %v1646_v6, %v1646_v6  ;;  %v5340_v11 = vpack.c.bf16 %v1649_v10, %v1649_v10 }
 0x9f3   : > { %v1714_v8 = vsel %vm944_vm2, %v5332_v7, 0  ;;  %v1760_v19 = vsel %vm944_vm2, %v5340_v11, 0 }
 0x9f4   : > { %4474 = vmatpush3.bf16.xpose.msra.mxu1 %v1714_v8  ;;  %v1652_v20 = vpop.permute.xlu1 %1651 }
 0x9f5   : > { %4485 = vmatprep.subr.bf16.mxu1 %v4939_v0  ;;  %v5351_v21 = vpack.c.bf16 %v1652_v20, %v1652_v20 }
 0x9f7   : > { %v1806_v24 = vsel %vm944_vm2, %v5351_v21, 0 }
 0xab2   : > { %v1553_v12 = vpop.f32.mrb[20].mxu0 }
 0xab3   : > { %v1554_v13 = vadd.f32 %v4130_v9, %v1553_v12  ;;  %v4457_v14 = vpop.f32.mrb[21].mxu0 }
 0xab4   : > { %v1556_v15 = vpop.f32.mrb[22].mxu0 }
 0xab5   : > { %v1640_v17 = vpack.c.bf16 %v1554_v13, %v1554_v13  ;;  %1637 = vrot.lane.b32.xlu1 %v1554_v13, %s5938_s25  ;;  %1631 = vrot.lane.b32.xlu0 %v1554_v13, %s5937_s28  ;;  %v4458_v18 = vpop.f32.mrb[23].mxu0 }
 0xab7   : > { %4470 = vmatmul.mubr.msk.bf16.vlgmr.msra.gmra.mrb[24].mxu0 %vm944_vm2, %v1640_v17 }
 0xab8   : > { %4480 = vmatpush3.bf16.xpose.msra.mxu0 %v1760_v19  ;;  %4481 = vmatprep.mubr.msk.bf16.mxu0 %vm4940_vm1, %v4939_v0 }
 0xab9   : > { %1634 = vrot.lane.b32.xlu0 %v1554_v13, %s5936_s5  ;;  %4491 = vmatprep.subr.bf16.mxu0 %v4939_v0 }
 0xb27   : > { %v1632_v22 = vpop.permute.xlu0 %1631  ;;  %v1638_v27 = vpop.permute.xlu1 %1637 }
 0xb28   : > { %v1641_v23 = vpack.c.bf16 %v1632_v22, %v1632_v22  ;;  %v1643_v28 = vpack.c.bf16 %v1638_v27, %v1638_v27 }
 0xb2a   : > { %4476 = vmatmul.mubr.msk.bf16.vlgmr.msra.gmra.mrb[24].mxu1 %vm944_vm2, %v1641_v23 }
 0xb2b   : > { %4486 = vmatpush3.bf16.xpose.msra.mxu1 %v1806_v24  ;;  %v1635_v25 = vpop.permute.xlu0 %1634  ;;  %4487 = vmatprep.mubr.msk.bf16.mxu1 %vm4940_vm1, %v4939_v0 }
 0xb2c   : > { %v1642_v26 = vpack.c.bf16 %v1635_v25, %v1635_v25  ;;  %4497 = vmatprep.subr.bf16.mxu1 %v4939_v0 }
 0xb2e   : > { %4482 = vmatmul.mubr.msk.bf16.vlgmr.msra.gmra.mrb[28].mxu0 %vm944_vm2, %v1642_v26 }
 0xb2f   : > { %4493 = vmatprep.mubr.msk.bf16.mxu0 %vm4940_vm1, %v4939_v0 }
 0xb32   : > { %4488 = vmatmul.mubr.msk.bf16.vlgmr.msra.gmra.mrb[28].mxu1 %vm944_vm2, %v1643_v28 }
 0xb33   : > { %4499 = vmatprep.mubr.msk.bf16.mxu1 %vm4940_vm1, %v4939_v0 }
 0xb8a   : > { %v1704_v30 = vpop.f32.mrb[24].mxu0 }
 0xb8b   : > { %v1705_v31 = vadd.f32 %v4138_v29, %v1704_v30  ;;  %v4471_v32 = vpop.f32.mrb[25].mxu0 }
 0xb8c   : > { %v1707_v33 = vpop.f32.mrb[26].mxu0 }
 0xb8d   : > { %v4472_v34 = vpop.f32.mrb[27].mxu0  ;;  %v1848_v35 = vsel %vm944_vm2, %v1705_v31, -inf }
 0xb8e   : > { %1849 = vmax.xlane.f32.xlu0 %v1848_v35 }
 0xbfd   : > { %v1750_v36 = vpop.f32.mrb[24].mxu1 }
 0xbfe   : > { %v1751_v38 = vadd.f32 %v4138_v29, %v1750_v36  ;;  %v4477_v39 = vpop.f32.mrb[25].mxu1 }
 0xbff   : > { %v1753_v40 = vpop.f32.mrb[26].mxu1  ;;  %v4764_v39 = vld [vmem:[%s5859_s16] sm:$0xff]  }
 0xc00   : > { %v4478_v41 = vpop.f32.mrb[27].mxu1  ;;  %v1851_v42 = vsel %vm944_vm2, %v1751_v38, -inf }
 0xc01   : > { %1852 = vmax.xlane.f32.xlu1 %v1851_v42  ;;  %v1796_v43 = vpop.f32.mrb[28].mxu0 }
 0xc02   : > { %v1797_v46 = vadd.f32 %v4138_v29, %v1796_v43  ;;  %v4483_v16 = vpop.f32.mrb[29].mxu0 }
 0xc03   : > { %v1799_v48 = vpop.f32.mrb[30].mxu0 }
 0xc04   : > { %v4484_v49 = vpop.f32.mrb[31].mxu0  ;;  %v1854_v51 = vsel %vm944_vm2, %v1797_v46, -inf }
 0xc05   : > { %v1842_v52 = vpop.f32.mrb[28].mxu1  ;;  %1855 = vmax.xlane.f32.xlu0 %v1854_v51 }
 0xc06   : > { %v1843_v53 = vadd.f32 %v4138_v29, %v1842_v52  ;;  %v4489_v54 = vpop.f32.mrb[29].mxu1 }
 0xc07   : > { %v1845_v44 = vpop.f32.mrb[30].mxu1 }
 0xc08   : > { %v4490_v55 = vpop.f32.mrb[31].mxu1  ;;  %v1857_v47 = vsel %vm944_vm2, %v1843_v53, -inf  ;;  %v4765_v44 = vld [vmem:[%s5859_s16 + $0x8] sm:$0xff]  }
 0xc09   : > { %1858 = vmax.xlane.f32.xlu0 %v1857_v47 }
 0xc1b   : > { %v1850_v45 = vpop.xlane.xlu0 %1849 }
 0xc1c   : > { %v1860_v56 = vsub.f32 %v1705_v31, %v1850_v45 }
 0xc1e   : > { %v1864_v57 = vmul.f32 1.442695, %v1860_v56 }
 0xc20   : > { %4812 = vpow2.f32 %v1864_v57 }
 0xc2a   : > { %v4813_v58 = vpop.eup %4812 }
 0xc2b   : > { %v1872_v59 = vsel %vm944_vm2, %v4813_v58, 0.0 }
 0xc2c   : > { %1873 = vadd.xlane.f32.xlu0 %v1872_v59 }
 0xc8e   : > { %v1853_v60 = vpop.xlane.xlu1 %1852 }
 0xc8f   : > { %v1861_v62 = vsub.f32 %v1751_v38, %v1853_v60 }
 0xc91   : > { %v1866_v63 = vmul.f32 1.442695, %v1861_v62 }
 0xc92   : > { %v1856_v1 = vpop.xlane.xlu0 %1855 }
 0xc93   : > { %4814 = vpow2.f32 %v1866_v63  ;;  %v1862_v2 = vsub.f32 %v1797_v46, %v1856_v1 }
 0xc95   : > { %v1868_v3 = vmul.f32 1.442695, %v1862_v2 }
 0xc96   : > { %v1859_v10 = vpop.xlane.xlu0 %1858 }
 0xc97   : > { %4816 = vpow2.f32 %v1868_v3  ;;  %v1863_v12 = vsub.f32 %v1843_v53, %v1859_v10  ;;  %v4150_v3 = vld [vmem:[%s5860_s17] ss:$0 sm:$0xff] }
 0xc99   : > { %v1870_v13 = vmul.f32 1.442695, %v1863_v12 }
 0xc9b   : > { %4818 = vpow2.f32 %v1870_v13 }
 0xc9d   : > { %v4815_v5 = vpop.eup %4814 }
 0xc9e   : > { %v1875_v6 = vsel %vm944_vm2, %v4815_v5, 0.0 }
 0xc9f   : > { %1876 = vadd.xlane.f32.xlu1 %v1875_v6 }
 0xca1   : > { %v4817_v8 = vpop.eup %4816 }
 0xca2   : > { %v1878_v9 = vsel %vm944_vm2, %v4817_v8, 0.0 }
 0xca3   : > { %1879 = vadd.xlane.f32.xlu0 %v1878_v9 }
 0xca5   : > { %v4819_v14 = vpop.eup %4818 }
 0xca6   : > { %v1881_v15 = vsel %vm944_vm2, %v4819_v14, 0.0 }
 0xcb0   : > { %1946 = vrot.lane.b32.xlu1 %v5332_v7, %s5940_s8 }
 0xcb4   : > { %1995 = vrot.lane.b32.xlu1 %v5340_v11, %s5940_s8 }
 0xcb9   : > { %1897 = vrot.lane.b32.xlu0 %v5326_v4, %s5940_s8  ;;  %v1874_v17 = vpop.xlane.xlu0 %1873 }
 0xcba   : > { %4820 = vrcp.f32 %v1874_v17 }
 0xcc4   : > { %v4821_v18 = vpop.eup %4820 }
 0xcc5   : > { %v1888_v20 = vmul.f32 %v4821_v18, %v4813_v58  ;;  %v4766_v18 = vld [vmem:[%s5861_s18] sm:$0xff]  }
 0xcc7   : > { %v1892_v25 = vpack.c.bf16 %v1888_v20, %v1888_v20 }
 0xcd8   : > { %1882 = vadd.xlane.f32.xlu1 %v1881_v15 }
 0xce9   : > { %2044 = vrot.lane.b32.xlu1 %v5351_v21, %s5940_s8 }
 0xd2c   : > { %v1877_v7 = vpop.xlane.xlu1 %1876 }
 0xd2d   : > { %4822 = vrcp.f32 %v1877_v7 }
 0xd30   : > { %v1947_v11 = vpop.permute.xlu1 %1946  ;;  %v1880_v19 = vpop.xlane.xlu0 %1879 }
 0xd31   : > { %v1952_v4 = vsel %vm1191_vm4, %v1947_v11, 0  ;;  %4824 = vrcp.f32 %v1880_v19 }
 0xd32   : > { %4498 = vmatpush3.bf16.msra.mxu1 %v1952_v4 }
 0xd33   : > { %4509 = vmatprep.subr.bf16.mxu1 %v4939_v0 }
 0xd34   : > { %v1898_v22 = vpop.permute.xlu0 %1897  ;;  %v1996_v24 = vpop.permute.xlu1 %1995 }
 0xd35   : > { %v1903_v23 = vsel %vm1191_vm4, %v1898_v22, 0  ;;  %v2001_v27 = vsel %vm1191_vm4, %v1996_v24, 0  ;;  %v4153_v22 = vld [vmem:[%s5930_s29 + $0x2] ss:$0 sm:$0xff] }
 0xd36   : > { %4492 = vmatpush3.bf16.msra.mxu0 %v1903_v23  ;;  %v4154_v24 = vld [vmem:[%s5932_s24 + $0x2] ss:$0 sm:$0xff] }
 0xd37   : > { %v4823_v21 = vpop.eup %4822  ;;  %4503 = vmatprep.subr.bf16.mxu0 %v4939_v0 }
 0xd38   : > { %v1889_v26 = vmul.f32 %v4823_v21, %v4815_v5 }
 0xd39   : > { %4494 = vmatmul.mubr.msk.bf16.vlgmr.msra.gmra.mrb[32].mxu0 %vm944_vm2, %v1892_v25 }
 0xd3a   : > { %4504 = vmatpush3.bf16.msra.mxu0 %v2001_v27  ;;  %v1893_v28 = vpack.c.bf16 %v1889_v26, %v1889_v26  ;;  %4505 = vmatprep.mubr.msk.bf16.mxu0 %vm4940_vm1, %v4939_v0  ;;  %v4768_v27 = vld [vmem:[%s5863_s20] sm:$0xff]  }
 0xd3b   : > { %v4825_v29 = vpop.eup %4824  ;;  %4515 = vmatprep.subr.bf16.mxu0 %v4939_v0 }
 0xd3c   : > { %v1890_v30 = vmul.f32 %v4825_v29, %v4817_v8  ;;  %4500 = vmatmul.mubr.msk.bf16.vlgmr.msra.gmra.mrb[32].mxu1 %vm944_vm2, %v1893_v28  ;;  %v4769_v28 = vld [vmem:[%s5863_s20 + $0x8] sm:$0xff]   ;;  %v4770_v29 = vld [vmem:[%s5863_s20 + $0x10] sm:$0xff]  }
 0xd3d   : > { %4511 = vmatprep.mubr.msk.bf16.mxu1 %vm4940_vm1, %v4939_v0 }
 0xd3e   : > { %v1894_v31 = vpack.c.bf16 %v1890_v30, %v1890_v30  ;;  %v4771_v30 = vld [vmem:[%s5863_s20 + $0x18] sm:$0xff]  }
 0xd41   : > { %4506 = vmatmul.mubr.msk.bf16.vlgmr.msra.gmra.mrb[36].mxu0 %vm944_vm2, %v1894_v31  ;;  %v4155_v31 = vld [vmem:[%s5862_s19] ss:$0 sm:$0xff] }
 0xd42   : > { %4519 = vmatprep.mubr.msk.bf16.mxu0 %vm4940_vm1, %v4939_v0  ;;  %4516 = vmatpush3.bf16.msra.mxu0 %v4764_v39 }
 0xd43   : > { %4517 = vmatprep.subr.bf16.mxu0 %v4939_v0 }
 0xd46   : > { %4518 = vmatpush3.bf16.msra.mxu0 %v4765_v44 }
 0xd47   : > { %4531 = vmatprep.subr.bf16.mxu0 %v4939_v0 }
 0xd65   : > { %v1883_v32 = vpop.xlane.xlu1 %1882 }
 0xd66   : > { %4826 = vrcp.f32 %v1883_v32 }
 0xd69   : > { %v2045_v33 = vpop.permute.xlu1 %2044 }
 0xd6a   : > { %v2050_v34 = vsel %vm1191_vm4, %v2045_v33, 0 }
 0xd6b   : > { %4510 = vmatpush3.bf16.msra.mxu1 %v2050_v34 }
 0xd6c   : > { %4523 = vmatprep.subr.bf16.mxu1 %v4939_v0 }
 0xd70   : > { %v4827_v35 = vpop.eup %4826 }
 0xd71   : > { %v1891_v36 = vmul.f32 %v4827_v35, %v4819_v14 }
 0xd73   : > { %v1895_v38 = vpack.c.bf16 %v1891_v36, %v1891_v36 }
 0xd75   : > { %4512 = vmatmul.mubr.msk.bf16.vlgmr.msra.gmra.mrb[36].mxu1 %vm944_vm2, %v1895_v38 }
 0xd76   : > { %4527 = vmatprep.mubr.msk.bf16.mxu1 %vm4940_vm1, %v4939_v0  ;;  %4524 = vmatpush3.bf16.msra.mxu1 %v4766_v18 }
 0xd77   : > { %4525 = vmatprep.subr.bf16.mxu1 %v4939_v0 }
 0xe0c   : > { %v1939_v40 = vpop.f32.mrb[32].mxu0 }
 0xe0d   : > { %v4495_v41 = vpop.f32.mrb[33].mxu0 }
 0xe0e   : > { %v1942_v42 = vpop.f32.mrb[34].mxu0 }
 0xe0f   : > { %v4496_v43 = vpop.f32.mrb[35].mxu0  ;;  %v1988_v46 = vpop.f32.mrb[32].mxu1 }
 0xe10   : > { %v4501_v16 = vpop.f32.mrb[33].mxu1  ;;  %2093 = vrot.lane.b32.xlu0 %v1988_v46, %s5941_s30 }
 0xe11   : > { %v1991_v48 = vpop.f32.mrb[34].mxu1  ;;  %v4164_v16 = vld [vmem:[%s5864_s21] ss:$0 sm:$0xff] }
 0xe12   : > { %v4502_v49 = vpop.f32.mrb[35].mxu1 }
 0xe14   : > { %v2037_v51 = vpop.f32.mrb[36].mxu0 }
 0xe15   : > { %2097 = vrot.lane.b32.xlu1 %v2037_v51, %s5942_s2  ;;  %v4507_v52 = vpop.f32.mrb[37].mxu0 }
 0xe16   : > { %v2040_v53 = vpop.f32.mrb[38].mxu0 }
 0xe17   : > { %v4508_v54 = vpop.f32.mrb[39].mxu0 }
 0xe48   : > { %v2086_v55 = vpop.f32.mrb[36].mxu1 }
 0xe49   : > { %2101 = vrot.lane.b32.xlu0 %v2086_v55, %s5943_s3  ;;  %v4513_v47 = vpop.f32.mrb[37].mxu1 }
 0xe4a   : > { %v2089_v45 = vpop.f32.mrb[38].mxu1 }
 0xe4b   : > { %v4514_v56 = vpop.f32.mrb[39].mxu1 }
 0xe82   : > { %v2094_v57 = vpop.permute.xlu0 %2093 }
 0xe83   : > { %v2104_v59 = vsel %vm944_vm2, %v1939_v40, %v2094_v57  ;;  %v4772_v57 = vld [vmem:[%s5929_s4 + $0x10] sm:$0xff]  }
 0xe87   : > { %v2098_v58 = vpop.permute.xlu1 %2097 }
 0xe88   : > { %v2105_v60 = vsel %vm1392_vm5, %v2104_v59, %v2098_v58  ;;  %v4773_v58 = vld [vmem:[%s5929_s4 + $0x18] sm:$0xff]  }
 0xebb   : > { %v2102_v62 = vpop.permute.xlu0 %2101 }
 0xebc   : > { %v2106_v63 = vsel %vm1394_vm6, %v2105_v60, %v2102_v62 }
 0xebd   : > { %v2107_v1 = vpack.c.bf16 %v2106_v63, %v2106_v63 }
 0xebf   : > { %4520 = vmatmul.mubr.msk.bf16.vlgmr.msra.gmra.mrb[40].mxu0 %vm798_vm0, %v2107_v1  ;;  %v4167_v1 = vld [vmem:[%s5930_s29 + $0x3] ss:$0 sm:$0xff] }
 0xec0   : > { %4539 = vmatprep.mubr.msk.bf16.mxu0 %vm4940_vm1, %v4939_v0  ;;  %4532 = vmatpush3.bf16.msra.mxu0 %v4768_v27 }
 0xec1   : > { %4533 = vmatprep.subr.bf16.mxu0 %v4939_v0 }
 0xec4   : > { %4534 = vmatpush3.bf16.msra.mxu0 %v4769_v28 }
 0xec5   : > { %4535 = vmatprep.subr.bf16.mxu0 %v4939_v0 }
 0xec8   : > { %4536 = vmatpush3.bf16.msra.mxu0 %v4770_v29 }
 0xec9   : > { %4537 = vmatprep.subr.bf16.mxu0 %v4939_v0 }
 0xecc   : > { %4538 = vmatpush3.bf16.msra.mxu0 %v4771_v30 }
 0xecd   : > { %4557 = vmatprep.subr.bf16.mxu0 %v4939_v0 }
 0xf92   : > { %v2157_v2 = vpop.f32.mrb[40].mxu0 }
 0xf93   : > { %v2163_v5 = vadd.f32 %v2157_v2, %v5279_v37  ;;  %v4521_v6 = vpop.f32.mrb[41].mxu0  ;;  %v4767_v37 = vld [vmem:[%s5861_s18 + $0x8] sm:$0xff]  }
 0xf94   : > { %v2160_v8 = vpop.f32.mrb[42].mxu0  ;;  %4526 = vmatpush3.bf16.msra.mxu1 %v4767_v37 }
 0xf95   : > { %v2171_v9 = vadd.f32 %v4150_v3, %v2163_v5  ;;  %v4522_v10 = vpop.f32.mrb[43].mxu0  ;;  %4543 = vmatprep.subr.bf16.mxu1 %v4939_v0  ;;  %v4168_v3 = vld [vmem:[%s5932_s24 + $0x3] ss:$0 sm:$0xff] }
 0xf97   : > { %v2176_v12 = vsel %vm798_vm0, %v2171_v9, 0.0 }
 0xf98   : > { %2177 = vadd.xlane.f32.xlu1 %v2176_v12 }
0x1025   : > { %v2178_v13 = vpop.xlane.xlu1 %2177 }
0x1026   : > { %v2179_v14 = vmul.f32 0.03125, %v2178_v13 }
0x1028   : > { %v2180_v15 = vsub.f32 %v2171_v9, %v2179_v14 }
0x102a   : > { %v2181_v17 = vmul.f32 %v2180_v15, %v2180_v15 }
0x102c   : > { %v2182_v7 = vsel %vm798_vm0, %v2181_v17, 0.0 }
0x102d   : > { %2183 = vadd.xlane.f32.xlu0 %v2182_v7 }
0x10ba   : > { %v2184_v11 = vpop.xlane.xlu0 %2183 }
0x10bb   : > { %v2185_v19 = vmul.f32 0.03125, %v2184_v11 }
0x10bd   : > { %v2186_v4 = vadd.f32 1e-05, %v2185_v19 }
0x10bf   : > { %4828 = vrsqrt.f32 %v2186_v4 }
0x10c9   : > { %v4829_v20 = vpop.eup %4828 }
0x10ca   : > { %v2188_v23 = vmul.f32 %v4829_v20, %v2180_v15 }
0x10cc   : > { %v2195_v21 = vmul.f32 %v4153_v22, %v2188_v23 }
0x10ce   : > { %v2202_v25 = vadd.f32 %v4154_v24, %v2195_v21 }
0x10d0   : > { %v2203_v26 = vpack.c.bf16 %v2202_v25, %v2202_v25 }
0x10d2   : > { %4528 = vmatmul.mubr.msk.bf16.vlgmr.msra.gmra.mrb[40].mxu1 %vm798_vm0, %v2203_v26 }
0x10d3   : > { %4547 = vmatprep.mubr.msk.bf16.mxu1 %vm4940_vm1, %v4939_v0  ;;  %4544 = vmatpush3.bf16.msra.mxu1 %v4772_v57 }
0x10d4   : > { %4545 = vmatprep.subr.bf16.mxu1 %v4939_v0 }
0x10d7   : > { %4546 = vmatpush3.bf16.msra.mxu1 %v4773_v58 }
0x10d8   : > { %4551 = vmatprep.subr.bf16.mxu1 %v4939_v0 }
0x11a5   : > { %v2264_v32 = vpop.f32.mrb[40].mxu1 }
0x11a6   : > { %v2265_v33 = vadd.f32 %v4155_v31, %v2264_v32  ;;  %v4529_v34 = vpop.f32.mrb[41].mxu1 }
0x11a7   : > { %v2267_v35 = vpop.f32.mrb[42].mxu1 }
0x11a8   : > { %v2271_v36 = vmul.f32 0.70710677, %v2265_v33  ;;  %v4530_v38 = vpop.f32.mrb[43].mxu1  ;;  %v2270_v40 = vmul.f32 0.5, %v2265_v33 }
0x11aa   : > { %4830 = verf.f32 %v2271_v36 }
0x11b4   : > { %v4831_v39 = vpop.eup %4830 }
0x11b5   : > { %v2273_v41 = vadd.f32 1.0, %v4831_v39 }
0x11b7   : > { %v2274_v42 = vmul.f32 %v2273_v41, %v2270_v40 }
0x11b9   : > { %v2275_v43 = vpack.c.bf16 %v2274_v42, %v2274_v42 }
0x11bb   : > { %4540 = vmatmul.mubr.msk.bf16.vlgmr.msra.gmra.mrb[44].mxu0 %vm2308_vm7, %v2275_v43 }
0x11bc   : > { %4559 = vmatprep.mubr.msk.bf16.mxu0 %vm4940_vm1, %v4939_v0 }
0x128e   : > { %v2346_v46 = vpop.f32.mrb[44].mxu0 }
0x128f   : > { %v2352_v48 = vadd.f32 %v2346_v46, %v2171_v9  ;;  %v4541_v49 = vpop.f32.mrb[45].mxu0  ;;  %v4174_v9 = vld [vmem:[%s5852_s9 + $0x1] ss:$0 sm:$0xff] }
0x1290   : > { %v2349_v51 = vpop.f32.mrb[46].mxu0 }
0x1291   : > { %v5473_v52 = vadd.f32 %v4164_v16, %v2352_v48  ;;  %v4542_v53 = vpop.f32.mrb[47].mxu0 }
0x1293   : > { %v2365_v54 = vsel %vm798_vm0, %v5473_v52, 0.0 }
0x1294   : > { %2366 = vadd.xlane.f32.xlu0 %v2365_v54 }
0x1321   : > { %v2367_v44 = vpop.xlane.xlu0 %2366 }
0x1322   : > { %v2368_v55 = vmul.f32 0.03125, %v2367_v44 }
0x1324   : > { %v2369_v47 = vsub.f32 %v5473_v52, %v2368_v55 }
0x1326   : > { %v2370_v45 = vmul.f32 %v2369_v47, %v2369_v47 }
0x1328   : > { %v2371_v56 = vsel %vm798_vm0, %v2370_v45, 0.0 }
0x1329   : > { %2372 = vadd.xlane.f32.xlu0 %v2371_v56 }
0x13b6   : > { %v2373_v59 = vpop.xlane.xlu0 %2372 }
0x13b7   : > { %v2374_v60 = vmul.f32 0.03125, %v2373_v59 }
0x13b9   : > { %v2375_v62 = vadd.f32 1e-05, %v2374_v60 }
0x13bb   : > { %4832 = vrsqrt.f32 %v2375_v62 }
0x13c5   : > { %v4833_v63 = vpop.eup %4832 }
0x13c6   : > { %v2377_v2 = vmul.f32 %v4833_v63, %v2369_v47 }
0x13c8   : > { %v2384_v5 = vmul.f32 %v4167_v1, %v2377_v2 }
0x13ca   : > { %v2391_v6 = vadd.f32 %v4168_v3, %v2384_v5 }
0x13cc   : > { %v2392_v8 = vpack.c.bf16 %v2391_v6, %v2391_v6 }
0x13ce   : > { %4548 = vmatmul.mubr.msk.bf16.vlgmr.msra.gmra.mrb[44].mxu1 %vm798_vm0, %v2392_v8 }
0x13cf   : > { %4553 = vmatprep.mubr.msk.bf16.mxu1 %vm4940_vm1, %v4939_v0 }
0x14a1   : > { %v2455_v10 = vpop.f32.mrb[44].mxu1 }
0x14a2   : > { %v2456_v12 = vadd.f32 %v4174_v9, %v2455_v10  ;;  %v4549_v13 = vpop.f32.mrb[45].mxu1 }
0x14a3   : > { %v2458_v14 = vpop.f32.mrb[46].mxu1 }
0x14a4   : > { %2470 = vrot.lane.b32.xlu0 %v2456_v12, %s5936_s5  ;;  %2467 = vrot.lane.b32.xlu1 %v2456_v12, %s5937_s28  ;;  %v4550_v15 = vpop.f32.mrb[47].mxu1  ;;  %v5502_v17 = vpack.c.bf16 %v2456_v12, %v2456_v12 }
0x14a8   : > { %2473 = vrot.lane.b32.xlu1 %v2456_v12, %s5938_s25 }
0x14ac   : > { %2481 = vrot.lane.b32.xlu1 %v5502_v17, %s5940_s8 }
0x1516   : > { %v2471_v7 = vpop.permute.xlu0 %2470  ;;  %v2468_v18 = vpop.permute.xlu1 %2467 }
0x1517   : > { %v5506_v37 = vpack.c.bf16 %v2471_v7, %v2471_v7  ;;  %v5508_v11 = vpack.c.bf16 %v2468_v18, %v2468_v18 }
0x1519   : > { %2579 = vrot.lane.b32.xlu0 %v5506_v37, %s5940_s8  ;;  %2530 = vrot.lane.b32.xlu1 %v5508_v11, %s5940_s8 }
0x151a   : > { %v2474_v19 = vpop.permute.xlu1 %2473 }
0x151b   : > { %v5514_v4 = vpack.c.bf16 %v2474_v19, %v2474_v19 }
0x151d   : > { %2628 = vrot.lane.b32.xlu1 %v5514_v4, %s5940_s8 }
0x151e   : > { %v2482_v20 = vpop.permute.xlu1 %2481 }
0x151f   : > { %v2487_v22 = vsel %vm944_vm2, %v2482_v20, 0 }
0x1520   : > { %4552 = vmatpush3.bf16.xpose.msra.mxu1 %v2487_v22 }
0x1521   : > { %4563 = vmatprep.subr.bf16.mxu1 %v4939_v0 }
0x1527   : > { %4554 = vmatmul.mubr.msk.bf16.vlgmr.msra.gmra.mrb[48].mxu1 %vm944_vm2, %v5502_v17 }
0x1528   : > { %4565 = vmatprep.mubr.msk.bf16.mxu1 %vm4940_vm1, %v4939_v0 }
0x158b   : > { %v2580_v23 = vpop.permute.xlu0 %2579  ;;  %v2531_v24 = vpop.permute.xlu1 %2530 }
0x158c   : > { %v2585_v21 = vsel %vm944_vm2, %v2580_v23, 0  ;;  %v2536_v25 = vsel %vm944_vm2, %v2531_v24, 0 }
0x158d   : > { %4558 = vmatpush3.bf16.xpose.msra.mxu0 %v2536_v25  ;;  %4564 = vmatpush3.bf16.xpose.msra.mxu1 %v2585_v21 }
0x158e   : > { %4569 = vmatprep.subr.bf16.mxu0 %v4939_v0  ;;  %4575 = vmatprep.subr.bf16.mxu1 %v4939_v0 }
0x158f   : > { %v2629_v26 = vpop.permute.xlu1 %2628 }
0x1590   : > { %v2634_v27 = vsel %vm944_vm2, %v2629_v26, 0 }
0x1594   : > { %4560 = vmatmul.mubr.msk.bf16.vlgmr.msra.gmra.mrb[48].mxu0 %vm944_vm2, %v5508_v11  ;;  %4566 = vmatmul.mubr.msk.bf16.vlgmr.msra.gmra.mrb[52].mxu1 %vm944_vm2, %v5506_v37 }
0x1595   : > { %4570 = vmatpush3.bf16.xpose.msra.mxu0 %v2634_v27  ;;  %4571 = vmatprep.mubr.msk.bf16.mxu0 %vm4940_vm1, %v4939_v0 }
0x1596   : > { %4581 = vmatprep.subr.bf16.mxu0 %v4939_v0  ;;  %4577 = vmatprep.mubr.msk.bf16.mxu1 %vm4940_vm1, %v4939_v0 }
0x159c   : > { %4572 = vmatmul.mubr.msk.bf16.vlgmr.msra.gmra.mrb[52].mxu0 %vm944_vm2, %v5514_v4 }
0x159d   : > { %4583 = vmatprep.mubr.msk.bf16.mxu0 %vm4940_vm1, %v4939_v0 }
0x15fa   : > { %v2523_v28 = vpop.f32.mrb[48].mxu1 }
0x15fb   : > { %v2524_v29 = vadd.f32 %v2523_v28, %v5217_v61  ;;  %v4555_v30 = vpop.f32.mrb[49].mxu1 }
0x15fc   : > { %v2526_v31 = vpop.f32.mrb[50].mxu1 }
0x15fd   : > { %v4556_v32 = vpop.f32.mrb[51].mxu1  ;;  %v2676_v33 = vsel %vm944_vm2, %v2524_v29, -inf }
0x15fe   : > { %2677 = vmax.xlane.f32.xlu0 %v2676_v33 }
0x1667   : > { %v2572_v34 = vpop.f32.mrb[48].mxu0  ;;  %v2621_v35 = vpop.f32.mrb[52].mxu1 }
0x1668   : > { %v2573_v36 = vadd.f32 %v2572_v34, %v5217_v61  ;;  %v2622_v38 = vadd.f32 %v2621_v35, %v5217_v61  ;;  %v4561_v39 = vpop.f32.mrb[49].mxu0  ;;  %v4567_v40 = vpop.f32.mrb[53].mxu1  ;;  %v4774_v35 = vld [vmem:[%s5853_s10 + $0x10] sm:$0xff]  }
0x1669   : > { %v2575_v41 = vpop.f32.mrb[50].mxu0  ;;  %v2624_v42 = vpop.f32.mrb[54].mxu1 }
0x166a   : > { %v4562_v43 = vpop.f32.mrb[51].mxu0  ;;  %v4568_v46 = vpop.f32.mrb[55].mxu1  ;;  %v2682_v16 = vsel %vm944_vm2, %v2622_v38, -inf  ;;  %v2679_v48 = vsel %vm944_vm2, %v2573_v36, -inf }
0x166b   : > { %2683 = vmax.xlane.f32.xlu0 %v2682_v16  ;;  %2680 = vmax.xlane.f32.xlu1 %v2679_v48 }
0x166f   : > { %v2670_v49 = vpop.f32.mrb[52].mxu0 }
0x1670   : > { %v2671_v51 = vadd.f32 %v2670_v49, %v5217_v61  ;;  %v4573_v53 = vpop.f32.mrb[53].mxu0 }
0x1671   : > { %v2673_v54 = vpop.f32.mrb[54].mxu0  ;;  %v4775_v53 = vld [vmem:[%s5853_s10 + $0x18] sm:$0xff]  }
0x1672   : > { %v4574_v44 = vpop.f32.mrb[55].mxu0  ;;  %v2685_v55 = vsel %vm944_vm2, %v2671_v51, -inf }
0x1673   : > { %2686 = vmax.xlane.f32.xlu0 %v2685_v55 }
0x168b   : > { %v2678_v47 = vpop.xlane.xlu0 %2677 }
0x168c   : > { %v2688_v45 = vsub.f32 %v2524_v29, %v2678_v47 }
0x168e   : > { %v2692_v56 = vmul.f32 1.442695, %v2688_v45 }
0x1690   : > { %4834 = vpow2.f32 %v2692_v56 }
0x169a   : > { %v4835_v57 = vpop.eup %4834 }
0x169b   : > { %v2700_v58 = vsel %vm944_vm2, %v4835_v57, 0.0 }
0x169c   : > { %2701 = vadd.xlane.f32.xlu0 %v2700_v58 }
0x16f8   : > { %v2684_v59 = vpop.xlane.xlu0 %2683  ;;  %v2681_v60 = vpop.xlane.xlu1 %2680 }
0x16f9   : > { %v2690_v62 = vsub.f32 %v2622_v38, %v2684_v59  ;;  %v2689_v63 = vsub.f32 %v2573_v36, %v2681_v60 }
0x16fb   : > { %v2696_v1 = vmul.f32 1.442695, %v2690_v62  ;;  %v2694_v61 = vmul.f32 1.442695, %v2689_v63 }
0x16fd   : > { %4836 = vpow2.f32 %v2696_v1  ;;  %v4194_v1 = vld [vmem:[%s5854_s11 + $0x1] ss:$0 sm:$0xff] }
0x16fe   : > { %4838 = vpow2.f32 %v2694_v61 }
0x1700   : > { %v2687_v8 = vpop.xlane.xlu0 %2686 }
0x1701   : > { %v2691_v9 = vsub.f32 %v2671_v51, %v2687_v8 }
0x1703   : > { %v2698_v10 = vmul.f32 1.442695, %v2691_v9 }
0x1705   : > { %4840 = vpow2.f32 %v2698_v10 }
0x1707   : > { %v4837_v2 = vpop.eup %4836 }
0x1708   : > { %v4839_v3 = vpop.eup %4838  ;;  %v2706_v5 = vsel %vm944_vm2, %v4837_v2, 0.0 }
0x1709   : > { %v2703_v6 = vsel %vm944_vm2, %v4839_v3, 0.0  ;;  %2707 = vadd.xlane.f32.xlu0 %v2706_v5 }
0x170a   : > { %2704 = vadd.xlane.f32.xlu1 %v2703_v6 }
0x170f   : > { %v4841_v12 = vpop.eup %4840 }
0x1710   : > { %v2709_v13 = vsel %vm944_vm2, %v4841_v12, 0.0 }
0x171b   : > { %2772 = vrot.lane.b32.xlu1 %v5508_v11, %s5944_s23 }
0x171f   : > { %2820 = vrot.lane.b32.xlu1 %v5506_v37, %s5944_s23  ;;  %2724 = vrot.lane.b32.xlu0 %v5502_v17, %s5944_s23 }
0x1729   : > { %v2702_v14 = vpop.xlane.xlu0 %2701 }
0x172a   : > { %4842 = vrcp.f32 %v2702_v14 }
0x1734   : > { %v4843_v15 = vpop.eup %4842 }
0x1735   : > { %v2716_v37 = vmul.f32 %v4843_v15, %v4835_v57  ;;  %v4777_v15 = vld [vmem:[%s5857_s14 + $0x18] sm:$0xff]  }
0x1737   : > { %v2720_v22 = vpack.c.bf16 %v2716_v37, %v2716_v37 }
0x1743   : > { %2710 = vadd.xlane.f32.xlu1 %v2709_v13 }
0x1754   : > { %2868 = vrot.lane.b32.xlu1 %v5514_v4, %s5944_s23  ;;  %s5945_s23 = sld [smem:[#allocation23_spill]] }
0x1796   : > { %v2708_v7 = vpop.xlane.xlu0 %2707 }
0x1797   : > { %v2705_v18 = vpop.xlane.xlu1 %2704  ;;  %4844 = vrcp.f32 %v2708_v7  ;;  %v4778_v7 = vld [vmem:[%s5855_s12 + $0x10] sm:$0xff]  }
0x1798   : > { %4846 = vrcp.f32 %v2705_v18  ;;  %v4779_v18 = vld [vmem:[%s5855_s12 + $0x18] sm:$0xff]  }
0x179a   : > { %v2725_v17 = vpop.permute.xlu0 %2724 }
0x179b   : > { %v2773_v11 = vpop.permute.xlu1 %2772  ;;  %v2730_v19 = vsel %vm1191_vm4, %v2725_v17, 0 }
0x179c   : > { %v2778_v20 = vsel %vm1191_vm4, %v2773_v11, 0  ;;  %4576 = vmatpush3.bf16.msra.mxu1 %v2730_v19  ;;  %v4197_v19 = vld [vmem:[%s5930_s29 + $0x4] ss:$0 sm:$0xff] }
0x179d   : > { %4582 = vmatpush3.bf16.msra.mxu0 %v2778_v20  ;;  %4587 = vmatprep.subr.bf16.mxu1 %v4939_v0 }
0x179e   : > { %4593 = vmatprep.subr.bf16.mxu0 %v4939_v0 }
0x179f   : > { %v2821_v4 = vpop.permute.xlu1 %2820  ;;  %4578 = vmatmul.mubr.msk.bf16.vlgmr.msra.gmra.mrb[56].mxu1 %vm944_vm2, %v2720_v22  ;;  %v4198_v22 = vld [vmem:[%s5932_s24 + $0x4] ss:$0 sm:$0xff] }
0x17a0   : > { %v2826_v23 = vsel %vm1191_vm4, %v2821_v4, 0  ;;  %4589 = vmatprep.mubr.msk.bf16.mxu1 %vm4940_vm1, %v4939_v0 }
0x17a1   : > { %v4845_v24 = vpop.eup %4844  ;;  %4588 = vmatpush3.bf16.msra.mxu1 %v2826_v23 }
0x17a2   : > { %v4847_v21 = vpop.eup %4846  ;;  %v2718_v25 = vmul.f32 %v4845_v24, %v4837_v2  ;;  %4599 = vmatprep.subr.bf16.mxu1 %v4939_v0 }
0x17a3   : > { %v2717_v26 = vmul.f32 %v4847_v21, %v4839_v3  ;;  %v4213_v21 = vld [vmem:[%s5858_s15 + $0x1] ss:$0 sm:$0xff] }
0x17a4   : > { %v2722_v27 = vpack.c.bf16 %v2718_v25, %v2718_v25 }
0x17a5   : > { %v2721_v28 = vpack.c.bf16 %v2717_v26, %v2717_v26 }
0x17a7   : > { %4584 = vmatmul.mubr.msk.bf16.vlgmr.msra.gmra.mrb[56].mxu0 %vm944_vm2, %v2721_v28  ;;  %4590 = vmatmul.mubr.msk.bf16.vlgmr.msra.gmra.mrb[60].mxu1 %vm944_vm2, %v2722_v27 }
0x17a8   : > { %4595 = vmatprep.mubr.msk.bf16.mxu0 %vm4940_vm1, %v4939_v0  ;;  %4603 = vmatprep.mubr.msk.bf16.mxu1 %vm4940_vm1, %v4939_v0 }
0x17a9   : > { %4600 = vmatpush3.bf16.msra.mxu1 %v4774_v35 }
0x17aa   : > { %4601 = vmatprep.subr.bf16.mxu1 %v4939_v0 }
0x17ad   : > { %4602 = vmatpush3.bf16.msra.mxu1 %v4775_v53 }
0x17ae   : > { %4615 = vmatprep.subr.bf16.mxu1 %v4939_v0 }
0x17d0   : > { %v2711_v29 = vpop.xlane.xlu1 %2710 }
0x17d1   : > { %4848 = vrcp.f32 %v2711_v29 }
0x17d4   : > { %v2869_v30 = vpop.permute.xlu1 %2868 }
0x17d5   : > { %v2874_v31 = vsel %vm1191_vm4, %v2869_v30, 0 }
0x17d6   : > { %4594 = vmatpush3.bf16.msra.mxu0 %v2874_v31 }
0x17d7   : > { %4607 = vmatprep.subr.bf16.mxu0 %v4939_v0 }
0x17db   : > { %v4849_v32 = vpop.eup %4848 }
0x17dc   : > { %v2719_v33 = vmul.f32 %v4849_v32, %v4841_v12 }
0x17de   : > { %v2723_v34 = vpack.c.bf16 %v2719_v33, %v2719_v33 }
0x17e0   : > { %4596 = vmatmul.mubr.msk.bf16.vlgmr.msra.gmra.mrb[60].mxu0 %vm944_vm2, %v2723_v34 }
0x17e1   : > { %4611 = vmatprep.mubr.msk.bf16.mxu0 %vm4940_vm1, %v4939_v0  ;;  %4608 = vmatpush3.bf16.msra.mxu0 %v4778_v7 }
0x17e2   : > { %4609 = vmatprep.subr.bf16.mxu0 %v4939_v0 }
0x17e5   : > { %4610 = vmatpush3.bf16.msra.mxu0 %v4779_v18 }
0x17e6   : > { %4623 = vmatprep.subr.bf16.mxu0 %v4939_v0 }
0x1872   : > { %v2766_v36 = vpop.f32.mrb[56].mxu1 }
0x1873   : > { %v4579_v38 = vpop.f32.mrb[57].mxu1 }
0x1874   : > { %v2769_v39 = vpop.f32.mrb[58].mxu1 }
0x1875   : > { %v4580_v40 = vpop.f32.mrb[59].mxu1 }
0x187a   : > { %v2814_v41 = vpop.f32.mrb[56].mxu0  ;;  %v2862_v42 = vpop.f32.mrb[60].mxu1 }
0x187b   : > { %2917 = vrot.lane.b32.xlu0 %v2814_v41, %s5941_s30  ;;  %v4585_v43 = vpop.f32.mrb[57].mxu0  ;;  %2921 = vrot.lane.b32.xlu1 %v2862_v42, %s5942_s2  ;;  %v4591_v46 = vpop.f32.mrb[61].mxu1 }
0x187c   : > { %v2817_v16 = vpop.f32.mrb[58].mxu0  ;;  %v2865_v48 = vpop.f32.mrb[62].mxu1 }
0x187d   : > { %v4586_v49 = vpop.f32.mrb[59].mxu0  ;;  %v4592_v51 = vpop.f32.mrb[63].mxu1 }
0x18b3   : > { %v2910_v54 = vpop.f32.mrb[60].mxu0 }
0x18b4   : > { %2925 = vrot.lane.b32.xlu0 %v2910_v54, %s5943_s3  ;;  %v4597_v44 = vpop.f32.mrb[61].mxu0 }
0x18b5   : > { %v2913_v55 = vpop.f32.mrb[62].mxu0 }
0x18b6   : > { %v4598_v47 = vpop.f32.mrb[63].mxu0 }
0x18ed   : > { %v2918_v45 = vpop.permute.xlu0 %2917  ;;  %v2922_v57 = vpop.permute.xlu1 %2921 }
0x18ee   : > { %v2928_v56 = vsel %vm944_vm2, %v2766_v36, %v2918_v45  ;;  %v4204_v36 = vld [vmem:[%s5856_s13 + $0x1] ss:$0 sm:$0xff] }
0x18ef   : > { %v2929_v58 = vsel %vm1392_vm5, %v2928_v56, %v2922_v57  ;;  %v4874_v57 = vld [vmem:[%s5369_s27] ss:$0 sm:$0xff] }
0x1926   : > { %v2926_v59 = vpop.permute.xlu0 %2925 }
0x1927   : > { %v2930_v60 = vsel %vm1394_vm6, %v2929_v58, %v2926_v59 }
0x1928   : > { %v2931_v62 = vpack.c.bf16 %v2930_v60, %v2930_v60 }
0x192a   : > { %4604 = vmatmul.mubr.msk.bf16.vlgmr.msra.gmra.mrb[64].mxu1 %vm798_vm0, %v2931_v62 }
0x192b   : > { %4619 = vmatprep.mubr.msk.bf16.mxu1 %vm4940_vm1, %v4939_v0 }
0x19fd   : > { %v2981_v63 = vpop.f32.mrb[64].mxu1 }
0x19fe   : > { %v2987_v61 = vadd.f32 %v2981_v63, %v5473_v52  ;;  %v4605_v2 = vpop.f32.mrb[65].mxu1  ;;  %v4776_v52 = vld [vmem:[%s5857_s14 + $0x10] sm:$0xff]  }
0x19ff   : > { %v2984_v3 = vpop.f32.mrb[66].mxu1  ;;  %4616 = vmatpush3.bf16.msra.mxu1 %v4776_v52 }
0x1a00   : > { %v5603_v5 = vadd.f32 %v4194_v1, %v2987_v61  ;;  %v4606_v6 = vpop.f32.mrb[67].mxu1  ;;  %4617 = vmatprep.subr.bf16.mxu1 %v4939_v0 }
0x1a02   : > { %v3001_v8 = vsel %vm798_vm0, %v5603_v5, 0.0 }
0x1a03   : > { %3002 = vadd.xlane.f32.xlu1 %v3001_v8  ;;  %4618 = vmatpush3.bf16.msra.mxu1 %v4777_v15 }
0x1a04   : > { %4629 = vmatprep.subr.bf16.mxu1 %v4939_v0 }
0x1a06   : > { %4620 = vmatmul.mubr.msk.bf16.vlgmr.msra.gmra.mrb[68].mxu1 %vm798_vm0, %v5297_v50 }
0x1a07   : > { %4631 = vmatprep.mubr.msk.bf16.mxu1 %vm4940_vm1, %v4939_v0 }
0x1a90   : > { %v3003_v9 = vpop.xlane.xlu1 %3002 }
0x1a91   : > { %v3004_v10 = vmul.f32 0.03125, %v3003_v9 }
0x1a93   : > { %v3005_v12 = vsub.f32 %v5603_v5, %v3004_v10 }
0x1a95   : > { %v3006_v13 = vmul.f32 %v3005_v12, %v3005_v12 }
0x1a97   : > { %v3007_v14 = vsel %vm798_vm0, %v3006_v13, 0.0 }
0x1a98   : > { %3008 = vadd.xlane.f32.xlu0 %v3007_v14 }
0x1ad9   : > { %v3156_v25 = vpop.f32.mrb[68].mxu1 }
0x1ada   : > { %v3157_v26 = vadd.f32 %v4213_v21, %v3156_v25  ;;  %v4621_v27 = vpop.f32.mrb[69].mxu1 }
0x1adb   : > { %v3159_v28 = vpop.f32.mrb[70].mxu1 }
0x1adc   : > { %3182 = vrot.lane.b32.xlu0 %v3157_v26, %s5937_s28  ;;  %v4622_v29 = vpop.f32.mrb[71].mxu1  ;;  %3185 = vrot.lane.b32.xlu1 %v3157_v26, %s5936_s5  ;;  %v3191_v30 = vpack.c.bf16 %v3157_v26, %v3157_v26 }
0x1ade   : > { %v3199_v31 = vsel %vm944_vm2, %v3191_v30, 0 }
0x1ae0   : > { %3188 = vrot.lane.b32.xlu0 %v3157_v26, %s5938_s25 }
0x1b25   : > { %v3009_v37 = vpop.xlane.xlu0 %3008 }
0x1b26   : > { %v3010_v17 = vmul.f32 0.03125, %v3009_v37 }
0x1b28   : > { %v3011_v50 = vadd.f32 1e-05, %v3010_v17 }
0x1b2a   : > { %4850 = vrsqrt.f32 %v3011_v50 }
0x1b34   : > { %v4851_v11 = vpop.eup %4850 }
0x1b35   : > { %v3013_v20 = vmul.f32 %v4851_v11, %v3005_v12 }
0x1b37   : > { %v3020_v4 = vmul.f32 %v4197_v19, %v3013_v20 }
0x1b39   : > { %v3027_v23 = vadd.f32 %v4198_v22, %v3020_v4 }
0x1b3b   : > { %v3028_v24 = vpack.c.bf16 %v3027_v23, %v3027_v23 }
0x1b3d   : > { %4612 = vmatmul.mubr.msk.bf16.vlgmr.msra.gmra.mrb[64].mxu0 %vm798_vm0, %v3028_v24 }
0x1b3e   : > { %4625 = vmatprep.mubr.msk.bf16.mxu0 %vm4940_vm1, %v4939_v0  ;;  %4624 = vmatpush3.bf16.xpose.msra.mxu0 %v3199_v31 }
0x1b3f   : > { %4635 = vmatprep.subr.bf16.mxu0 %v4939_v0 }
0x1b4e   : > { %v3183_v32 = vpop.permute.xlu0 %3182  ;;  %v3186_v35 = vpop.permute.xlu1 %3185 }
0x1b4f   : > { %v5646_v33 = vpack.c.bf16 %v3183_v32, %v3183_v32  ;;  %v5654_v38 = vpack.c.bf16 %v3186_v35, %v3186_v35 }
0x1b51   : > { %v3245_v34 = vsel %vm944_vm2, %v5646_v33, 0  ;;  %v3291_v16 = vsel %vm944_vm2, %v5654_v38, 0 }
0x1b52   : > { %4630 = vmatpush3.bf16.xpose.msra.mxu1 %v3245_v34  ;;  %v3189_v48 = vpop.permute.xlu0 %3188 }
0x1b53   : > { %4641 = vmatprep.subr.bf16.mxu1 %v4939_v0  ;;  %v5665_v49 = vpack.c.bf16 %v3189_v48, %v3189_v48 }
0x1b55   : > { %v3337_v54 = vsel %vm944_vm2, %v5665_v49, 0 }
0x1c10   : > { %v3091_v39 = vpop.f32.mrb[64].mxu0 }
0x1c11   : > { %v3092_v40 = vadd.f32 %v4204_v36, %v3091_v39  ;;  %v4613_v41 = vpop.f32.mrb[65].mxu0 }
0x1c12   : > { %v3094_v42 = vpop.f32.mrb[66].mxu0 }
0x1c13   : > { %v3177_v43 = vpack.c.bf16 %v3092_v40, %v3092_v40  ;;  %3174 = vrot.lane.b32.xlu0 %v3092_v40, %s5938_s25  ;;  %3168 = vrot.lane.b32.xlu1 %v3092_v40, %s5937_s28  ;;  %v4614_v46 = vpop.f32.mrb[67].mxu0  ;;  %s5946_s28 = sld [smem:[#allocation6_spill]]  ;;  %s5947_s25 = sld [smem:[#allocation9_spill]] }
0x1c15   : > { %4626 = vmatmul.mubr.msk.bf16.vlgmr.msra.gmra.mrb[68].mxu0 %vm944_vm2, %v3177_v43 }
0x1c16   : > { %4636 = vmatpush3.bf16.xpose.msra.mxu0 %v3291_v16  ;;  %4637 = vmatprep.mubr.msk.bf16.mxu0 %vm4940_vm1, %v4939_v0 }
0x1c17   : > { %3171 = vrot.lane.b32.xlu1 %v3092_v40, %s5936_s5  ;;  %4647 = vmatprep.subr.bf16.mxu0 %v4939_v0 }
0x1c19   : > { %s761_s6 = sand.u32 1, %s5946_s28   ;;  %s4271_s4 = sshll.u32 %s5947_s25, 7 }
0x1c1a   : > { %s4102_s1 = sshll.u32 %s761_s6, 3  ;;  %s3996_s28 = scalar_lea.sflag [#allocation3], %s761_s6 }
0x1c1b   : > { %s763_s27 = scalar_lea.vmem [#allocation2], %s4102_s1  ;;  %s4949_s1 = smov [#allocation2]  }
0x1c1c   : > { %s4879_s7 = sshll.u32 %s4949_s1, 4  ;;  %s4880_s7 = int_to_ptr.vmem [resolvable:$false] %s4879_s7 }
0x1c1d   : > { %s4881_s0 = scalar_lea.vmem %s4880_s7, 256 }
0x1c85   : > { %v3169_v51 = vpop.permute.xlu1 %3168  ;;  %v3175_v47 = vpop.permute.xlu0 %3174 }
0x1c86   : > { %v3178_v53 = vpack.c.bf16 %v3169_v51, %v3169_v51  ;;  %v3180_v45 = vpack.c.bf16 %v3175_v47, %v3175_v47 }
0x1c88   : > { %4632 = vmatmul.mubr.msk.bf16.vlgmr.msra.gmra.mrb[72].mxu1 %vm944_vm2, %v3178_v53 }
0x1c89   : > { %4642 = vmatpush3.bf16.xpose.msra.mxu1 %v3337_v54  ;;  %v3172_v44 = vpop.permute.xlu1 %3171  ;;  %4643 = vmatprep.mubr.msk.bf16.mxu1 %vm4940_vm1, %v4939_v0 }
0x1c8a   : > { %v3179_v55 = vpack.c.bf16 %v3172_v44, %v3172_v44  ;;  %4653 = vmatprep.subr.bf16.mxu1 %v4939_v0 }
0x1c8c   : > { %4638 = vmatmul.mubr.msk.bf16.vlgmr.msra.gmra.mrb[72].mxu0 %vm944_vm2, %v3179_v55 }
0x1c8d   : > { %4649 = vmatprep.mubr.msk.bf16.mxu0 %vm4940_vm1, %v4939_v0 }
0x1c90   : > { %4644 = vmatmul.mubr.msk.bf16.vlgmr.msra.gmra.mrb[76].mxu1 %vm944_vm2, %v3180_v45 }
0x1c91   : > { %4655 = vmatprep.mubr.msk.bf16.mxu1 %vm4940_vm1, %v4939_v0 }
0x1ce8   : > { %v3235_v56 = vpop.f32.mrb[68].mxu0 }
0x1ce9   : > { %v3236_v58 = vadd.f32 %v4874_v57, %v3235_v56  ;;  %v4627_v59 = vpop.f32.mrb[69].mxu0 }
0x1cea   : > { %v3238_v60 = vpop.f32.mrb[70].mxu0 }
0x1ceb   : > { %v4628_v62 = vpop.f32.mrb[71].mxu0  ;;  %v3379_v63 = vsel %vm944_vm2, %v3236_v58, -inf }
0x1cec   : > { %3380 = vmax.xlane.f32.xlu1 %v3379_v63 }
0x1cfd   : > { %3428 = vrot.lane.b32.xlu1 %v3191_v30, %s5940_s8 }
0x1d5b   : > { %v3281_v1 = vpop.f32.mrb[72].mxu1 }
0x1d5c   : > { %v3282_v61 = vadd.f32 %v4874_v57, %v3281_v1  ;;  %v4633_v2 = vpop.f32.mrb[73].mxu1 }
0x1d5d   : > { %v3284_v3 = vpop.f32.mrb[74].mxu1 }
0x1d5e   : > { %v4634_v6 = vpop.f32.mrb[75].mxu1  ;;  %v3382_v8 = vsel %vm944_vm2, %v3282_v61, -inf }
0x1d5f   : > { %3383 = vmax.xlane.f32.xlu0 %v3382_v8  ;;  %v3327_v9 = vpop.f32.mrb[72].mxu0  ;;  %v4780_v6 = vld [vmem:[%s5859_s16 + $0x10] sm:$0xff]   ;;  %v4781_v8 = vld [vmem:[%s5859_s16 + $0x18] sm:$0xff]  }
0x1d60   : > { %v3328_v10 = vadd.f32 %v4874_v57, %v3327_v9  ;;  %v4639_v12 = vpop.f32.mrb[73].mxu0 }
0x1d61   : > { %v3330_v13 = vpop.f32.mrb[74].mxu0 }
0x1d62   : > { %v4640_v14 = vpop.f32.mrb[75].mxu0  ;;  %v3385_v52 = vsel %vm944_vm2, %v3328_v10, -inf }
0x1d63   : > { %v3373_v15 = vpop.f32.mrb[76].mxu1  ;;  %3386 = vmax.xlane.f32.xlu0 %v3385_v52 }
0x1d64   : > { %v3374_v7 = vadd.f32 %v4874_v57, %v3373_v15  ;;  %v4645_v18 = vpop.f32.mrb[77].mxu1 }
0x1d65   : > { %v3376_v37 = vpop.f32.mrb[78].mxu1 }
0x1d66   : > { %v4646_v17 = vpop.f32.mrb[79].mxu1  ;;  %v3388_v50 = vsel %vm944_vm2, %v3374_v7, -inf }
0x1d67   : > { %3389 = vmax.xlane.f32.xlu0 %v3388_v50 }
0x1d79   : > { %v3381_v11 = vpop.xlane.xlu1 %3380 }
0x1d7a   : > { %v3391_v19 = vsub.f32 %v3236_v58, %v3381_v11 }
0x1d7c   : > { %v3395_v20 = vmul.f32 1.442695, %v3391_v19 }
0x1d7d   : > { %v3429_v22 = vpop.permute.xlu1 %3428 }
0x1d7e   : > { %4852 = vpow2.f32 %v3395_v20  ;;  %v3434_v4 = vsel %vm1191_vm4, %v3429_v22, 0 }
0x1d7f   : > { %4648 = vmatpush3.bf16.msra.mxu0 %v3434_v4 }
0x1d80   : > { %4659 = vmatprep.subr.bf16.mxu0 %v4939_v0 }
0x1d88   : > { %v4853_v23 = vpop.eup %4852 }
0x1d89   : > { %v3403_v24 = vsel %vm944_vm2, %v4853_v23, 0.0 }
0x1d8a   : > { %3404 = vadd.xlane.f32.xlu1 %v3403_v24 }
0x1dec   : > { %v3384_v21 = vpop.xlane.xlu0 %3383 }
0x1ded   : > { %v3392_v25 = vsub.f32 %v3282_v61, %v3384_v21 }
0x1def   : > { %v3397_v26 = vmul.f32 1.442695, %v3392_v25  ;;  %v4233_v25 = vld [vmem:[%s5860_s17 + $0x1] ss:$0 sm:$0xff] }
0x1df0   : > { %v3387_v27 = vpop.xlane.xlu0 %3386 }
0x1df1   : > { %4854 = vpow2.f32 %v3397_v26  ;;  %v3393_v28 = vsub.f32 %v3328_v10, %v3387_v27 }
0x1df3   : > { %v3399_v29 = vmul.f32 1.442695, %v3393_v28 }
0x1df4   : > { %v3390_v30 = vpop.xlane.xlu0 %3389 }
0x1df5   : > { %4856 = vpow2.f32 %v3399_v29  ;;  %v3394_v31 = vsub.f32 %v3374_v7, %v3390_v30 }
0x1df7   : > { %v3401_v32 = vmul.f32 1.442695, %v3394_v31 }
0x1df9   : > { %4858 = vpow2.f32 %v3401_v32 }
0x1dfb   : > { %v4855_v34 = vpop.eup %4854 }
0x1dfc   : > { %v3406_v35 = vsel %vm944_vm2, %v4855_v34, 0.0 }
0x1dfd   : > { %3407 = vadd.xlane.f32.xlu0 %v3406_v35 }
0x1dff   : > { %v4857_v36 = vpop.eup %4856 }
0x1e00   : > { %v3409_v39 = vsel %vm944_vm2, %v4857_v36, 0.0 }
0x1e01   : > { %3410 = vadd.xlane.f32.xlu1 %v3409_v39 }
0x1e03   : > { %v4859_v40 = vpop.eup %4858 }
0x1e04   : > { %v3412_v41 = vsel %vm944_vm2, %v4859_v40, 0.0 }
0x1e05   : > { %3413 = vadd.xlane.f32.xlu0 %v3412_v41 }
0x1e12   : > { %3526 = vrot.lane.b32.xlu1 %v5654_v38, %s5940_s8 }
0x1e16   : > { %3575 = vrot.lane.b32.xlu1 %v5665_v49, %s5940_s8 }
0x1e17   : > { %v3405_v42 = vpop.xlane.xlu1 %3404 }
0x1e18   : > { %4860 = vrcp.f32 %v3405_v42 }
0x1e1b   : > { %3477 = vrot.lane.b32.xlu0 %v5646_v33, %s5940_s8  ;;  %s4009_s8 = sshll.u32 %s763_s27, 4  ;;  %s5803_s8 = int_to_ptr.vmem [resolvable:$true] %s4009_s8 }
0x1e1c   : > { %s4875_s25 = scalar_lea.vmem %s5803_s8, 128  ;;  %p4882_p0 = scmp.lt.s32.totalorder %s5803_s8, %s4880_s7 }
0x1e1d   : > { %p4876_p11 = scmp.ne.s32.totalorder %s5803_s8, %s4875_s25  ;;  %p4883_p1 = scmp.lt.s32.totalorder %s4881_s0, %s4875_s25 }
0x1e1f   : > { %p4877_p12 = pnand %p4876_p11, %p5113_p5  ;;  %p4884_p2 = por %p4883_p1, %p4882_p0 }
0x1e21   : > { %p4878_p13 = pneg %p4877_p12 }
0x1e22   : > { %v4861_v43 = vpop.eup %4860 }
0x1e23   : > { %v3419_v46 = vmul.f32 %v4861_v43, %v4853_v23  ;;  %p4885_p3 = pnand %p4884_p2, %p4878_p13 }
0x1e25   : > { %v3423_v16 = vpack.c.bf16 %v3419_v46, %v3419_v46 }
0x1e27   : > { %4650 = vmatmul.mubr.msk.bf16.vlgmr.msra.gmra.mrb[76].mxu0 %vm944_vm2, %v3423_v16  ;;  %v4236_v16 = vld [vmem:[%s5930_s29 + $0x5] ss:$0 sm:$0xff] }
0x1e28   : > { %4661 = vmatprep.mubr.msk.bf16.mxu0 %vm4940_vm1, %v4939_v0 }
0x1e8a   : > { %v3408_v48 = vpop.xlane.xlu0 %3407 }
0x1e8b   : > { %4862 = vrcp.f32 %v3408_v48 }
0x1e8e   : > { %v3411_v51 = vpop.xlane.xlu1 %3410 }
0x1e8f   : > { %4864 = vrcp.f32 %v3411_v51  ;;  %v4237_v51 = vld [vmem:[%s5932_s24 + $0x5] ss:$0 sm:$0xff] }
0x1e92   : > { %v3527_v38 = vpop.permute.xlu1 %3526  ;;  %v3414_v53 = vpop.xlane.xlu0 %3413 }
0x1e93   : > { %v3532_v49 = vsel %vm1191_vm4, %v3527_v38, 0  ;;  %4866 = vrcp.f32 %v3414_v53 }
0x1e94   : > { %4660 = vmatpush3.bf16.msra.mxu0 %v3532_v49 }
0x1e95   : > { %v4863_v54 = vpop.eup %4862  ;;  %4671 = vmatprep.subr.bf16.mxu0 %v4939_v0 }
0x1e96   : > { %v3420_v33 = vmul.f32 %v4863_v54, %v4855_v34  ;;  %v3478_v44 = vpop.permute.xlu0 %3477  ;;  %v3576_v47 = vpop.permute.xlu1 %3575  ;;  %v4784_v54 = vld [vmem:[%s5863_s20 + $0x20] sm:$0xff]  }
0x1e97   : > { %v3483_v55 = vsel %vm1191_vm4, %v3478_v44, 0  ;;  %v3581_v58 = vsel %vm1191_vm4, %v3576_v47, 0  ;;  %v4786_v44 = vld [vmem:[%s5863_s20 + $0x30] sm:$0xff]   ;;  %v4243_v47 = vld [vmem:[%s5862_s19 + $0x1] ss:$0 sm:$0xff] }
0x1e98   : > { %4654 = vmatpush3.bf16.msra.mxu1 %v3483_v55  ;;  %v3424_v45 = vpack.c.bf16 %v3420_v33, %v3420_v33  ;;  %v4785_v33 = vld [vmem:[%s5863_s20 + $0x28] sm:$0xff]   ;;  %v4787_v55 = vld [vmem:[%s5863_s20 + $0x38] sm:$0xff]  }
0x1e99   : > { %v4865_v56 = vpop.eup %4864  ;;  %4665 = vmatprep.subr.bf16.mxu1 %v4939_v0 }
0x1e9a   : > { %v3421_v57 = vmul.f32 %v4865_v56, %v4857_v36 }
0x1e9b   : > { %4656 = vmatmul.mubr.msk.bf16.vlgmr.msra.gmra.mrb[80].mxu1 %vm944_vm2, %v3424_v45 }
0x1e9c   : > { %4666 = vmatpush3.bf16.msra.mxu1 %v3581_v58  ;;  %v3425_v59 = vpack.c.bf16 %v3421_v57, %v3421_v57  ;;  %4667 = vmatprep.mubr.msk.bf16.mxu1 %vm4940_vm1, %v4939_v0 }
0x1e9d   : > { %v4867_v60 = vpop.eup %4866  ;;  %4679 = vmatprep.subr.bf16.mxu1 %v4939_v0 }
0x1e9e   : > { %v3422_v62 = vmul.f32 %v4867_v60, %v4859_v40  ;;  %4662 = vmatmul.mubr.msk.bf16.vlgmr.msra.gmra.mrb[80].mxu0 %vm944_vm2, %v3425_v59  ;;  %v4782_v40 = vld [vmem:[%s5861_s18 + $0x10] sm:$0xff]  }
0x1e9f   : > { %4675 = vmatprep.mubr.msk.bf16.mxu0 %vm4940_vm1, %v4939_v0  ;;  %4672 = vmatpush3.bf16.msra.mxu0 %v4780_v6  ;;  %v4261_v6 = vld [vmem:[%s5864_s21 + $0x1] ss:$0 sm:$0xff] }
0x1ea0   : > { %v3426_v63 = vpack.c.bf16 %v3422_v62, %v3422_v62  ;;  %4673 = vmatprep.subr.bf16.mxu0 %v4939_v0 }
0x1ea3   : > { %4668 = vmatmul.mubr.msk.bf16.vlgmr.msra.gmra.mrb[84].mxu1 %vm944_vm2, %v3426_v63  ;;  %4674 = vmatpush3.bf16.msra.mxu0 %v4781_v8 }
0x1ea4   : > { %4683 = vmatprep.mubr.msk.bf16.mxu1 %vm4940_vm1, %v4939_v0  ;;  %4687 = vmatprep.subr.bf16.mxu0 %v4939_v0 }
0x1ea5   : > { %4680 = vmatpush3.bf16.msra.mxu1 %v4782_v40 }
0x1ea6   : > { %4681 = vmatprep.subr.bf16.mxu1 %v4939_v0 }
0x1efa   : > { %v3470_v1 = vpop.f32.mrb[76].mxu0 }
0x1efb   : > { %v4651_v61 = vpop.f32.mrb[77].mxu0 }
0x1efc   : > { %v3473_v2 = vpop.f32.mrb[78].mxu0 }
0x1efd   : > { %v4652_v3 = vpop.f32.mrb[79].mxu0 }
0x1f6e   : > { %v3519_v9 = vpop.f32.mrb[80].mxu1 }
0x1f6f   : > { %3624 = vrot.lane.b32.xlu1 %v3519_v9, %s5941_s30  ;;  %v4657_v10 = vpop.f32.mrb[81].mxu1  ;;  %s5948_s30 = sld [smem:[#allocation18_spill]] }
0x1f70   : > { %v3522_v12 = vpop.f32.mrb[82].mxu1 }
0x1f71   : > { %v4658_v13 = vpop.f32.mrb[83].mxu1  ;;  %v3568_v14 = vpop.f32.mrb[80].mxu0 }
0x1f72   : > { %3628 = vrot.lane.b32.xlu0 %v3568_v14, %s5942_s2  ;;  %v4663_v52 = vpop.f32.mrb[81].mxu0 }
0x1f73   : > { %v3571_v15 = vpop.f32.mrb[82].mxu0 }
0x1f74   : > { %v4664_v7 = vpop.f32.mrb[83].mxu0 }
0x1f76   : > { %v3617_v18 = vpop.f32.mrb[84].mxu1 }
0x1f77   : > { %3632 = vrot.lane.b32.xlu1 %v3617_v18, %s5943_s3  ;;  %v4669_v37 = vpop.f32.mrb[85].mxu1  ;;  %s5952_s3 = sld [smem:[#allocation25_spill]] }
0x1f78   : > { %v3620_v17 = vpop.f32.mrb[86].mxu1 }
0x1f79   : > { %v4670_v50 = vpop.f32.mrb[87].mxu1  ;;  %v4788_v17 = vld [vmem:[%s5945_s23] sm:$0xff]  }
0x1f7a   : > { %v4789_v50 = vld [vmem:[%s5945_s23 + $0x8] sm:$0xff]  }
0x1fe1   : > { %v3625_v11 = vpop.permute.xlu1 %3624 }
0x1fe2   : > { %v3635_v20 = vsel %vm944_vm2, %v3470_v1, %v3625_v11 }
0x1fe4   : > { %v3629_v19 = vpop.permute.xlu0 %3628 }
0x1fe5   : > { %v3636_v22 = vsel %vm1392_vm5, %v3635_v20, %v3629_v19 }
0x1fe9   : > { %v3633_v4 = vpop.permute.xlu1 %3632 }
0x1fea   : > { %v3637_v23 = vsel %vm1394_vm6, %v3636_v22, %v3633_v4  ;;  %v4264_v4 = vld [vmem:[%s5948_s30 + $0x1] ss:$0 sm:$0xff] }
0x1feb   : > { %v3638_v24 = vpack.c.bf16 %v3637_v23, %v3637_v23 }
0x1fed   : > { %4676 = vmatmul.mubr.msk.bf16.vlgmr.msra.gmra.mrb[84].mxu0 %vm798_vm0, %v3638_v24  ;;  %v4265_v24 = vld [vmem:[%s5949_s22 + $0x1] ss:$0 sm:$0xff]  ;;  %s5801_s22 = scalar_lea.hbm %s5952_s3, %s4271_s4 }
0x1fee   : > { %4695 = vmatprep.mubr.msk.bf16.mxu0 %vm4940_vm1, %v4939_v0  ;;  %4688 = vmatpush3.bf16.msra.mxu0 %v4784_v54 }
0x1fef   : > { %4689 = vmatprep.subr.bf16.mxu0 %v4939_v0 }
0x1ff2   : > { %4690 = vmatpush3.bf16.msra.mxu0 %v4785_v33 }
0x1ff3   : > { %4691 = vmatprep.subr.bf16.mxu0 %v4939_v0 }
0x1ff6   : > { %4692 = vmatpush3.bf16.msra.mxu0 %v4786_v44 }
0x1ff7   : > { %4693 = vmatprep.subr.bf16.mxu0 %v4939_v0 }
0x1ffa   : > { %4694 = vmatpush3.bf16.msra.mxu0 %v4787_v55 }
0x20c0   : > { %v3688_v21 = vpop.f32.mrb[84].mxu0 }
0x20c1   : > { %v3694_v26 = vadd.f32 %v3688_v21, %v5603_v5  ;;  %v4677_v27 = vpop.f32.mrb[85].mxu0  ;;  %v4783_v5 = vld [vmem:[%s5861_s18 + $0x18] sm:$0xff]  }
0x20c2   : > { %v3691_v28 = vpop.f32.mrb[86].mxu0  ;;  %4682 = vmatpush3.bf16.msra.mxu1 %v4783_v5 }
0x20c3   : > { %v3703_v29 = vadd.f32 %v4233_v25, %v3694_v26  ;;  %v4678_v30 = vpop.f32.mrb[87].mxu0  ;;  %4699 = vmatprep.subr.bf16.mxu1 %v4939_v0 }
0x20c5   : > { %v3708_v31 = vsel %vm798_vm0, %v3703_v29, 0.0 }
0x20c6   : > { %3709 = vadd.xlane.f32.xlu0 %v3708_v31 }
0x2153   : > { %v3710_v32 = vpop.xlane.xlu0 %3709 }
0x2154   : > { %v3711_v34 = vmul.f32 0.03125, %v3710_v32 }
0x2156   : > { %v3712_v35 = vsub.f32 %v3703_v29, %v3711_v34 }
0x2158   : > { %v3713_v36 = vmul.f32 %v3712_v35, %v3712_v35 }
0x215a   : > { %v3714_v39 = vsel %vm798_vm0, %v3713_v36, 0.0 }
0x215b   : > { %3715 = vadd.xlane.f32.xlu1 %v3714_v39 }
0x21e8   : > { %v3716_v41 = vpop.xlane.xlu1 %3715 }
0x21e9   : > { %v3717_v42 = vmul.f32 0.03125, %v3716_v41 }
0x21eb   : > { %v3718_v43 = vadd.f32 1e-05, %v3717_v42 }
0x21ed   : > { %4868 = vrsqrt.f32 %v3718_v43 }
0x21f7   : > { %v4869_v46 = vpop.eup %4868 }
0x21f8   : > { %v3720_v48 = vmul.f32 %v4869_v46, %v3712_v35 }
0x21fa   : > { %v3727_v38 = vmul.f32 %v4236_v16, %v3720_v48 }
0x21fc   : > { %v3734_v53 = vadd.f32 %v4237_v51, %v3727_v38 }
0x21fe   : > { %v3735_v49 = vpack.c.bf16 %v3734_v53, %v3734_v53 }
0x2200   : > { %4684 = vmatmul.mubr.msk.bf16.vlgmr.msra.gmra.mrb[88].mxu1 %vm798_vm0, %v3735_v49 }
0x2201   : > { %4703 = vmatprep.mubr.msk.bf16.mxu1 %vm4940_vm1, %v4939_v0  ;;  %4700 = vmatpush3.bf16.msra.mxu1 %v4788_v17 }
0x2202   : > { %4701 = vmatprep.subr.bf16.mxu1 %v4939_v0  ;;  %v4266_v0 = vld [vmem:[%s5950_s26] ss:$0 sm:$0xff] }
0x2205   : > { %4702 = vmatpush3.bf16.msra.mxu1 %v4789_v50 }
0x22d3   : > { %v3798_v45 = vpop.f32.mrb[88].mxu1 }
0x22d4   : > { %v3799_v56 = vadd.f32 %v4243_v47, %v3798_v45  ;;  %v4685_v57 = vpop.f32.mrb[89].mxu1 }
0x22d5   : > { %v3801_v58 = vpop.f32.mrb[90].mxu1 }
0x22d6   : > { %v3805_v59 = vmul.f32 0.70710677, %v3799_v56  ;;  %v4686_v60 = vpop.f32.mrb[91].mxu1  ;;  %v3804_v63 = vmul.f32 0.5, %v3799_v56 }
0x22d8   : > { %4870 = verf.f32 %v3805_v59 }
0x22e2   : > { %v4871_v62 = vpop.eup %4870 }
0x22e3   : > { %v3807_v1 = vadd.f32 1.0, %v4871_v62 }
0x22e5   : > { %v3808_v61 = vmul.f32 %v3807_v1, %v3804_v63 }
0x22e7   : > { %v3809_v2 = vpack.c.bf16 %v3808_v61, %v3808_v61 }
0x22e9   : > { %4696 = vmatmul.mubr.msk.bf16.vlgmr.msra.gmra.mrb[88].mxu0 %vm2308_vm7, %v3809_v2 }
0x23bc   : > { %v3880_v3 = vpop.f32.mrb[88].mxu0 }
0x23bd   : > { %v3886_v8 = vadd.f32 %v3880_v3, %v3703_v29  ;;  %v4697_v9 = vpop.f32.mrb[89].mxu0 }
0x23be   : > { %v3883_v10 = vpop.f32.mrb[90].mxu0 }
0x23bf   : > { %v3895_v12 = vadd.f32 %v4261_v6, %v3886_v8  ;;  %v4698_v13 = vpop.f32.mrb[91].mxu0 }
0x23c1   : > { %v3900_v14 = vsel %vm798_vm0, %v3895_v12, 0.0 }
0x23c2   : > { %3901 = vadd.xlane.f32.xlu0 %v3900_v14 }
0x244f   : > { %v3902_v52 = vpop.xlane.xlu0 %3901 }
0x2450   : > { %v3903_v15 = vmul.f32 0.03125, %v3902_v52 }
0x2452   : > { %v3904_v7 = vsub.f32 %v3895_v12, %v3903_v15 }
0x2454   : > { %v3905_v18 = vmul.f32 %v3904_v7, %v3904_v7 }
0x2456   : > { %v3906_v37 = vsel %vm798_vm0, %v3905_v18, 0.0 }
0x2457   : > { %3907 = vadd.xlane.f32.xlu0 %v3906_v37 }
0x24e4   : > { %v3908_v11 = vpop.xlane.xlu0 %3907 }
0x24e5   : > { %v3909_v19 = vmul.f32 0.03125, %v3908_v11 }
0x24e7   : > { %v3910_v20 = vadd.f32 1e-05, %v3909_v19 }
0x24e9   : > { %4872 = vrsqrt.f32 %v3910_v20 }
0x24f3   : > { %v4873_v22 = vpop.eup %4872 }
0x24f4   : > { %v3912_v23 = vmul.f32 %v4873_v22, %v3904_v7 }
0x24f6   : > { %v3919_v21 = vmul.f32 %v4264_v4, %v3912_v23 }
0x24f8   : > { %v3926_v25 = vadd.f32 %v4265_v24, %v3919_v21 }
0x24fa   : > { %v3927_v26 = vpack.c.bf16 %v3926_v25, %v3926_v25 }
0x24fc   : > { %4704 = vmatmul.mubr.msk.bf16.vlgmr.msra.gmra.mrb[92].mxu1 %vm798_vm0, %v3927_v26 }
0x25cf   : > { %v3988_v27 = vpop.f32.mrb[92].mxu1 }
0x25d0   : > { %v3989_v28 = vadd.f32 %v4266_v0, %v3988_v27  ;;  %v4705_v29 = vpop.f32.mrb[93].mxu1 }
0x25d1   : > { %v3991_v30 = vpop.f32.mrb[94].mxu1 }
0x25d2   : > { %3994 = vst [vmem:[%s763_s27] sm:$0xff] %v3989_v28  ;;  %v4706_v31 = vpop.f32.mrb[95].mxu1 }
0x25d3   : > { %4888 = shalt.err (!%p4885_p3)
}
0x25d4   : > { %s4889_s4 = scalar_lea.hbm %s5801_s22, 128  ;;  %s4893_s27 = scalar_lea.hbm %s5952_s3, 256 }
0x25d5   : > { %p4890_p4 = scmp.ne.s32.totalorder %s5801_s22, %s4889_s4  ;;  %p4894_p9 = scmp.lt.u32.totalorder %s5801_s22, %s5952_s3 }
0x25d6   : > { %p4895_p10 = scmp.lt.u32.totalorder %s4893_s27, %s4889_s4  ;;  %p4897_p12 = scmp.lt.u32.totalorder %s4889_s4, %s5801_s22 }
0x25d7   : > { %p4891_p7 = pnand %p4890_p4, %p5113_p5 }
0x25d8   : > { %p4896_p11 = por %p4895_p10, %p4894_p9 }
0x25d9   : > { %p4892_p8 = pneg %p4891_p7 }
0x25da   : > { %p4898_p13 = por %p4897_p12, %p4896_p11 }
0x25dc   : > { %p4899_p0 = pnand %p4898_p13, %p4892_p8 }
0x25de   : > { %4902 = shalt.err (!%p4899_p0)
}
0x25df   : > { %4707 = dma.vmem_to_hbm [thread:$0]  (%p5113_p5), %s5803_s8, 128, %s5801_s22, %s3996_s28  }
0x25e0 PF: > { %s5953_s25 = sld [smem:[#allocation8_spill]]  ;;  %s5954_s1 = sld [smem:[#allocation5_spill]] }
0x25e6   : > { %p4713_p1 = scmp.ge.s32.totalorder %s5953_s25, 2  ;;  %s4021_s0 = sand.u32 1, %s5954_s1  }
0x25e7   : > { %s4022_s6 = scalar_lea.sflag [#allocation3], %s4021_s0 }
0x25e8   : > { %p4710_p2 = pnand %p4713_p1, %p5117_p6 }
0x25ea   : > { %4920 = dma.done.wait (!%p4710_p2), %s4022_s6, 128  }
0x25eb   : > { %4922 = vsyncadd (!%p4710_p2), %s4022_s6, 4294967168  ;;  %s5956_s28 = sld [smem:[#allocation10_spill]]  ;;  %s5957_s5 = sld [smem:[#allocation6_spill]] }
0x25ec   : > { %s5958_s26 = sld [smem:[#allocation7_spill]]  ;;  %s5959_s27 = sld [smem:[#allocation11_spill]] }
0x25f1   : > { %p34_p3 = scmp.ge.s32.totalorder %s5956_s28, 4  }
0x25f3   :  { %36 = sbr.rel (!%p34_p3) target bundleno = 16 (0x10), region = 186 }
0x25fa   :  { %4027 = vsyncpa [#allocation3], 1 }
0x25fb   :  { %4029 = vsyncpa [#allocation3 + $0x1], 1 }

</bundles_post_ra>
